<compile_context>
chip_gen: v5e
topology: v5e:2x2
jax: 0.10.0
libtpu: 0.0.40
codegen_flags: <defaults>
</compile_context>

<pallas_src>
import jax
import jax.numpy as jnp
from jax import lax
from jax.experimental import pallas as pl
from jax.experimental.pallas import tpu as pltpu


def _layernorm(h, gamma, beta, eps=1e-5):
    mean = jnp.mean(h, axis=-1, keepdims=True)
    var = jnp.mean((h - mean) ** 2, axis=-1, keepdims=True)
    return (h - mean) * lax.rsqrt(var + eps) * gamma + beta


def _make_kernel(num_heads, batched_heads):
    f32 = jnp.float32
    bf16 = jnp.bfloat16

    def kernel(xq_ref, xkv_ref, maskb_ref,
               wqkv_ref, bqkv_ref, wo_ref, bo_ref,
               g1_ref, be1_ref, w1_ref, bf1_ref, w2_ref, bf2_ref,
               g2_ref, be2_ref,
               o_ref, *scratch):
        x_q = xq_ref[0]                      # (TQ, E) f32 — query / residual rows
        TQ, E = x_q.shape
        H = num_heads
        d = E // H
        L = xkv_ref.shape[1]

        if batched_heads:
            kv_ref, = scratch                # (2H, L, d) bf16 persistent K/V cache
        else:
            kv_ref, ctx_ref = scratch        # (L, 2E) bf16 cache, (TQ, E) f32 ctx

        # --- once per batch element: project K and V for the whole sequence ---
        @pl.when(pl.program_id(1) == 0)
        def _():
            x_kv = xkv_ref[0]                                      # (L, E) bf16
            kv = jnp.dot(x_kv, wqkv_ref[:, E:],
                         preferred_element_type=f32) + bqkv_ref[:, E:]   # (L, 2E) f32
            if batched_heads:
                kv = kv.reshape(L, 2 * H, d)
                kv = pltpu.einshape("lnd->nld", kv)                # (2H, L, d)
            kv_ref[...] = kv.astype(bf16)

        # --- Q projection for this tile (1/sqrt(d) already folded into wqkv/bqkv) ---
        x_q_bf = x_q.astype(bf16)
        q = jnp.dot(x_q_bf, wqkv_ref[:, :E],
                    preferred_element_type=f32) + bqkv_ref[:, :E]  # (TQ, E) f32
        maskb = maskb_ref[0]                                       # (1, L) additive bias

        if batched_heads:
            # head-batched attention: one QK^T, one softmax, one PV
            q_h = pltpu.einshape("thd->htd", q.reshape(TQ, H, d)).astype(bf16)
            k_h = kv_ref[:H]                                       # (H, L, d) bf16
            v_h = kv_ref[H:]                                       # (H, L, d) bf16
            s = jnp.einsum("htd,hld->htl", q_h, k_h,
                           preferred_element_type=f32)             # (H, TQ, L) f32
            s = s + maskb
            m = jnp.max(s, axis=-1, keepdims=True)
            p = jnp.exp(s - m)
            denom = jnp.sum(p, axis=-1, keepdims=True)
            p = (p * pl.reciprocal(denom, approx=True)).astype(bf16)
            ctx = jnp.einsum("htl,hld->htd", p, v_h,
                             preferred_element_type=f32)           # (H, TQ, d) f32
            ctx = pltpu.einshape("htd->thd", ctx).reshape(TQ, E).astype(bf16)
        else:
            # conservative fallback: per-head loop (previously validated structure)
            k = kv_ref[:, :E].astype(f32)
            v = kv_ref[:, E:].astype(f32)
            for h in range(H):
                qh = q[:, h * d:(h + 1) * d].astype(bf16)
                kh = k[:, h * d:(h + 1) * d].astype(bf16)
                vh = v[:, h * d:(h + 1) * d].astype(bf16)
                s = lax.dot_general(qh, kh, (((1,), (1,)), ((), ())),
                                    preferred_element_type=f32)    # (TQ, L)
                s = s + maskb
                m = jnp.max(s, axis=-1, keepdims=True)
                p = jnp.exp(s - m)
                denom = jnp.sum(p, axis=-1, keepdims=True)
                p = p * pl.reciprocal(denom, approx=True)
                ctx_ref[:, h * d:(h + 1) * d] = jnp.dot(
                    p.astype(bf16), vh, preferred_element_type=f32)
            ctx = ctx_ref[...].astype(bf16)

        # --- single full-E output projection ---
        attn = jnp.dot(ctx, wo_ref[...], preferred_element_type=f32) + bo_ref[...]

        # --- Add & Norm 1 (f32) ---
        h1 = _layernorm(x_q + attn, g1_ref[...], be1_ref[...])

        # --- FFN (bf16 matmuls, f32 accumulate / ReLU) ---
        ff = jnp.dot(h1.astype(bf16), w1_ref[...],
                     preferred_element_type=f32) + bf1_ref[...]
        ff = jnp.maximum(ff, 0.0)
        ff = jnp.dot(ff.astype(bf16), w2_ref[...],
                     preferred_element_type=f32) + bf2_ref[...]

        # --- Add & Norm 2 (f32) ---
        o_ref[0] = _layernorm(h1 + ff, g2_ref[...], be2_ref[...]).astype(o_ref.dtype)

    return kernel


def _vmem_limit_bytes():
    # ~75% of physical VMEM, capped at 100 MiB: ~96 MiB on v5e/v6e (128 MiB physical),
    # ~48 MiB on v7x (64 MiB physical) — leaves headroom for Mosaic internal scratch.
    try:
        cap = int(pltpu.get_tpu_info().vmem_capacity_bytes)
    except Exception:
        cap = 64 * 1024 * 1024
    return min((cap * 3) // 4, 100 * 1024 * 1024)


def _build_call(B, L, E, F, H, tile_q, *, batched_heads, single_buffer_weights):
    nq = L // tile_q
    d = E // H

    def const_spec(shape):
        idx = lambda b, q: (0,) * len(shape)
        if single_buffer_weights:
            # block index never changes across the grid — single-buffer to save VMEM
            return pl.BlockSpec(shape, idx, pipeline_mode=pl.Buffered(1))
        return pl.BlockSpec(shape, idx)

    in_specs = [
        pl.BlockSpec((1, tile_q, E), lambda b, q: (b, q, 0)),   # x (f32): query tile
        pl.BlockSpec((1, L, E), lambda b, q: (b, 0, 0)),        # x (bf16): K/V source
        pl.BlockSpec((1, 1, L), lambda b, q: (b, 0, 0)),        # additive mask bias
        const_spec((E, 3 * E)), const_spec((1, 3 * E)),         # wqkv (bf16, Q pre-scaled), bqkv
        const_spec((E, E)), const_spec((1, E)),                 # wo (bf16), bo
        const_spec((1, E)), const_spec((1, E)),                 # norm1 gamma, beta
        const_spec((E, F)), const_spec((1, F)),                 # ffn w1 (bf16), b1
        const_spec((F, E)), const_spec((1, E)),                 # ffn w2 (bf16), b2
        const_spec((1, E)), const_spec((1, E)),                 # norm2 gamma, beta
    ]

    if batched_heads:
        scratch = [pltpu.VMEM((2 * H, L, d), jnp.bfloat16)]     # head-major K/V cache
    else:
        scratch = [pltpu.VMEM((L, 2 * E), jnp.bfloat16),        # K/V cache
                   pltpu.VMEM((tile_q, E), jnp.float32)]        # per-head ctx buffer

    return pl.pallas_call(
        _make_kernel(H, batched_heads),
        out_shape=jax.ShapeDtypeStruct((B, L, E), jnp.float32),
        grid=(B, nq),
        in_specs=in_specs,
        out_specs=pl.BlockSpec((1, tile_q, E), lambda b, q: (b, q, 0)),
        scratch_shapes=scratch,
        compiler_params=pltpu.CompilerParams(
            # batch axis parallel (feeds both v7x TensorCores); q axis sequential so
            # the per-batch K/V cache built at q == 0 is valid for all later q tiles.
            dimension_semantics=("parallel", "arbitrary"),
            vmem_limit_bytes=_vmem_limit_bytes()),
    )


def encoder_layer_pallas(x, key_padding_mask, params, num_heads, tile_q=128):
    # tile_q: raise to 256 on v6e/v5e when L (and the (H, tile_q, L) score buffer) permit.
    B, L, E = x.shape
    H = num_heads
    assert E % H == 0
    d = E // H
    F = params["w1"].shape[1]

    tile_q = max(1, min(tile_q, L))
    while L % tile_q:
        tile_q -= 1

    bf16 = jnp.bfloat16
    scale = 1.0 / (d ** 0.5)
    # fold 1/sqrt(head_dim) into the Q columns of the in-projection (once, at trace time)
    wqkv = params["wqkv"].at[:, :E].multiply(scale).astype(bf16)
    bqkv = params["bqkv"].at[:, :E].multiply(scale)
    wo = params["wo"].astype(bf16)
    w1 = params["w1"].astype(bf16)
    w2 = params["w2"].astype(bf16)

    # additive key-padding bias: 0 = attend, -1e9 = masked (True in the mask)
    maskb = jnp.where(key_padding_mask, -1e9, 0.0).astype(jnp.float32).reshape(B, 1, L)
    x_kv = x.astype(bf16)   # K/V source in bf16 (halves the largest per-step DMA)

    args = (x, x_kv, maskb,
            wqkv, bqkv, wo, params["bo"],
            params["g1"], params["be1"],
            w1, params["bf1"], w2, params["bf2"],
            params["g2"], params["be2"])

    configs = (
        dict(batched_heads=True, single_buffer_weights=True),
        dict(batched_heads=True, single_buffer_weights=False),
        dict(batched_heads=False, single_buffer_weights=False),
    )
    last_err = None
    for cfg in configs:
        try:
            call = _build_call(B, L, E, F, H, tile_q, **cfg)
            return jax.block_until_ready(call(*args))
        except Exception as e:  # fall back to a simpler, known-good variant
            last_err = e
    raise last_err


def encoder_layer_ref(x, key_padding_mask, p, num_heads):
    """Pure-JAX f32 reference (mirrors nn.MultiheadAttention + LayerNorm + FFN)."""
    B, L, E = x.shape
    d = E // num_heads
    maskb = jnp.where(key_padding_mask, -1e9, 0.0).astype(jnp.float32)
    qkv = x @ p["wqkv"] + p["bqkv"]
    q, k, v = qkv[..., :E], qkv[..., E:2 * E], qkv[..., 2 * E:]
    q = q.reshape(B, L, num_heads, d).transpose(0, 2, 1, 3)
    k = k.reshape(B, L, num_heads, d).transpose(0, 2, 1, 3)
    v = v.reshape(B, L, num_heads, d).transpose(0, 2, 1, 3)
    s = jnp.einsum("bhqd,bhkd->bhqk", q, k) / jnp.sqrt(jnp.float32(d))
    s = s + maskb[:, None, None, :]
    a = jax.nn.softmax(s, axis=-1)
    ctx = jnp.einsum("bhqk,bhkd->bhqd", a, v).transpose(0, 2, 1, 3).reshape(B, L, E)
    attn = ctx @ p["wo"] + p["bo"]

    def ln(h, g, b):
        m = h.mean(-1, keepdims=True)
        vr = ((h - m) ** 2).mean(-1, keepdims=True)
        return (h - m) / jnp.sqrt(vr + 1e-5) * g + b

    h1 = ln(x + attn, p["g1"], p["be1"])
    ff = jnp.maximum(h1 @ p["w1"] + p["bf1"], 0.0) @ p["w2"] + p["bf2"]
    return ln(h1 + ff, p["g2"], p["be2"])


def init_params(key, E, F):
    ks = jax.random.split(key, 12)
    n = lambda k, s, sc=0.05: (sc * jax.random.normal(k, s)).astype(jnp.float32)
    return dict(
        wqkv=n(ks[0], (E, 3 * E)), bqkv=n(ks[1], (1, 3 * E)),
        wo=n(ks[2], (E, E)), bo=n(ks[3], (1, E)),
        g1=1.0 + n(ks[4], (1, E), 0.1), be1=n(ks[5], (1, E), 0.1),
        w1=n(ks[6], (E, F)), bf1=n(ks[7], (1, F)),
        w2=n(ks[8], (F, E)), bf2=n(ks[9], (1, E)),
        g2=1.0 + n(ks[10], (1, E), 0.1), be2=n(ks[11], (1, E), 0.1),
    )


if __name__ == "__main__":
    B, L, E, H, F = 2, 8, 32, 4, 64
    key = jax.random.PRNGKey(0)
    kx, kp = jax.random.split(key)

    x = jax.random.normal(kx, (B, L, E), dtype=jnp.float32)
    # key_padding_mask: True = ignore this key (pad the tail of batch element 1)
    mask = jnp.zeros((B, L), dtype=bool).at[1, 6:].set(True)
    params = init_params(kp, E, F)

    out = encoder_layer_pallas(x, mask, params, H)
    out = jax.block_until_ready(out)

    ref = encoder_layer_ref(x, mask, params, H)
    assert out.shape == (B, L, E)
    assert bool(jnp.all(jnp.isfinite(out)))
    # bf16 MXU operands vs. the pure-f32 reference → tolerance loosened accordingly.
    err = float(jnp.max(jnp.abs(out - ref)))
    assert err < 3e-2, err

    print("KERNEL_OK")
</pallas_src>

<mosaic_0001>
module attributes {stable_mosaic.version = 11 : i64} {
  func.func @kernel(%arg0: i32, %arg1: i32, %arg2: memref<1x8x32xf32, #tpu.memory_space<vmem>>, %arg3: memref<1x8x32xbf16, #tpu.memory_space<vmem>>, %arg4: memref<1x1x8xf32, #tpu.memory_space<vmem>>, %arg5: memref<32x96xbf16, #tpu.memory_space<vmem>>, %arg6: memref<1x96xf32, #tpu.memory_space<vmem>>, %arg7: memref<32x32xbf16, #tpu.memory_space<vmem>>, %arg8: memref<1x32xf32, #tpu.memory_space<vmem>>, %arg9: memref<1x32xf32, #tpu.memory_space<vmem>>, %arg10: memref<1x32xf32, #tpu.memory_space<vmem>>, %arg11: memref<32x64xbf16, #tpu.memory_space<vmem>>, %arg12: memref<1x64xf32, #tpu.memory_space<vmem>>, %arg13: memref<64x32xbf16, #tpu.memory_space<vmem>>, %arg14: memref<1x32xf32, #tpu.memory_space<vmem>>, %arg15: memref<1x32xf32, #tpu.memory_space<vmem>>, %arg16: memref<1x32xf32, #tpu.memory_space<vmem>>, %arg17: memref<1x8x32xf32, #tpu.memory_space<vmem>>, %arg18: memref<8x8x8xbf16, #tpu.memory_space<vmem>>) attributes {dimension_semantics = [#tpu.dimension_semantics<parallel>, #tpu.dimension_semantics<arbitrary>], iteration_bounds = array<i64: 2, 1>, scalar_prefetch = 0 : i64, scratch_operands = 1 : i64, tpu.core_type = #tpu.core_type<tc>, window_params = [{transform_indices = @transform_0, window_bounds = array<i64: 1, 8, 32>}, {transform_indices = @transform_1, window_bounds = array<i64: 1, 8, 32>}, {transform_indices = @transform_2, window_bounds = array<i64: 1, 1, 8>}, {pipeline_mode = #tpu.pipeline_mode<synchronous>, transform_indices = @transform_3, window_bounds = array<i64: 32, 96>}, {pipeline_mode = #tpu.pipeline_mode<synchronous>, transform_indices = @transform_4, window_bounds = array<i64: 1, 96>}, {pipeline_mode = #tpu.pipeline_mode<synchronous>, transform_indices = @transform_5, window_bounds = array<i64: 32, 32>}, {pipeline_mode = #tpu.pipeline_mode<synchronous>, transform_indices = @transform_6, window_bounds = array<i64: 1, 32>}, {pipeline_mode = #tpu.pipeline_mode<synchronous>, transform_indices = @transform_7, window_bounds = array<i64: 1, 32>}, {pipeline_mode = #tpu.pipeline_mode<synchronous>, transform_indices = @transform_8, window_bounds = array<i64: 1, 32>}, {pipeline_mode = #tpu.pipeline_mode<synchronous>, transform_indices = @transform_9, window_bounds = array<i64: 32, 64>}, {pipeline_mode = #tpu.pipeline_mode<synchronous>, transform_indices = @transform_10, window_bounds = array<i64: 1, 64>}, {pipeline_mode = #tpu.pipeline_mode<synchronous>, transform_indices = @transform_11, window_bounds = array<i64: 64, 32>}, {pipeline_mode = #tpu.pipeline_mode<synchronous>, transform_indices = @transform_12, window_bounds = array<i64: 1, 32>}, {pipeline_mode = #tpu.pipeline_mode<synchronous>, transform_indices = @transform_13, window_bounds = array<i64: 1, 32>}, {pipeline_mode = #tpu.pipeline_mode<synchronous>, transform_indices = @transform_14, window_bounds = array<i64: 1, 32>}, {transform_indices = @transform_15, window_bounds = array<i64: 1, 8, 32>}]} {
    %c0 = arith.constant 0 : index
    %c0_0 = arith.constant 0 : index
    %c0_1 = arith.constant 0 : index
    %0 = vector.load %arg2[%c0, %c0_0, %c0_1] : memref<1x8x32xf32, #tpu.memory_space<vmem>>, vector<1x8x32xf32>
    %1 = vector.shape_cast %0 : vector<1x8x32xf32> to vector<8x32xf32>
    %c0_i32 = arith.constant 0 : i32
    %2 = arith.cmpi eq, %arg1, %c0_i32 : i32
    %3 = arith.extui %2 : i1 to i32
    %c0_i32_2 = arith.constant 0 : i32
    %4 = arith.cmpi ne, %3, %c0_i32_2 : i32
    scf.if %4 {
      %c0_56 = arith.constant 0 : index
      %c0_57 = arith.constant 0 : index
      %c0_58 = arith.constant 0 : index
      %109 = vector.load %arg3[%c0_56, %c0_57, %c0_58] : memref<1x8x32xbf16, #tpu.memory_space<vmem>>, vector<1x8x32xbf16>
      %110 = vector.shape_cast %109 : vector<1x8x32xbf16> to vector<8x32xbf16>
      %c0_59 = arith.constant 0 : index
      %c32 = arith.constant 32 : index
      %111 = vector.load %arg5[%c0_59, %c32] : memref<32x96xbf16, #tpu.memory_space<vmem>>, vector<32x64xbf16>
      %cst_60 = arith.constant dense<0.000000e+00> : vector<8x64xf32>
      %112 = tpu.matmul %110, %111, %cst_60 {dimension_numbers = #tpu.dot_dimension_numbers<[1], [0], [0], [1], [0, 0, 1, 1], [], []>} : vector<8x32xbf16>, vector<32x64xbf16>, vector<8x64xf32> -> vector<8x64xf32>
      %c0_61 = arith.constant 0 : index
      %c32_62 = arith.constant 32 : index
      %113 = vector.load %arg6[%c0_61, %c32_62] : memref<1x96xf32, #tpu.memory_space<vmem>>, vector<1x64xf32>
      %114 = vector.broadcast %113 : vector<1x64xf32> to vector<8x64xf32>
      %115 = arith.addf %112, %114 : vector<8x64xf32>
      %116 = vector.shape_cast %115 : vector<8x64xf32> to vector<8x8x8xf32>
      %117 = tpu.transpose %116, [1, 0, 2] : vector<8x8x8xf32> -> vector<8x8x8xf32>
      %118 = arith.truncf %117 : vector<8x8x8xf32> to vector<8x8x8xbf16>
      %c0_63 = arith.constant 0 : index
      %c0_64 = arith.constant 0 : index
      %c0_65 = arith.constant 0 : index
      %119 = vector.load %arg18[%c0_63, %c0_64, %c0_65] : memref<8x8x8xbf16, #tpu.memory_space<vmem>>, vector<8x8x8xbf16>
      tpu.vector_store %arg18[%c0_63, %c0_64, %c0_65], %118 {strides = array<i32>} : memref<8x8x8xbf16, #tpu.memory_space<vmem>>, vector<8x8x8xbf16>,
    } else {
    }
    %5 = arith.truncf %1 : vector<8x32xf32> to vector<8x32xbf16>
    %c0_3 = arith.constant 0 : index
    %c0_4 = arith.constant 0 : index
    %6 = vector.load %arg5[%c0_3, %c0_4] : memref<32x96xbf16, #tpu.memory_space<vmem>>, vector<32x32xbf16>
    %cst = arith.constant dense<0.000000e+00> : vector<8x32xf32>
    %7 = tpu.matmul %5, %6, %cst {dimension_numbers = #tpu.dot_dimension_numbers<[1], [0], [0], [1], [0, 0, 1, 1], [], []>} : vector<8x32xbf16>, vector<32x32xbf16>, vector<8x32xf32> -> vector<8x32xf32>
    %c0_5 = arith.constant 0 : index
    %c0_6 = arith.constant 0 : index
    %8 = vector.load %arg6[%c0_5, %c0_6] : memref<1x96xf32, #tpu.memory_space<vmem>>, vector<1x32xf32>
    %9 = vector.broadcast %8 : vector<1x32xf32> to vector<8x32xf32>
    %10 = arith.addf %7, %9 : vector<8x32xf32>
    %c0_7 = arith.constant 0 : index
    %c0_8 = arith.constant 0 : index
    %c0_9 = arith.constant 0 : index
    %11 = vector.load %arg4[%c0_7, %c0_8, %c0_9] : memref<1x1x8xf32, #tpu.memory_space<vmem>>, vector<1x1x8xf32>
    %12 = vector.shape_cast %11 : vector<1x1x8xf32> to vector<1x8xf32>
    %13 = vector.shape_cast %10 : vector<8x32xf32> to vector<8x4x8xf32>
    %14 = tpu.transpose %13, [1, 0, 2] : vector<8x4x8xf32> -> vector<4x8x8xf32>
    %15 = arith.truncf %14 : vector<4x8x8xf32> to vector<4x8x8xbf16>
    %c0_10 = arith.constant 0 : index
    %c0_11 = arith.constant 0 : index
    %c0_12 = arith.constant 0 : index
    %16 = vector.load %arg18[%c0_10, %c0_11, %c0_12] : memref<8x8x8xbf16, #tpu.memory_space<vmem>>, vector<4x8x8xbf16>
    %c4 = arith.constant 4 : index
    %c0_13 = arith.constant 0 : index
    %c0_14 = arith.constant 0 : index
    %17 = vector.load %arg18[%c4, %c0_13, %c0_14] : memref<8x8x8xbf16, #tpu.memory_space<vmem>>, vector<4x8x8xbf16>
    "tpu.trace_start"() <{level = 10 : i32, message = "htd,hld->htl"}> : () -> ()
    %cst_15 = arith.constant dense<0.000000e+00> : vector<4x8x8xf32>
    %18 = tpu.matmul %15, %16, %cst_15 {dimension_numbers = #tpu.dot_dimension_numbers<[2], [2], [1], [1], [0, 0, 0, 1, 1, 1], [0], [0]>} : vector<4x8x8xbf16>, vector<4x8x8xbf16>, vector<4x8x8xf32> -> vector<4x8x8xf32>
    "tpu.trace_stop"() : () -> ()
    %19 = vector.shape_cast %12 : vector<1x8xf32> to vector<1x1x8xf32>
    %20 = vector.broadcast %19 : vector<1x1x8xf32> to vector<4x8x8xf32>
    %21 = arith.addf %18, %20 : vector<4x8x8xf32>
    %cst_16 = arith.constant dense<0xFF800000> : vector<4x8xf32>
    %22 = vector.multi_reduction <maximumf>, %21, %cst_16 [2] : vector<4x8x8xf32> to vector<4x8xf32>
    %23 = vector.shape_cast %22 : vector<4x8xf32> to vector<4x8x1xf32>
    %24 = vector.broadcast %23 : vector<4x8x1xf32> to vector<4x8x8xf32>
    %25 = arith.subf %21, %24 : vector<4x8x8xf32>
    %26 = math.exp %25 : vector<4x8x8xf32>
    %cst_17 = arith.constant dense<0.000000e+00> : vector<4x8xf32>
    %27 = vector.multi_reduction <add>, %26, %cst_17 [2] : vector<4x8x8xf32> to vector<4x8xf32>
    %28 = vector.shape_cast %27 : vector<4x8xf32> to vector<4x8x1xf32>
    %29 = tpu.reciprocal %28 {approx = true} : vector<4x8x1xf32> -> vector<4x8x1xf32>
    %30 = vector.broadcast %29 : vector<4x8x1xf32> to vector<4x8x8xf32>
    %31 = arith.mulf %26, %30 : vector<4x8x8xf32>
    %32 = arith.truncf %31 : vector<4x8x8xf32> to vector<4x8x8xbf16>
    "tpu.trace_start"() <{level = 10 : i32, message = "htl,hld->htd"}> : () -> ()
    %cst_18 = arith.constant dense<0.000000e+00> : vector<4x8x8xf32>
    %33 = tpu.matmul %32, %17, %cst_18 {dimension_numbers = #tpu.dot_dimension_numbers<[2], [1], [1], [2], [0, 0, 0, 1, 1, 2], [0], [0]>} : vector<4x8x8xbf16>, vector<4x8x8xbf16>, vector<4x8x8xf32> -> vector<4x8x8xf32>
    "tpu.trace_stop"() : () -> ()
    %34 = tpu.transpose %33, [1, 0, 2] : vector<4x8x8xf32> -> vector<8x4x8xf32>
    %35 = vector.shape_cast %34 : vector<8x4x8xf32> to vector<8x32xf32>
    %36 = arith.truncf %35 : vector<8x32xf32> to vector<8x32xbf16>
    %c0_19 = arith.constant 0 : index
    %c0_20 = arith.constant 0 : index
    %37 = vector.load %arg7[%c0_19, %c0_20] : memref<32x32xbf16, #tpu.memory_space<vmem>>, vector<32x32xbf16>
    %cst_21 = arith.constant dense<0.000000e+00> : vector<8x32xf32>
    %38 = tpu.matmul %36, %37, %cst_21 {dimension_numbers = #tpu.dot_dimension_numbers<[1], [0], [0], [1], [0, 0, 1, 1], [], []>} : vector<8x32xbf16>, vector<32x32xbf16>, vector<8x32xf32> -> vector<8x32xf32>
    %c0_22 = arith.constant 0 : index
    %c0_23 = arith.constant 0 : index
    %39 = vector.load %arg8[%c0_22, %c0_23] : memref<1x32xf32, #tpu.memory_space<vmem>>, vector<1x32xf32>
    %40 = vector.broadcast %39 : vector<1x32xf32> to vector<8x32xf32>
    %41 = arith.addf %38, %40 : vector<8x32xf32>
    %42 = arith.addf %1, %41 : vector<8x32xf32>
    %c0_24 = arith.constant 0 : index
    %c0_25 = arith.constant 0 : index
    %43 = vector.load %arg9[%c0_24, %c0_25] : memref<1x32xf32, #tpu.memory_space<vmem>>, vector<1x32xf32>
    %c0_26 = arith.constant 0 : index
    %c0_27 = arith.constant 0 : index
    %44 = vector.load %arg10[%c0_26, %c0_27] : memref<1x32xf32, #tpu.memory_space<vmem>>, vector<1x32xf32>
    %cst_28 = arith.constant dense<0.000000e+00> : vector<8xf32>
    %45 = vector.multi_reduction <add>, %42, %cst_28 [1] : vector<8x32xf32> to vector<8xf32>
    %46 = vector.shape_cast %45 : vector<8xf32> to vector<8x1xf32>
    %cst_29 = arith.constant 3.200000e+01 : f32
    %47 = vector.broadcast %cst_29 : f32 to vector<8x1xf32>
    %48 = arith.divf %46, %47 : vector<8x1xf32>
    %49 = vector.broadcast %48 : vector<8x1xf32> to vector<8x32xf32>
    %50 = arith.subf %42, %49 : vector<8x32xf32>
    %51 = arith.mulf %50, %50 : vector<8x32xf32>
    %cst_30 = arith.constant dense<0.000000e+00> : vector<8xf32>
    %52 = vector.multi_reduction <add>, %51, %cst_30 [1] : vector<8x32xf32> to vector<8xf32>
    %53 = vector.shape_cast %52 : vector<8xf32> to vector<8x1xf32>
    %cst_31 = arith.constant 3.200000e+01 : f32
    %54 = vector.broadcast %cst_31 : f32 to vector<8x1xf32>
    %55 = arith.divf %53, %54 : vector<8x1xf32>
    %56 = vector.broadcast %48 : vector<8x1xf32> to vector<8x32xf32>
    %57 = arith.subf %42, %56 : vector<8x32xf32>
    %cst_32 = arith.constant 9.99999974E-6 : f32
    %58 = vector.broadcast %cst_32 : f32 to vector<8x1xf32>
    %59 = arith.addf %55, %58 : vector<8x1xf32>
    %60 = math.rsqrt %59 : vector<8x1xf32>
    %61 = vector.broadcast %60 : vector<8x1xf32> to vector<8x32xf32>
    %62 = arith.mulf %57, %61 : vector<8x32xf32>
    %63 = vector.broadcast %43 : vector<1x32xf32> to vector<8x32xf32>
    %64 = arith.mulf %62, %63 : vector<8x32xf32>
    %65 = vector.broadcast %44 : vector<1x32xf32> to vector<8x32xf32>
    %66 = arith.addf %64, %65 : vector<8x32xf32>
    %67 = arith.truncf %66 : vector<8x32xf32> to vector<8x32xbf16>
    %c0_33 = arith.constant 0 : index
    %c0_34 = arith.constant 0 : index
    %68 = vector.load %arg11[%c0_33, %c0_34] : memref<32x64xbf16, #tpu.memory_space<vmem>>, vector<32x64xbf16>
    %cst_35 = arith.constant dense<0.000000e+00> : vector<8x64xf32>
    %69 = tpu.matmul %67, %68, %cst_35 {dimension_numbers = #tpu.dot_dimension_numbers<[1], [0], [0], [1], [0, 0, 1, 1], [], []>} : vector<8x32xbf16>, vector<32x64xbf16>, vector<8x64xf32> -> vector<8x64xf32>
    %c0_36 = arith.constant 0 : index
    %c0_37 = arith.constant 0 : index
    %70 = vector.load %arg12[%c0_36, %c0_37] : memref<1x64xf32, #tpu.memory_space<vmem>>, vector<1x64xf32>
    %71 = vector.broadcast %70 : vector<1x64xf32> to vector<8x64xf32>
    %72 = arith.addf %69, %71 : vector<8x64xf32>
    %cst_38 = arith.constant 0.000000e+00 : f32
    %73 = vector.broadcast %cst_38 : f32 to vector<8x64xf32>
    %74 = arith.maximumf %72, %73 : vector<8x64xf32>
    %75 = arith.truncf %74 : vector<8x64xf32> to vector<8x64xbf16>
    %c0_39 = arith.constant 0 : index
    %c0_40 = arith.constant 0 : index
    %76 = vector.load %arg13[%c0_39, %c0_40] : memref<64x32xbf16, #tpu.memory_space<vmem>>, vector<64x32xbf16>
    %cst_41 = arith.constant dense<0.000000e+00> : vector<8x32xf32>
    %77 = tpu.matmul %75, %76, %cst_41 {dimension_numbers = #tpu.dot_dimension_numbers<[1], [0], [0], [1], [0, 0, 1, 1], [], []>} : vector<8x64xbf16>, vector<64x32xbf16>, vector<8x32xf32> -> vector<8x32xf32>
    %c0_42 = arith.constant 0 : index
    %c0_43 = arith.constant 0 : index
    %78 = vector.load %arg14[%c0_42, %c0_43] : memref<1x32xf32, #tpu.memory_space<vmem>>, vector<1x32xf32>
    %79 = vector.broadcast %78 : vector<1x32xf32> to vector<8x32xf32>
    %80 = arith.addf %77, %79 : vector<8x32xf32>
    %81 = arith.addf %66, %80 : vector<8x32xf32>
    %c0_44 = arith.constant 0 : index
    %c0_45 = arith.constant 0 : index
    %82 = vector.load %arg15[%c0_44, %c0_45] : memref<1x32xf32, #tpu.memory_space<vmem>>, vector<1x32xf32>
    %c0_46 = arith.constant 0 : index
    %c0_47 = arith.constant 0 : index
    %83 = vector.load %arg16[%c0_46, %c0_47] : memref<1x32xf32, #tpu.memory_space<vmem>>, vector<1x32xf32>
    %cst_48 = arith.constant dense<0.000000e+00> : vector<8xf32>
    %84 = vector.multi_reduction <add>, %81, %cst_48 [1] : vector<8x32xf32> to vector<8xf32>
    %85 = vector.shape_cast %84 : vector<8xf32> to vector<8x1xf32>
    %cst_49 = arith.constant 3.200000e+01 : f32
    %86 = vector.broadcast %cst_49 : f32 to vector<8x1xf32>
    %87 = arith.divf %85, %86 : vector<8x1xf32>
    %88 = vector.broadcast %87 : vector<8x1xf32> to vector<8x32xf32>
    %89 = arith.subf %81, %88 : vector<8x32xf32>
    %90 = arith.mulf %89, %89 : vector<8x32xf32>
    %cst_50 = arith.constant dense<0.000000e+00> : vector<8xf32>
    %91 = vector.multi_reduction <add>, %90, %cst_50 [1] : vector<8x32xf32> to vector<8xf32>
    %92 = vector.shape_cast %91 : vector<8xf32> to vector<8x1xf32>
    %cst_51 = arith.constant 3.200000e+01 : f32
    %93 = vector.broadcast %cst_51 : f32 to vector<8x1xf32>
    %94 = arith.divf %92, %93 : vector<8x1xf32>
    %95 = vector.broadcast %87 : vector<8x1xf32> to vector<8x32xf32>
    %96 = arith.subf %81, %95 : vector<8x32xf32>
    %cst_52 = arith.constant 9.99999974E-6 : f32
    %97 = vector.broadcast %cst_52 : f32 to vector<8x1xf32>
    %98 = arith.addf %94, %97 : vector<8x1xf32>
    %99 = math.rsqrt %98 : vector<8x1xf32>
    %100 = vector.broadcast %99 : vector<8x1xf32> to vector<8x32xf32>
    %101 = arith.mulf %96, %100 : vector<8x32xf32>
    %102 = vector.broadcast %82 : vector<1x32xf32> to vector<8x32xf32>
    %103 = arith.mulf %101, %102 : vector<8x32xf32>
    %104 = vector.broadcast %83 : vector<1x32xf32> to vector<8x32xf32>
    %105 = arith.addf %103, %104 : vector<8x32xf32>
    %c0_53 = arith.constant 0 : index
    %c0_54 = arith.constant 0 : index
    %c0_55 = arith.constant 0 : index
    %106 = vector.load %arg17[%c0_53, %c0_54, %c0_55] : memref<1x8x32xf32, #tpu.memory_space<vmem>>, vector<1x8x32xf32>
    %107 = vector.shape_cast %106 : vector<1x8x32xf32> to vector<8x32xf32>
    %108 = vector.shape_cast %105 : vector<8x32xf32> to vector<1x8x32xf32>
    tpu.vector_store %arg17[%c0_53, %c0_54, %c0_55], %108 {strides = array<i32>} : memref<1x8x32xf32, #tpu.memory_space<vmem>>, vector<1x8x32xf32>,
    return
  }
  func.func @transform_0(%arg0: i32, %arg1: i32) -> (i32, i32, i32) {
    %c0_i32 = arith.constant 0 : i32
    %c0_i32_0 = arith.constant 0 : i32
    return %arg0, %arg1, %c0_i32 : i32, i32, i32
  }
  func.func @transform_1(%arg0: i32, %arg1: i32) -> (i32, i32, i32) {
    %c0_i32 = arith.constant 0 : i32
    %c0_i32_0 = arith.constant 0 : i32
    %c0_i32_1 = arith.constant 0 : i32
    return %arg0, %c0_i32, %c0_i32_0 : i32, i32, i32
  }
  func.func @transform_2(%arg0: i32, %arg1: i32) -> (i32, i32, i32) {
    %c0_i32 = arith.constant 0 : i32
    %c0_i32_0 = arith.constant 0 : i32
    %c0_i32_1 = arith.constant 0 : i32
    return %arg0, %c0_i32, %c0_i32_0 : i32, i32, i32
  }
  func.func @transform_3(%arg0: i32, %arg1: i32) -> (i32, i32) {
    %c0_i32 = arith.constant 0 : i32
    %c0_i32_0 = arith.constant 0 : i32
    %c0_i32_1 = arith.constant 0 : i32
    return %c0_i32, %c0_i32_0 : i32, i32
  }
  func.func @transform_4(%arg0: i32, %arg1: i32) -> (i32, i32) {
    %c0_i32 = arith.constant 0 : i32
    %c0_i32_0 = arith.constant 0 : i32
    %c0_i32_1 = arith.constant 0 : i32
    return %c0_i32, %c0_i32_0 : i32, i32
  }
  func.func @transform_5(%arg0: i32, %arg1: i32) -> (i32, i32) {
    %c0_i32 = arith.constant 0 : i32
    %c0_i32_0 = arith.constant 0 : i32
    %c0_i32_1 = arith.constant 0 : i32
    return %c0_i32, %c0_i32_0 : i32, i32
  }
  func.func @transform_6(%arg0: i32, %arg1: i32) -> (i32, i32) {
    %c0_i32 = arith.constant 0 : i32
    %c0_i32_0 = arith.constant 0 : i32
    %c0_i32_1 = arith.constant 0 : i32
    return %c0_i32, %c0_i32_0 : i32, i32
  }
  func.func @transform_7(%arg0: i32, %arg1: i32) -> (i32, i32) {
    %c0_i32 = arith.constant 0 : i32
    %c0_i32_0 = arith.constant 0 : i32
    %c0_i32_1 = arith.constant 0 : i32
    return %c0_i32, %c0_i32_0 : i32, i32
  }
  func.func @transform_8(%arg0: i32, %arg1: i32) -> (i32, i32) {
    %c0_i32 = arith.constant 0 : i32
    %c0_i32_0 = arith.constant 0 : i32
    %c0_i32_1 = arith.constant 0 : i32
    return %c0_i32, %c0_i32_0 : i32, i32
  }
  func.func @transform_9(%arg0: i32, %arg1: i32) -> (i32, i32) {
    %c0_i32 = arith.constant 0 : i32
    %c0_i32_0 = arith.constant 0 : i32
    %c0_i32_1 = arith.constant 0 : i32
    return %c0_i32, %c0_i32_0 : i32, i32
  }
  func.func @transform_10(%arg0: i32, %arg1: i32) -> (i32, i32) {
    %c0_i32 = arith.constant 0 : i32
    %c0_i32_0 = arith.constant 0 : i32
    %c0_i32_1 = arith.constant 0 : i32
    return %c0_i32, %c0_i32_0 : i32, i32
  }
  func.func @transform_11(%arg0: i32, %arg1: i32) -> (i32, i32) {
    %c0_i32 = arith.constant 0 : i32
    %c0_i32_0 = arith.constant 0 : i32
    %c0_i32_1 = arith.constant 0 : i32
    return %c0_i32, %c0_i32_0 : i32, i32
  }
  func.func @transform_12(%arg0: i32, %arg1: i32) -> (i32, i32) {
    %c0_i32 = arith.constant 0 : i32
    %c0_i32_0 = arith.constant 0 : i32
    %c0_i32_1 = arith.constant 0 : i32
    return %c0_i32, %c0_i32_0 : i32, i32
  }
  func.func @transform_13(%arg0: i32, %arg1: i32) -> (i32, i32) {
    %c0_i32 = arith.constant 0 : i32
    %c0_i32_0 = arith.constant 0 : i32
    %c0_i32_1 = arith.constant 0 : i32
    return %c0_i32, %c0_i32_0 : i32, i32
  }
  func.func @transform_14(%arg0: i32, %arg1: i32) -> (i32, i32) {
    %c0_i32 = arith.constant 0 : i32
    %c0_i32_0 = arith.constant 0 : i32
    %c0_i32_1 = arith.constant 0 : i32
    return %c0_i32, %c0_i32_0 : i32, i32
  }
  func.func @transform_15(%arg0: i32, %arg1: i32) -> (i32, i32, i32) {
    %c0_i32 = arith.constant 0 : i32
    %c0_i32_0 = arith.constant 0 : i32
    return %arg0, %arg1, %c0_i32 : i32, i32, i32
  }
}

module attributes {stable_mosaic.version = 11 : i64} {
  func.func @kernel(%arg0: i32, %arg1: i32, %arg2: memref<1x8x32xf32, #tpu.memory_space<vmem>>, %arg3: memref<1x8x32xbf16, #tpu.memory_space<vmem>>, %arg4: memref<1x1x8xf32, #tpu.memory_space<vmem>>, %arg5: memref<32x96xbf16, #tpu.memory_space<vmem>>, %arg6: memref<1x96xf32, #tpu.memory_space<vmem>>, %arg7: memref<32x32xbf16, #tpu.memory_space<vmem>>, %arg8: memref<1x32xf32, #tpu.memory_space<vmem>>, %arg9: memref<1x32xf32, #tpu.memory_space<vmem>>, %arg10: memref<1x32xf32, #tpu.memory_space<vmem>>, %arg11: memref<32x64xbf16, #tpu.memory_space<vmem>>, %arg12: memref<1x64xf32, #tpu.memory_space<vmem>>, %arg13: memref<64x32xbf16, #tpu.memory_space<vmem>>, %arg14: memref<1x32xf32, #tpu.memory_space<vmem>>, %arg15: memref<1x32xf32, #tpu.memory_space<vmem>>, %arg16: memref<1x32xf32, #tpu.memory_space<vmem>>, %arg17: memref<1x8x32xf32, #tpu.memory_space<vmem>>, %arg18: memref<8x8x8xbf16, #tpu.memory_space<vmem>>) attributes {dimension_semantics = [#tpu.dimension_semantics<parallel>, #tpu.dimension_semantics<arbitrary>], iteration_bounds = array<i64: 2, 1>, scalar_prefetch = 0 : i64, scratch_operands = 1 : i64, tpu.core_type = #tpu.core_type<tc>, window_params = [{transform_indices = @transform_0, window_bounds = array<i64: 1, 8, 32>}, {transform_indices = @transform_1, window_bounds = array<i64: 1, 8, 32>}, {transform_indices = @transform_2, window_bounds = array<i64: 1, 1, 8>}, {pipeline_mode = #tpu.pipeline_mode<synchronous>, transform_indices = @transform_3, window_bounds = array<i64: 32, 96>}, {pipeline_mode = #tpu.pipeline_mode<synchronous>, transform_indices = @transform_4, window_bounds = array<i64: 1, 96>}, {pipeline_mode = #tpu.pipeline_mode<synchronous>, transform_indices = @transform_5, window_bounds = array<i64: 32, 32>}, {pipeline_mode = #tpu.pipeline_mode<synchronous>, transform_indices = @transform_6, window_bounds = array<i64: 1, 32>}, {pipeline_mode = #tpu.pipeline_mode<synchronous>, transform_indices = @transform_7, window_bounds = array<i64: 1, 32>}, {pipeline_mode = #tpu.pipeline_mode<synchronous>, transform_indices = @transform_8, window_bounds = array<i64: 1, 32>}, {pipeline_mode = #tpu.pipeline_mode<synchronous>, transform_indices = @transform_9, window_bounds = array<i64: 32, 64>}, {pipeline_mode = #tpu.pipeline_mode<synchronous>, transform_indices = @transform_10, window_bounds = array<i64: 1, 64>}, {pipeline_mode = #tpu.pipeline_mode<synchronous>, transform_indices = @transform_11, window_bounds = array<i64: 64, 32>}, {pipeline_mode = #tpu.pipeline_mode<synchronous>, transform_indices = @transform_12, window_bounds = array<i64: 1, 32>}, {pipeline_mode = #tpu.pipeline_mode<synchronous>, transform_indices = @transform_13, window_bounds = array<i64: 1, 32>}, {pipeline_mode = #tpu.pipeline_mode<synchronous>, transform_indices = @transform_14, window_bounds = array<i64: 1, 32>}, {transform_indices = @transform_15, window_bounds = array<i64: 1, 8, 32>}]} {
    %c0 = arith.constant 0 : index
    %c0_0 = arith.constant 0 : index
    %c0_1 = arith.constant 0 : index
    %0 = vector.load %arg2[%c0, %c0_0, %c0_1] : memref<1x8x32xf32, #tpu.memory_space<vmem>>, vector<1x8x32xf32>
    %1 = vector.shape_cast %0 : vector<1x8x32xf32> to vector<8x32xf32>
    %c0_i32 = arith.constant 0 : i32
    %2 = arith.cmpi eq, %arg1, %c0_i32 : i32
    %3 = arith.extui %2 : i1 to i32
    %c0_i32_2 = arith.constant 0 : i32
    %4 = arith.cmpi ne, %3, %c0_i32_2 : i32
    scf.if %4 {
      %c0_56 = arith.constant 0 : index
      %c0_57 = arith.constant 0 : index
      %c0_58 = arith.constant 0 : index
      %109 = vector.load %arg3[%c0_56, %c0_57, %c0_58] : memref<1x8x32xbf16, #tpu.memory_space<vmem>>, vector<1x8x32xbf16>
      %110 = vector.shape_cast %109 : vector<1x8x32xbf16> to vector<8x32xbf16>
      %c0_59 = arith.constant 0 : index
      %c32 = arith.constant 32 : index
      %111 = vector.load %arg5[%c0_59, %c32] : memref<32x96xbf16, #tpu.memory_space<vmem>>, vector<32x64xbf16>
      %cst_60 = arith.constant dense<0.000000e+00> : vector<8x64xf32>
      %112 = tpu.matmul %110, %111, %cst_60 {dimension_numbers = #tpu.dot_dimension_numbers<[1], [0], [0], [1], [0, 0, 1, 1], [], []>} : vector<8x32xbf16>, vector<32x64xbf16>, vector<8x64xf32> -> vector<8x64xf32>
      %c0_61 = arith.constant 0 : index
      %c32_62 = arith.constant 32 : index
      %113 = vector.load %arg6[%c0_61, %c32_62] : memref<1x96xf32, #tpu.memory_space<vmem>>, vector<1x64xf32>
      %114 = vector.broadcast %113 : vector<1x64xf32> to vector<8x64xf32>
      %115 = arith.addf %112, %114 : vector<8x64xf32>
      %116 = vector.shape_cast %115 : vector<8x64xf32> to vector<8x8x8xf32>
      %117 = tpu.transpose %116, [1, 0, 2] : vector<8x8x8xf32> -> vector<8x8x8xf32>
      %118 = arith.truncf %117 : vector<8x8x8xf32> to vector<8x8x8xbf16>
      %c0_63 = arith.constant 0 : index
      %c0_64 = arith.constant 0 : index
      %c0_65 = arith.constant 0 : index
      %119 = vector.load %arg18[%c0_63, %c0_64, %c0_65] : memref<8x8x8xbf16, #tpu.memory_space<vmem>>, vector<8x8x8xbf16>
      tpu.vector_store %arg18[%c0_63, %c0_64, %c0_65], %118 {strides = array<i32>} : memref<8x8x8xbf16, #tpu.memory_space<vmem>>, vector<8x8x8xbf16>,
    } else {
    }
    %5 = arith.truncf %1 : vector<8x32xf32> to vector<8x32xbf16>
    %c0_3 = arith.constant 0 : index
    %c0_4 = arith.constant 0 : index
    %6 = vector.load %arg5[%c0_3, %c0_4] : memref<32x96xbf16, #tpu.memory_space<vmem>>, vector<32x32xbf16>
    %cst = arith.constant dense<0.000000e+00> : vector<8x32xf32>
    %7 = tpu.matmul %5, %6, %cst {dimension_numbers = #tpu.dot_dimension_numbers<[1], [0], [0], [1], [0, 0, 1, 1], [], []>} : vector<8x32xbf16>, vector<32x32xbf16>, vector<8x32xf32> -> vector<8x32xf32>
    %c0_5 = arith.constant 0 : index
    %c0_6 = arith.constant 0 : index
    %8 = vector.load %arg6[%c0_5, %c0_6] : memref<1x96xf32, #tpu.memory_space<vmem>>, vector<1x32xf32>
    %9 = vector.broadcast %8 : vector<1x32xf32> to vector<8x32xf32>
    %10 = arith.addf %7, %9 : vector<8x32xf32>
    %c0_7 = arith.constant 0 : index
    %c0_8 = arith.constant 0 : index
    %c0_9 = arith.constant 0 : index
    %11 = vector.load %arg4[%c0_7, %c0_8, %c0_9] : memref<1x1x8xf32, #tpu.memory_space<vmem>>, vector<1x1x8xf32>
    %12 = vector.shape_cast %11 : vector<1x1x8xf32> to vector<1x8xf32>
    %13 = vector.shape_cast %10 : vector<8x32xf32> to vector<8x4x8xf32>
    %14 = tpu.transpose %13, [1, 0, 2] : vector<8x4x8xf32> -> vector<4x8x8xf32>
    %15 = arith.truncf %14 : vector<4x8x8xf32> to vector<4x8x8xbf16>
    %c0_10 = arith.constant 0 : index
    %c0_11 = arith.constant 0 : index
    %c0_12 = arith.constant 0 : index
    %16 = vector.load %arg18[%c0_10, %c0_11, %c0_12] : memref<8x8x8xbf16, #tpu.memory_space<vmem>>, vector<4x8x8xbf16>
    %c4 = arith.constant 4 : index
    %c0_13 = arith.constant 0 : index
    %c0_14 = arith.constant 0 : index
    %17 = vector.load %arg18[%c4, %c0_13, %c0_14] : memref<8x8x8xbf16, #tpu.memory_space<vmem>>, vector<4x8x8xbf16>
    "tpu.trace_start"() <{level = 10 : i32, message = "htd,hld->htl"}> : () -> ()
    %cst_15 = arith.constant dense<0.000000e+00> : vector<4x8x8xf32>
    %18 = tpu.matmul %15, %16, %cst_15 {dimension_numbers = #tpu.dot_dimension_numbers<[2], [2], [1], [1], [0, 0, 0, 1, 1, 1], [0], [0]>} : vector<4x8x8xbf16>, vector<4x8x8xbf16>, vector<4x8x8xf32> -> vector<4x8x8xf32>
    "tpu.trace_stop"() : () -> ()
    %19 = vector.shape_cast %12 : vector<1x8xf32> to vector<1x1x8xf32>
    %20 = vector.broadcast %19 : vector<1x1x8xf32> to vector<4x8x8xf32>
    %21 = arith.addf %18, %20 : vector<4x8x8xf32>
    %cst_16 = arith.constant dense<0xFF800000> : vector<4x8xf32>
    %22 = vector.multi_reduction <maximumf>, %21, %cst_16 [2] : vector<4x8x8xf32> to vector<4x8xf32>
    %23 = vector.shape_cast %22 : vector<4x8xf32> to vector<4x8x1xf32>
    %24 = vector.broadcast %23 : vector<4x8x1xf32> to vector<4x8x8xf32>
    %25 = arith.subf %21, %24 : vector<4x8x8xf32>
    %26 = math.exp %25 : vector<4x8x8xf32>
    %cst_17 = arith.constant dense<0.000000e+00> : vector<4x8xf32>
    %27 = vector.multi_reduction <add>, %26, %cst_17 [2] : vector<4x8x8xf32> to vector<4x8xf32>
    %28 = vector.shape_cast %27 : vector<4x8xf32> to vector<4x8x1xf32>
    %29 = tpu.reciprocal %28 {approx = true} : vector<4x8x1xf32> -> vector<4x8x1xf32>
    %30 = vector.broadcast %29 : vector<4x8x1xf32> to vector<4x8x8xf32>
    %31 = arith.mulf %26, %30 : vector<4x8x8xf32>
    %32 = arith.truncf %31 : vector<4x8x8xf32> to vector<4x8x8xbf16>
    "tpu.trace_start"() <{level = 10 : i32, message = "htl,hld->htd"}> : () -> ()
    %cst_18 = arith.constant dense<0.000000e+00> : vector<4x8x8xf32>
    %33 = tpu.matmul %32, %17, %cst_18 {dimension_numbers = #tpu.dot_dimension_numbers<[2], [1], [1], [2], [0, 0, 0, 1, 1, 2], [0], [0]>} : vector<4x8x8xbf16>, vector<4x8x8xbf16>, vector<4x8x8xf32> -> vector<4x8x8xf32>
    "tpu.trace_stop"() : () -> ()
    %34 = tpu.transpose %33, [1, 0, 2] : vector<4x8x8xf32> -> vector<8x4x8xf32>
    %35 = vector.shape_cast %34 : vector<8x4x8xf32> to vector<8x32xf32>
    %36 = arith.truncf %35 : vector<8x32xf32> to vector<8x32xbf16>
    %c0_19 = arith.constant 0 : index
    %c0_20 = arith.constant 0 : index
    %37 = vector.load %arg7[%c0_19, %c0_20] : memref<32x32xbf16, #tpu.memory_space<vmem>>, vector<32x32xbf16>
    %cst_21 = arith.constant dense<0.000000e+00> : vector<8x32xf32>
    %38 = tpu.matmul %36, %37, %cst_21 {dimension_numbers = #tpu.dot_dimension_numbers<[1], [0], [0], [1], [0, 0, 1, 1], [], []>} : vector<8x32xbf16>, vector<32x32xbf16>, vector<8x32xf32> -> vector<8x32xf32>
    %c0_22 = arith.constant 0 : index
    %c0_23 = arith.constant 0 : index
    %39 = vector.load %arg8[%c0_22, %c0_23] : memref<1x32xf32, #tpu.memory_space<vmem>>, vector<1x32xf32>
    %40 = vector.broadcast %39 : vector<1x32xf32> to vector<8x32xf32>
    %41 = arith.addf %38, %40 : vector<8x32xf32>
    %42 = arith.addf %1, %41 : vector<8x32xf32>
    %c0_24 = arith.constant 0 : index
    %c0_25 = arith.constant 0 : index
    %43 = vector.load %arg9[%c0_24, %c0_25] : memref<1x32xf32, #tpu.memory_space<vmem>>, vector<1x32xf32>
    %c0_26 = arith.constant 0 : index
    %c0_27 = arith.constant 0 : index
    %44 = vector.load %arg10[%c0_26, %c0_27] : memref<1x32xf32, #tpu.memory_space<vmem>>, vector<1x32xf32>
    %cst_28 = arith.constant dense<0.000000e+00> : vector<8xf32>
    %45 = vector.multi_reduction <add>, %42, %cst_28 [1] : vector<8x32xf32> to vector<8xf32>
    %46 = vector.shape_cast %45 : vector<8xf32> to vector<8x1xf32>
    %cst_29 = arith.constant 3.200000e+01 : f32
    %47 = vector.broadcast %cst_29 : f32 to vector<8x1xf32>
    %48 = arith.divf %46, %47 : vector<8x1xf32>
    %49 = vector.broadcast %48 : vector<8x1xf32> to vector<8x32xf32>
    %50 = arith.subf %42, %49 : vector<8x32xf32>
    %51 = arith.mulf %50, %50 : vector<8x32xf32>
    %cst_30 = arith.constant dense<0.000000e+00> : vector<8xf32>
    %52 = vector.multi_reduction <add>, %51, %cst_30 [1] : vector<8x32xf32> to vector<8xf32>
    %53 = vector.shape_cast %52 : vector<8xf32> to vector<8x1xf32>
    %cst_31 = arith.constant 3.200000e+01 : f32
    %54 = vector.broadcast %cst_31 : f32 to vector<8x1xf32>
    %55 = arith.divf %53, %54 : vector<8x1xf32>
    %56 = vector.broadcast %48 : vector<8x1xf32> to vector<8x32xf32>
    %57 = arith.subf %42, %56 : vector<8x32xf32>
    %cst_32 = arith.constant 9.99999974E-6 : f32
    %58 = vector.broadcast %cst_32 : f32 to vector<8x1xf32>
    %59 = arith.addf %55, %58 : vector<8x1xf32>
    %60 = math.rsqrt %59 : vector<8x1xf32>
    %61 = vector.broadcast %60 : vector<8x1xf32> to vector<8x32xf32>
    %62 = arith.mulf %57, %61 : vector<8x32xf32>
    %63 = vector.broadcast %43 : vector<1x32xf32> to vector<8x32xf32>
    %64 = arith.mulf %62, %63 : vector<8x32xf32>
    %65 = vector.broadcast %44 : vector<1x32xf32> to vector<8x32xf32>
    %66 = arith.addf %64, %65 : vector<8x32xf32>
    %67 = arith.truncf %66 : vector<8x32xf32> to vector<8x32xbf16>
    %c0_33 = arith.constant 0 : index
    %c0_34 = arith.constant 0 : index
    %68 = vector.load %arg11[%c0_33, %c0_34] : memref<32x64xbf16, #tpu.memory_space<vmem>>, vector<32x64xbf16>
    %cst_35 = arith.constant dense<0.000000e+00> : vector<8x64xf32>
    %69 = tpu.matmul %67, %68, %cst_35 {dimension_numbers = #tpu.dot_dimension_numbers<[1], [0], [0], [1], [0, 0, 1, 1], [], []>} : vector<8x32xbf16>, vector<32x64xbf16>, vector<8x64xf32> -> vector<8x64xf32>
    %c0_36 = arith.constant 0 : index
    %c0_37 = arith.constant 0 : index
    %70 = vector.load %arg12[%c0_36, %c0_37] : memref<1x64xf32, #tpu.memory_space<vmem>>, vector<1x64xf32>
    %71 = vector.broadcast %70 : vector<1x64xf32> to vector<8x64xf32>
    %72 = arith.addf %69, %71 : vector<8x64xf32>
    %cst_38 = arith.constant 0.000000e+00 : f32
    %73 = vector.broadcast %cst_38 : f32 to vector<8x64xf32>
    %74 = arith.maximumf %72, %73 : vector<8x64xf32>
    %75 = arith.truncf %74 : vector<8x64xf32> to vector<8x64xbf16>
    %c0_39 = arith.constant 0 : index
    %c0_40 = arith.constant 0 : index
    %76 = vector.load %arg13[%c0_39, %c0_40] : memref<64x32xbf16, #tpu.memory_space<vmem>>, vector<64x32xbf16>
    %cst_41 = arith.constant dense<0.000000e+00> : vector<8x32xf32>
    %77 = tpu.matmul %75, %76, %cst_41 {dimension_numbers = #tpu.dot_dimension_numbers<[1], [0], [0], [1], [0, 0, 1, 1], [], []>} : vector<8x64xbf16>, vector<64x32xbf16>, vector<8x32xf32> -> vector<8x32xf32>
    %c0_42 = arith.constant 0 : index
    %c0_43 = arith.constant 0 : index
    %78 = vector.load %arg14[%c0_42, %c0_43] : memref<1x32xf32, #tpu.memory_space<vmem>>, vector<1x32xf32>
    %79 = vector.broadcast %78 : vector<1x32xf32> to vector<8x32xf32>
    %80 = arith.addf %77, %79 : vector<8x32xf32>
    %81 = arith.addf %66, %80 : vector<8x32xf32>
    %c0_44 = arith.constant 0 : index
    %c0_45 = arith.constant 0 : index
    %82 = vector.load %arg15[%c0_44, %c0_45] : memref<1x32xf32, #tpu.memory_space<vmem>>, vector<1x32xf32>
    %c0_46 = arith.constant 0 : index
    %c0_47 = arith.constant 0 : index
    %83 = vector.load %arg16[%c0_46, %c0_47] : memref<1x32xf32, #tpu.memory_space<vmem>>, vector<1x32xf32>
    %cst_48 = arith.constant dense<0.000000e+00> : vector<8xf32>
    %84 = vector.multi_reduction <add>, %81, %cst_48 [1] : vector<8x32xf32> to vector<8xf32>
    %85 = vector.shape_cast %84 : vector<8xf32> to vector<8x1xf32>
    %cst_49 = arith.constant 3.200000e+01 : f32
    %86 = vector.broadcast %cst_49 : f32 to vector<8x1xf32>
    %87 = arith.divf %85, %86 : vector<8x1xf32>
    %88 = vector.broadcast %87 : vector<8x1xf32> to vector<8x32xf32>
    %89 = arith.subf %81, %88 : vector<8x32xf32>
    %90 = arith.mulf %89, %89 : vector<8x32xf32>
    %cst_50 = arith.constant dense<0.000000e+00> : vector<8xf32>
    %91 = vector.multi_reduction <add>, %90, %cst_50 [1] : vector<8x32xf32> to vector<8xf32>
    %92 = vector.shape_cast %91 : vector<8xf32> to vector<8x1xf32>
    %cst_51 = arith.constant 3.200000e+01 : f32
    %93 = vector.broadcast %cst_51 : f32 to vector<8x1xf32>
    %94 = arith.divf %92, %93 : vector<8x1xf32>
    %95 = vector.broadcast %87 : vector<8x1xf32> to vector<8x32xf32>
    %96 = arith.subf %81, %95 : vector<8x32xf32>
    %cst_52 = arith.constant 9.99999974E-6 : f32
    %97 = vector.broadcast %cst_52 : f32 to vector<8x1xf32>
    %98 = arith.addf %94, %97 : vector<8x1xf32>
    %99 = math.rsqrt %98 : vector<8x1xf32>
    %100 = vector.broadcast %99 : vector<8x1xf32> to vector<8x32xf32>
    %101 = arith.mulf %96, %100 : vector<8x32xf32>
    %102 = vector.broadcast %82 : vector<1x32xf32> to vector<8x32xf32>
    %103 = arith.mulf %101, %102 : vector<8x32xf32>
    %104 = vector.broadcast %83 : vector<1x32xf32> to vector<8x32xf32>
    %105 = arith.addf %103, %104 : vector<8x32xf32>
    %c0_53 = arith.constant 0 : index
    %c0_54 = arith.constant 0 : index
    %c0_55 = arith.constant 0 : index
    %106 = vector.load %arg17[%c0_53, %c0_54, %c0_55] : memref<1x8x32xf32, #tpu.memory_space<vmem>>, vector<1x8x32xf32>
    %107 = vector.shape_cast %106 : vector<1x8x32xf32> to vector<8x32xf32>
    %108 = vector.shape_cast %105 : vector<8x32xf32> to vector<1x8x32xf32>
    tpu.vector_store %arg17[%c0_53, %c0_54, %c0_55], %108 {strides = array<i32>} : memref<1x8x32xf32, #tpu.memory_space<vmem>>, vector<1x8x32xf32>,
    return
  }
  func.func @transform_0(%arg0: i32, %arg1: i32) -> (i32, i32, i32) {
    %c0_i32 = arith.constant 0 : i32
    %c0_i32_0 = arith.constant 0 : i32
    return %arg0, %arg1, %c0_i32 : i32, i32, i32
  }
  func.func @transform_1(%arg0: i32, %arg1: i32) -> (i32, i32, i32) {
    %c0_i32 = arith.constant 0 : i32
    %c0_i32_0 = arith.constant 0 : i32
    %c0_i32_1 = arith.constant 0 : i32
    return %arg0, %c0_i32, %c0_i32_0 : i32, i32, i32
  }
  func.func @transform_2(%arg0: i32, %arg1: i32) -> (i32, i32, i32) {
    %c0_i32 = arith.constant 0 : i32
    %c0_i32_0 = arith.constant 0 : i32
    %c0_i32_1 = arith.constant 0 : i32
    return %arg0, %c0_i32, %c0_i32_0 : i32, i32, i32
  }
  func.func @transform_3(%arg0: i32, %arg1: i32) -> (i32, i32) {
    %c0_i32 = arith.constant 0 : i32
    %c0_i32_0 = arith.constant 0 : i32
    %c0_i32_1 = arith.constant 0 : i32
    return %c0_i32, %c0_i32_0 : i32, i32
  }
  func.func @transform_4(%arg0: i32, %arg1: i32) -> (i32, i32) {
    %c0_i32 = arith.constant 0 : i32
    %c0_i32_0 = arith.constant 0 : i32
    %c0_i32_1 = arith.constant 0 : i32
    return %c0_i32, %c0_i32_0 : i32, i32
  }
  func.func @transform_5(%arg0: i32, %arg1: i32) -> (i32, i32) {
    %c0_i32 = arith.constant 0 : i32
    %c0_i32_0 = arith.constant 0 : i32
    %c0_i32_1 = arith.constant 0 : i32
    return %c0_i32, %c0_i32_0 : i32, i32
  }
  func.func @transform_6(%arg0: i32, %arg1: i32) -> (i32, i32) {
    %c0_i32 = arith.constant 0 : i32
    %c0_i32_0 = arith.constant 0 : i32
    %c0_i32_1 = arith.constant 0 : i32
    return %c0_i32, %c0_i32_0 : i32, i32
  }
  func.func @transform_7(%arg0: i32, %arg1: i32) -> (i32, i32) {
    %c0_i32 = arith.constant 0 : i32
    %c0_i32_0 = arith.constant 0 : i32
    %c0_i32_1 = arith.constant 0 : i32
    return %c0_i32, %c0_i32_0 : i32, i32
  }
  func.func @transform_8(%arg0: i32, %arg1: i32) -> (i32, i32) {
    %c0_i32 = arith.constant 0 : i32
    %c0_i32_0 = arith.constant 0 : i32
    %c0_i32_1 = arith.constant 0 : i32
    return %c0_i32, %c0_i32_0 : i32, i32
  }
  func.func @transform_9(%arg0: i32, %arg1: i32) -> (i32, i32) {
    %c0_i32 = arith.constant 0 : i32
    %c0_i32_0 = arith.constant 0 : i32
    %c0_i32_1 = arith.constant 0 : i32
    return %c0_i32, %c0_i32_0 : i32, i32
  }
  func.func @transform_10(%arg0: i32, %arg1: i32) -> (i32, i32) {
    %c0_i32 = arith.constant 0 : i32
    %c0_i32_0 = arith.constant 0 : i32
    %c0_i32_1 = arith.constant 0 : i32
    return %c0_i32, %c0_i32_0 : i32, i32
  }
  func.func @transform_11(%arg0: i32, %arg1: i32) -> (i32, i32) {
    %c0_i32 = arith.constant 0 : i32
    %c0_i32_0 = arith.constant 0 : i32
    %c0_i32_1 = arith.constant 0 : i32
    return %c0_i32, %c0_i32_0 : i32, i32
  }
  func.func @transform_12(%arg0: i32, %arg1: i32) -> (i32, i32) {
    %c0_i32 = arith.constant 0 : i32
    %c0_i32_0 = arith.constant 0 : i32
    %c0_i32_1 = arith.constant 0 : i32
    return %c0_i32, %c0_i32_0 : i32, i32
  }
  func.func @transform_13(%arg0: i32, %arg1: i32) -> (i32, i32) {
    %c0_i32 = arith.constant 0 : i32
    %c0_i32_0 = arith.constant 0 : i32
    %c0_i32_1 = arith.constant 0 : i32
    return %c0_i32, %c0_i32_0 : i32, i32
  }
  func.func @transform_14(%arg0: i32, %arg1: i32) -> (i32, i32) {
    %c0_i32 = arith.constant 0 : i32
    %c0_i32_0 = arith.constant 0 : i32
    %c0_i32_1 = arith.constant 0 : i32
    return %c0_i32, %c0_i32_0 : i32, i32
  }
  func.func @transform_15(%arg0: i32, %arg1: i32) -> (i32, i32, i32) {
    %c0_i32 = arith.constant 0 : i32
    %c0_i32_0 = arith.constant 0 : i32
    return %arg0, %arg1, %c0_i32 : i32, i32, i32
  }
}

module attributes {stable_mosaic.version = 11 : i64} {
  func.func @kernel(%arg0: i32, %arg1: i32, %arg2: memref<1x8x32xf32, #tpu.memory_space<vmem>>, %arg3: memref<1x8x32xbf16, #tpu.memory_space<vmem>>, %arg4: memref<1x1x8xf32, #tpu.memory_space<vmem>>, %arg5: memref<32x96xbf16, #tpu.memory_space<vmem>>, %arg6: memref<1x96xf32, #tpu.memory_space<vmem>>, %arg7: memref<32x32xbf16, #tpu.memory_space<vmem>>, %arg8: memref<1x32xf32, #tpu.memory_space<vmem>>, %arg9: memref<1x32xf32, #tpu.memory_space<vmem>>, %arg10: memref<1x32xf32, #tpu.memory_space<vmem>>, %arg11: memref<32x64xbf16, #tpu.memory_space<vmem>>, %arg12: memref<1x64xf32, #tpu.memory_space<vmem>>, %arg13: memref<64x32xbf16, #tpu.memory_space<vmem>>, %arg14: memref<1x32xf32, #tpu.memory_space<vmem>>, %arg15: memref<1x32xf32, #tpu.memory_space<vmem>>, %arg16: memref<1x32xf32, #tpu.memory_space<vmem>>, %arg17: memref<1x8x32xf32, #tpu.memory_space<vmem>>, %arg18: memref<8x64xbf16, #tpu.memory_space<vmem>>, %arg19: memref<8x32xf32, #tpu.memory_space<vmem>>) attributes {dimension_semantics = [#tpu.dimension_semantics<parallel>, #tpu.dimension_semantics<arbitrary>], iteration_bounds = array<i64: 2, 1>, scalar_prefetch = 0 : i64, scratch_operands = 2 : i64, tpu.core_type = #tpu.core_type<tc>, window_params = [{transform_indices = @transform_0, window_bounds = array<i64: 1, 8, 32>}, {transform_indices = @transform_1, window_bounds = array<i64: 1, 8, 32>}, {transform_indices = @transform_2, window_bounds = array<i64: 1, 1, 8>}, {pipeline_mode = #tpu.pipeline_mode<synchronous>, transform_indices = @transform_3, window_bounds = array<i64: 32, 96>}, {pipeline_mode = #tpu.pipeline_mode<synchronous>, transform_indices = @transform_4, window_bounds = array<i64: 1, 96>}, {pipeline_mode = #tpu.pipeline_mode<synchronous>, transform_indices = @transform_5, window_bounds = array<i64: 32, 32>}, {pipeline_mode = #tpu.pipeline_mode<synchronous>, transform_indices = @transform_6, window_bounds = array<i64: 1, 32>}, {pipeline_mode = #tpu.pipeline_mode<synchronous>, transform_indices = @transform_7, window_bounds = array<i64: 1, 32>}, {pipeline_mode = #tpu.pipeline_mode<synchronous>, transform_indices = @transform_8, window_bounds = array<i64: 1, 32>}, {pipeline_mode = #tpu.pipeline_mode<synchronous>, transform_indices = @transform_9, window_bounds = array<i64: 32, 64>}, {pipeline_mode = #tpu.pipeline_mode<synchronous>, transform_indices = @transform_10, window_bounds = array<i64: 1, 64>}, {pipeline_mode = #tpu.pipeline_mode<synchronous>, transform_indices = @transform_11, window_bounds = array<i64: 64, 32>}, {pipeline_mode = #tpu.pipeline_mode<synchronous>, transform_indices = @transform_12, window_bounds = array<i64: 1, 32>}, {pipeline_mode = #tpu.pipeline_mode<synchronous>, transform_indices = @transform_13, window_bounds = array<i64: 1, 32>}, {pipeline_mode = #tpu.pipeline_mode<synchronous>, transform_indices = @transform_14, window_bounds = array<i64: 1, 32>}, {transform_indices = @transform_15, window_bounds = array<i64: 1, 8, 32>}]} {
    %c0 = arith.constant 0 : index
    %c0_0 = arith.constant 0 : index
    %c0_1 = arith.constant 0 : index
    %0 = vector.load %arg2[%c0, %c0_0, %c0_1] : memref<1x8x32xf32, #tpu.memory_space<vmem>>, vector<1x8x32xf32>
    %1 = vector.shape_cast %0 : vector<1x8x32xf32> to vector<8x32xf32>
    %c0_i32 = arith.constant 0 : i32
    %2 = arith.cmpi eq, %arg1, %c0_i32 : i32
    %3 = arith.extui %2 : i1 to i32
    %c0_i32_2 = arith.constant 0 : i32
    %4 = arith.cmpi ne, %3, %c0_i32_2 : i32
    scf.if %4 {
      %c0_73 = arith.constant 0 : index
      %c0_74 = arith.constant 0 : index
      %c0_75 = arith.constant 0 : index
      %179 = vector.load %arg3[%c0_73, %c0_74, %c0_75] : memref<1x8x32xbf16, #tpu.memory_space<vmem>>, vector<1x8x32xbf16>
      %180 = vector.shape_cast %179 : vector<1x8x32xbf16> to vector<8x32xbf16>
      %c0_76 = arith.constant 0 : index
      %c32_77 = arith.constant 32 : index
      %181 = vector.load %arg5[%c0_76, %c32_77] : memref<32x96xbf16, #tpu.memory_space<vmem>>, vector<32x64xbf16>
      %cst_78 = arith.constant dense<0.000000e+00> : vector<8x64xf32>
      %182 = tpu.matmul %180, %181, %cst_78 {dimension_numbers = #tpu.dot_dimension_numbers<[1], [0], [0], [1], [0, 0, 1, 1], [], []>} : vector<8x32xbf16>, vector<32x64xbf16>, vector<8x64xf32> -> vector<8x64xf32>
      %c0_79 = arith.constant 0 : index
      %c32_80 = arith.constant 32 : index
      %183 = vector.load %arg6[%c0_79, %c32_80] : memref<1x96xf32, #tpu.memory_space<vmem>>, vector<1x64xf32>
      %184 = vector.broadcast %183 : vector<1x64xf32> to vector<8x64xf32>
      %185 = arith.addf %182, %184 : vector<8x64xf32>
      %186 = arith.truncf %185 : vector<8x64xf32> to vector<8x64xbf16>
      %c0_81 = arith.constant 0 : index
      %c0_82 = arith.constant 0 : index
      %187 = vector.load %arg18[%c0_81, %c0_82] : memref<8x64xbf16, #tpu.memory_space<vmem>>, vector<8x64xbf16>
      tpu.vector_store %arg18[%c0_81, %c0_82], %186 {strides = array<i32>} : memref<8x64xbf16, #tpu.memory_space<vmem>>, vector<8x64xbf16>,
    } else {
    }
    %5 = arith.truncf %1 : vector<8x32xf32> to vector<8x32xbf16>
    %c0_3 = arith.constant 0 : index
    %c0_4 = arith.constant 0 : index
    %6 = vector.load %arg5[%c0_3, %c0_4] : memref<32x96xbf16, #tpu.memory_space<vmem>>, vector<32x32xbf16>
    %cst = arith.constant dense<0.000000e+00> : vector<8x32xf32>
    %7 = tpu.matmul %5, %6, %cst {dimension_numbers = #tpu.dot_dimension_numbers<[1], [0], [0], [1], [0, 0, 1, 1], [], []>} : vector<8x32xbf16>, vector<32x32xbf16>, vector<8x32xf32> -> vector<8x32xf32>
    %c0_5 = arith.constant 0 : index
    %c0_6 = arith.constant 0 : index
    %8 = vector.load %arg6[%c0_5, %c0_6] : memref<1x96xf32, #tpu.memory_space<vmem>>, vector<1x32xf32>
    %9 = vector.broadcast %8 : vector<1x32xf32> to vector<8x32xf32>
    %10 = arith.addf %7, %9 : vector<8x32xf32>
    %c0_7 = arith.constant 0 : index
    %c0_8 = arith.constant 0 : index
    %c0_9 = arith.constant 0 : index
    %11 = vector.load %arg4[%c0_7, %c0_8, %c0_9] : memref<1x1x8xf32, #tpu.memory_space<vmem>>, vector<1x1x8xf32>
    %12 = vector.shape_cast %11 : vector<1x1x8xf32> to vector<1x8xf32>
    %c0_10 = arith.constant 0 : index
    %c0_11 = arith.constant 0 : index
    %13 = vector.load %arg18[%c0_10, %c0_11] : memref<8x64xbf16, #tpu.memory_space<vmem>>, vector<8x32xbf16>
    %14 = arith.extf %13 : vector<8x32xbf16> to vector<8x32xf32>
    %c0_12 = arith.constant 0 : index
    %c32 = arith.constant 32 : index
    %15 = vector.load %arg18[%c0_12, %c32] : memref<8x64xbf16, #tpu.memory_space<vmem>>, vector<8x32xbf16>
    %16 = arith.extf %15 : vector<8x32xbf16> to vector<8x32xf32>
    %17 = vector.extract_strided_slice %10 {offsets = [0, 0], sizes = [8, 8], strides = [1, 1]} : vector<8x32xf32> to vector<8x8xf32>
    %18 = arith.truncf %17 : vector<8x8xf32> to vector<8x8xbf16>
    %19 = vector.extract_strided_slice %14 {offsets = [0, 0], sizes = [8, 8], strides = [1, 1]} : vector<8x32xf32> to vector<8x8xf32>
    %20 = arith.truncf %19 : vector<8x8xf32> to vector<8x8xbf16>
    %21 = vector.extract_strided_slice %16 {offsets = [0, 0], sizes = [8, 8], strides = [1, 1]} : vector<8x32xf32> to vector<8x8xf32>
    %22 = arith.truncf %21 : vector<8x8xf32> to vector<8x8xbf16>
    %cst_13 = arith.constant dense<0.000000e+00> : vector<8x8xf32>
    %23 = tpu.matmul %18, %20, %cst_13 {dimension_numbers = #tpu.dot_dimension_numbers<[1], [1], [0], [0], [0, 0, 1, 0], [], []>} : vector<8x8xbf16>, vector<8x8xbf16>, vector<8x8xf32> -> vector<8x8xf32>
    %24 = vector.broadcast %12 : vector<1x8xf32> to vector<8x8xf32>
    %25 = arith.addf %23, %24 : vector<8x8xf32>
    %cst_14 = arith.constant dense<0xFF800000> : vector<8xf32>
    %26 = vector.multi_reduction <maximumf>, %25, %cst_14 [1] : vector<8x8xf32> to vector<8xf32>
    %27 = vector.shape_cast %26 : vector<8xf32> to vector<8x1xf32>
    %28 = vector.broadcast %27 : vector<8x1xf32> to vector<8x8xf32>
    %29 = arith.subf %25, %28 : vector<8x8xf32>
    %30 = math.exp %29 : vector<8x8xf32>
    %cst_15 = arith.constant dense<0.000000e+00> : vector<8xf32>
    %31 = vector.multi_reduction <add>, %30, %cst_15 [1] : vector<8x8xf32> to vector<8xf32>
    %32 = vector.shape_cast %31 : vector<8xf32> to vector<8x1xf32>
    %33 = tpu.reciprocal %32 {approx = true} : vector<8x1xf32> -> vector<8x1xf32>
    %34 = vector.broadcast %33 : vector<8x1xf32> to vector<8x8xf32>
    %35 = arith.mulf %30, %34 : vector<8x8xf32>
    %36 = arith.truncf %35 : vector<8x8xf32> to vector<8x8xbf16>
    %cst_16 = arith.constant dense<0.000000e+00> : vector<8x8xf32>
    %37 = tpu.matmul %36, %22, %cst_16 {dimension_numbers = #tpu.dot_dimension_numbers<[1], [0], [0], [1], [0, 0, 1, 1], [], []>} : vector<8x8xbf16>, vector<8x8xbf16>, vector<8x8xf32> -> vector<8x8xf32>
    %c0_17 = arith.constant 0 : index
    %c0_18 = arith.constant 0 : index
    %38 = vector.load %arg19[%c0_17, %c0_18] : memref<8x32xf32, #tpu.memory_space<vmem>>, vector<8x8xf32>
    tpu.vector_store %arg19[%c0_17, %c0_18], %37 {strides = array<i32>} : memref<8x32xf32, #tpu.memory_space<vmem>>, vector<8x8xf32>,
    %39 = vector.extract_strided_slice %10 {offsets = [0, 8], sizes = [8, 8], strides = [1, 1]} : vector<8x32xf32> to vector<8x8xf32>
    %40 = arith.truncf %39 : vector<8x8xf32> to vector<8x8xbf16>
    %41 = vector.extract_strided_slice %14 {offsets = [0, 8], sizes = [8, 8], strides = [1, 1]} : vector<8x32xf32> to vector<8x8xf32>
    %42 = arith.truncf %41 : vector<8x8xf32> to vector<8x8xbf16>
    %43 = vector.extract_strided_slice %16 {offsets = [0, 8], sizes = [8, 8], strides = [1, 1]} : vector<8x32xf32> to vector<8x8xf32>
    %44 = arith.truncf %43 : vector<8x8xf32> to vector<8x8xbf16>
    %cst_19 = arith.constant dense<0.000000e+00> : vector<8x8xf32>
    %45 = tpu.matmul %40, %42, %cst_19 {dimension_numbers = #tpu.dot_dimension_numbers<[1], [1], [0], [0], [0, 0, 1, 0], [], []>} : vector<8x8xbf16>, vector<8x8xbf16>, vector<8x8xf32> -> vector<8x8xf32>
    %46 = vector.broadcast %12 : vector<1x8xf32> to vector<8x8xf32>
    %47 = arith.addf %45, %46 : vector<8x8xf32>
    %cst_20 = arith.constant dense<0xFF800000> : vector<8xf32>
    %48 = vector.multi_reduction <maximumf>, %47, %cst_20 [1] : vector<8x8xf32> to vector<8xf32>
    %49 = vector.shape_cast %48 : vector<8xf32> to vector<8x1xf32>
    %50 = vector.broadcast %49 : vector<8x1xf32> to vector<8x8xf32>
    %51 = arith.subf %47, %50 : vector<8x8xf32>
    %52 = math.exp %51 : vector<8x8xf32>
    %cst_21 = arith.constant dense<0.000000e+00> : vector<8xf32>
    %53 = vector.multi_reduction <add>, %52, %cst_21 [1] : vector<8x8xf32> to vector<8xf32>
    %54 = vector.shape_cast %53 : vector<8xf32> to vector<8x1xf32>
    %55 = tpu.reciprocal %54 {approx = true} : vector<8x1xf32> -> vector<8x1xf32>
    %56 = vector.broadcast %55 : vector<8x1xf32> to vector<8x8xf32>
    %57 = arith.mulf %52, %56 : vector<8x8xf32>
    %58 = arith.truncf %57 : vector<8x8xf32> to vector<8x8xbf16>
    %cst_22 = arith.constant dense<0.000000e+00> : vector<8x8xf32>
    %59 = tpu.matmul %58, %44, %cst_22 {dimension_numbers = #tpu.dot_dimension_numbers<[1], [0], [0], [1], [0, 0, 1, 1], [], []>} : vector<8x8xbf16>, vector<8x8xbf16>, vector<8x8xf32> -> vector<8x8xf32>
    %c0_23 = arith.constant 0 : index
    %c8 = arith.constant 8 : index
    %60 = vector.load %arg19[%c0_23, %c8] : memref<8x32xf32, #tpu.memory_space<vmem>>, vector<8x8xf32>
    tpu.vector_store %arg19[%c0_23, %c8], %59 {strides = array<i32>} : memref<8x32xf32, #tpu.memory_space<vmem>>, vector<8x8xf32>,
    %61 = vector.extract_strided_slice %10 {offsets = [0, 16], sizes = [8, 8], strides = [1, 1]} : vector<8x32xf32> to vector<8x8xf32>
    %62 = arith.truncf %61 : vector<8x8xf32> to vector<8x8xbf16>
    %63 = vector.extract_strided_slice %14 {offsets = [0, 16], sizes = [8, 8], strides = [1, 1]} : vector<8x32xf32> to vector<8x8xf32>
    %64 = arith.truncf %63 : vector<8x8xf32> to vector<8x8xbf16>
    %65 = vector.extract_strided_slice %16 {offsets = [0, 16], sizes = [8, 8], strides = [1, 1]} : vector<8x32xf32> to vector<8x8xf32>
    %66 = arith.truncf %65 : vector<8x8xf32> to vector<8x8xbf16>
    %cst_24 = arith.constant dense<0.000000e+00> : vector<8x8xf32>
    %67 = tpu.matmul %62, %64, %cst_24 {dimension_numbers = #tpu.dot_dimension_numbers<[1], [1], [0], [0], [0, 0, 1, 0], [], []>} : vector<8x8xbf16>, vector<8x8xbf16>, vector<8x8xf32> -> vector<8x8xf32>
    %68 = vector.broadcast %12 : vector<1x8xf32> to vector<8x8xf32>
    %69 = arith.addf %67, %68 : vector<8x8xf32>
    %cst_25 = arith.constant dense<0xFF800000> : vector<8xf32>
    %70 = vector.multi_reduction <maximumf>, %69, %cst_25 [1] : vector<8x8xf32> to vector<8xf32>
    %71 = vector.shape_cast %70 : vector<8xf32> to vector<8x1xf32>
    %72 = vector.broadcast %71 : vector<8x1xf32> to vector<8x8xf32>
    %73 = arith.subf %69, %72 : vector<8x8xf32>
    %74 = math.exp %73 : vector<8x8xf32>
    %cst_26 = arith.constant dense<0.000000e+00> : vector<8xf32>
    %75 = vector.multi_reduction <add>, %74, %cst_26 [1] : vector<8x8xf32> to vector<8xf32>
    %76 = vector.shape_cast %75 : vector<8xf32> to vector<8x1xf32>
    %77 = tpu.reciprocal %76 {approx = true} : vector<8x1xf32> -> vector<8x1xf32>
    %78 = vector.broadcast %77 : vector<8x1xf32> to vector<8x8xf32>
    %79 = arith.mulf %74, %78 : vector<8x8xf32>
    %80 = arith.truncf %79 : vector<8x8xf32> to vector<8x8xbf16>
    %cst_27 = arith.constant dense<0.000000e+00> : vector<8x8xf32>
    %81 = tpu.matmul %80, %66, %cst_27 {dimension_numbers = #tpu.dot_dimension_numbers<[1], [0], [0], [1], [0, 0, 1, 1], [], []>} : vector<8x8xbf16>, vector<8x8xbf16>, vector<8x8xf32> -> vector<8x8xf32>
    %c0_28 = arith.constant 0 : index
    %c16 = arith.constant 16 : index
    %82 = vector.load %arg19[%c0_28, %c16] : memref<8x32xf32, #tpu.memory_space<vmem>>, vector<8x8xf32>
    tpu.vector_store %arg19[%c0_28, %c16], %81 {strides = array<i32>} : memref<8x32xf32, #tpu.memory_space<vmem>>, vector<8x8xf32>,
    %83 = vector.extract_strided_slice %10 {offsets = [0, 24], sizes = [8, 8], strides = [1, 1]} : vector<8x32xf32> to vector<8x8xf32>
    %84 = arith.truncf %83 : vector<8x8xf32> to vector<8x8xbf16>
    %85 = vector.extract_strided_slice %14 {offsets = [0, 24], sizes = [8, 8], strides = [1, 1]} : vector<8x32xf32> to vector<8x8xf32>
    %86 = arith.truncf %85 : vector<8x8xf32> to vector<8x8xbf16>
    %87 = vector.extract_strided_slice %16 {offsets = [0, 24], sizes = [8, 8], strides = [1, 1]} : vector<8x32xf32> to vector<8x8xf32>
    %88 = arith.truncf %87 : vector<8x8xf32> to vector<8x8xbf16>
    %cst_29 = arith.constant dense<0.000000e+00> : vector<8x8xf32>
    %89 = tpu.matmul %84, %86, %cst_29 {dimension_numbers = #tpu.dot_dimension_numbers<[1], [1], [0], [0], [0, 0, 1, 0], [], []>} : vector<8x8xbf16>, vector<8x8xbf16>, vector<8x8xf32> -> vector<8x8xf32>
    %90 = vector.broadcast %12 : vector<1x8xf32> to vector<8x8xf32>
    %91 = arith.addf %89, %90 : vector<8x8xf32>
    %cst_30 = arith.constant dense<0xFF800000> : vector<8xf32>
    %92 = vector.multi_reduction <maximumf>, %91, %cst_30 [1] : vector<8x8xf32> to vector<8xf32>
    %93 = vector.shape_cast %92 : vector<8xf32> to vector<8x1xf32>
    %94 = vector.broadcast %93 : vector<8x1xf32> to vector<8x8xf32>
    %95 = arith.subf %91, %94 : vector<8x8xf32>
    %96 = math.exp %95 : vector<8x8xf32>
    %cst_31 = arith.constant dense<0.000000e+00> : vector<8xf32>
    %97 = vector.multi_reduction <add>, %96, %cst_31 [1] : vector<8x8xf32> to vector<8xf32>
    %98 = vector.shape_cast %97 : vector<8xf32> to vector<8x1xf32>
    %99 = tpu.reciprocal %98 {approx = true} : vector<8x1xf32> -> vector<8x1xf32>
    %100 = vector.broadcast %99 : vector<8x1xf32> to vector<8x8xf32>
    %101 = arith.mulf %96, %100 : vector<8x8xf32>
    %102 = arith.truncf %101 : vector<8x8xf32> to vector<8x8xbf16>
    %cst_32 = arith.constant dense<0.000000e+00> : vector<8x8xf32>
    %103 = tpu.matmul %102, %88, %cst_32 {dimension_numbers = #tpu.dot_dimension_numbers<[1], [0], [0], [1], [0, 0, 1, 1], [], []>} : vector<8x8xbf16>, vector<8x8xbf16>, vector<8x8xf32> -> vector<8x8xf32>
    %c0_33 = arith.constant 0 : index
    %c24 = arith.constant 24 : index
    %104 = vector.load %arg19[%c0_33, %c24] : memref<8x32xf32, #tpu.memory_space<vmem>>, vector<8x8xf32>
    tpu.vector_store %arg19[%c0_33, %c24], %103 {strides = array<i32>} : memref<8x32xf32, #tpu.memory_space<vmem>>, vector<8x8xf32>,
    %c0_34 = arith.constant 0 : index
    %c0_35 = arith.constant 0 : index
    %105 = vector.load %arg19[%c0_34, %c0_35] : memref<8x32xf32, #tpu.memory_space<vmem>>, vector<8x32xf32>
    %106 = arith.truncf %105 : vector<8x32xf32> to vector<8x32xbf16>
    %c0_36 = arith.constant 0 : index
    %c0_37 = arith.constant 0 : index
    %107 = vector.load %arg7[%c0_36, %c0_37] : memref<32x32xbf16, #tpu.memory_space<vmem>>, vector<32x32xbf16>
    %cst_38 = arith.constant dense<0.000000e+00> : vector<8x32xf32>
    %108 = tpu.matmul %106, %107, %cst_38 {dimension_numbers = #tpu.dot_dimension_numbers<[1], [0], [0], [1], [0, 0, 1, 1], [], []>} : vector<8x32xbf16>, vector<32x32xbf16>, vector<8x32xf32> -> vector<8x32xf32>
    %c0_39 = arith.constant 0 : index
    %c0_40 = arith.constant 0 : index
    %109 = vector.load %arg8[%c0_39, %c0_40] : memref<1x32xf32, #tpu.memory_space<vmem>>, vector<1x32xf32>
    %110 = vector.broadcast %109 : vector<1x32xf32> to vector<8x32xf32>
    %111 = arith.addf %108, %110 : vector<8x32xf32>
    %112 = arith.addf %1, %111 : vector<8x32xf32>
    %c0_41 = arith.constant 0 : index
    %c0_42 = arith.constant 0 : index
    %113 = vector.load %arg9[%c0_41, %c0_42] : memref<1x32xf32, #tpu.memory_space<vmem>>, vector<1x32xf32>
    %c0_43 = arith.constant 0 : index
    %c0_44 = arith.constant 0 : index
    %114 = vector.load %arg10[%c0_43, %c0_44] : memref<1x32xf32, #tpu.memory_space<vmem>>, vector<1x32xf32>
    %cst_45 = arith.constant dense<0.000000e+00> : vector<8xf32>
    %115 = vector.multi_reduction <add>, %112, %cst_45 [1] : vector<8x32xf32> to vector<8xf32>
    %116 = vector.shape_cast %115 : vector<8xf32> to vector<8x1xf32>
    %cst_46 = arith.constant 3.200000e+01 : f32
    %117 = vector.broadcast %cst_46 : f32 to vector<8x1xf32>
    %118 = arith.divf %116, %117 : vector<8x1xf32>
    %119 = vector.broadcast %118 : vector<8x1xf32> to vector<8x32xf32>
    %120 = arith.subf %112, %119 : vector<8x32xf32>
    %121 = arith.mulf %120, %120 : vector<8x32xf32>
    %cst_47 = arith.constant dense<0.000000e+00> : vector<8xf32>
    %122 = vector.multi_reduction <add>, %121, %cst_47 [1] : vector<8x32xf32> to vector<8xf32>
    %123 = vector.shape_cast %122 : vector<8xf32> to vector<8x1xf32>
    %cst_48 = arith.constant 3.200000e+01 : f32
    %124 = vector.broadcast %cst_48 : f32 to vector<8x1xf32>
    %125 = arith.divf %123, %124 : vector<8x1xf32>
    %126 = vector.broadcast %118 : vector<8x1xf32> to vector<8x32xf32>
    %127 = arith.subf %112, %126 : vector<8x32xf32>
    %cst_49 = arith.constant 9.99999974E-6 : f32
    %128 = vector.broadcast %cst_49 : f32 to vector<8x1xf32>
    %129 = arith.addf %125, %128 : vector<8x1xf32>
    %130 = math.rsqrt %129 : vector<8x1xf32>
    %131 = vector.broadcast %130 : vector<8x1xf32> to vector<8x32xf32>
    %132 = arith.mulf %127, %131 : vector<8x32xf32>
    %133 = vector.broadcast %113 : vector<1x32xf32> to vector<8x32xf32>
    %134 = arith.mulf %132, %133 : vector<8x32xf32>
    %135 = vector.broadcast %114 : vector<1x32xf32> to vector<8x32xf32>
    %136 = arith.addf %134, %135 : vector<8x32xf32>
    %137 = arith.truncf %136 : vector<8x32xf32> to vector<8x32xbf16>
    %c0_50 = arith.constant 0 : index
    %c0_51 = arith.constant 0 : index
    %138 = vector.load %arg11[%c0_50, %c0_51] : memref<32x64xbf16, #tpu.memory_space<vmem>>, vector<32x64xbf16>
    %cst_52 = arith.constant dense<0.000000e+00> : vector<8x64xf32>
    %139 = tpu.matmul %137, %138, %cst_52 {dimension_numbers = #tpu.dot_dimension_numbers<[1], [0], [0], [1], [0, 0, 1, 1], [], []>} : vector<8x32xbf16>, vector<32x64xbf16>, vector<8x64xf32> -> vector<8x64xf32>
    %c0_53 = arith.constant 0 : index
    %c0_54 = arith.constant 0 : index
    %140 = vector.load %arg12[%c0_53, %c0_54] : memref<1x64xf32, #tpu.memory_space<vmem>>, vector<1x64xf32>
    %141 = vector.broadcast %140 : vector<1x64xf32> to vector<8x64xf32>
    %142 = arith.addf %139, %141 : vector<8x64xf32>
    %cst_55 = arith.constant 0.000000e+00 : f32
    %143 = vector.broadcast %cst_55 : f32 to vector<8x64xf32>
    %144 = arith.maximumf %142, %143 : vector<8x64xf32>
    %145 = arith.truncf %144 : vector<8x64xf32> to vector<8x64xbf16>
    %c0_56 = arith.constant 0 : index
    %c0_57 = arith.constant 0 : index
    %146 = vector.load %arg13[%c0_56, %c0_57] : memref<64x32xbf16, #tpu.memory_space<vmem>>, vector<64x32xbf16>
    %cst_58 = arith.constant dense<0.000000e+00> : vector<8x32xf32>
    %147 = tpu.matmul %145, %146, %cst_58 {dimension_numbers = #tpu.dot_dimension_numbers<[1], [0], [0], [1], [0, 0, 1, 1], [], []>} : vector<8x64xbf16>, vector<64x32xbf16>, vector<8x32xf32> -> vector<8x32xf32>
    %c0_59 = arith.constant 0 : index
    %c0_60 = arith.constant 0 : index
    %148 = vector.load %arg14[%c0_59, %c0_60] : memref<1x32xf32, #tpu.memory_space<vmem>>, vector<1x32xf32>
    %149 = vector.broadcast %148 : vector<1x32xf32> to vector<8x32xf32>
    %150 = arith.addf %147, %149 : vector<8x32xf32>
    %151 = arith.addf %136, %150 : vector<8x32xf32>
    %c0_61 = arith.constant 0 : index
    %c0_62 = arith.constant 0 : index
    %152 = vector.load %arg15[%c0_61, %c0_62] : memref<1x32xf32, #tpu.memory_space<vmem>>, vector<1x32xf32>
    %c0_63 = arith.constant 0 : index
    %c0_64 = arith.constant 0 : index
    %153 = vector.load %arg16[%c0_63, %c0_64] : memref<1x32xf32, #tpu.memory_space<vmem>>, vector<1x32xf32>
    %cst_65 = arith.constant dense<0.000000e+00> : vector<8xf32>
    %154 = vector.multi_reduction <add>, %151, %cst_65 [1] : vector<8x32xf32> to vector<8xf32>
    %155 = vector.shape_cast %154 : vector<8xf32> to vector<8x1xf32>
    %cst_66 = arith.constant 3.200000e+01 : f32
    %156 = vector.broadcast %cst_66 : f32 to vector<8x1xf32>
    %157 = arith.divf %155, %156 : vector<8x1xf32>
    %158 = vector.broadcast %157 : vector<8x1xf32> to vector<8x32xf32>
    %159 = arith.subf %151, %158 : vector<8x32xf32>
    %160 = arith.mulf %159, %159 : vector<8x32xf32>
    %cst_67 = arith.constant dense<0.000000e+00> : vector<8xf32>
    %161 = vector.multi_reduction <add>, %160, %cst_67 [1] : vector<8x32xf32> to vector<8xf32>
    %162 = vector.shape_cast %161 : vector<8xf32> to vector<8x1xf32>
    %cst_68 = arith.constant 3.200000e+01 : f32
    %163 = vector.broadcast %cst_68 : f32 to vector<8x1xf32>
    %164 = arith.divf %162, %163 : vector<8x1xf32>
    %165 = vector.broadcast %157 : vector<8x1xf32> to vector<8x32xf32>
    %166 = arith.subf %151, %165 : vector<8x32xf32>
    %cst_69 = arith.constant 9.99999974E-6 : f32
    %167 = vector.broadcast %cst_69 : f32 to vector<8x1xf32>
    %168 = arith.addf %164, %167 : vector<8x1xf32>
    %169 = math.rsqrt %168 : vector<8x1xf32>
    %170 = vector.broadcast %169 : vector<8x1xf32> to vector<8x32xf32>
    %171 = arith.mulf %166, %170 : vector<8x32xf32>
    %172 = vector.broadcast %152 : vector<1x32xf32> to vector<8x32xf32>
    %173 = arith.mulf %171, %172 : vector<8x32xf32>
    %174 = vector.broadcast %153 : vector<1x32xf32> to vector<8x32xf32>
    %175 = arith.addf %173, %174 : vector<8x32xf32>
    %c0_70 = arith.constant 0 : index
    %c0_71 = arith.constant 0 : index
    %c0_72 = arith.constant 0 : index
    %176 = vector.load %arg17[%c0_70, %c0_71, %c0_72] : memref<1x8x32xf32, #tpu.memory_space<vmem>>, vector<1x8x32xf32>
    %177 = vector.shape_cast %176 : vector<1x8x32xf32> to vector<8x32xf32>
    %178 = vector.shape_cast %175 : vector<8x32xf32> to vector<1x8x32xf32>
    tpu.vector_store %arg17[%c0_70, %c0_71, %c0_72], %178 {strides = array<i32>} : memref<1x8x32xf32, #tpu.memory_space<vmem>>, vector<1x8x32xf32>,
    return
  }
  func.func @transform_0(%arg0: i32, %arg1: i32) -> (i32, i32, i32) {
    %c0_i32 = arith.constant 0 : i32
    %c0_i32_0 = arith.constant 0 : i32
    return %arg0, %arg1, %c0_i32 : i32, i32, i32
  }
  func.func @transform_1(%arg0: i32, %arg1: i32) -> (i32, i32, i32) {
    %c0_i32 = arith.constant 0 : i32
    %c0_i32_0 = arith.constant 0 : i32
    %c0_i32_1 = arith.constant 0 : i32
    return %arg0, %c0_i32, %c0_i32_0 : i32, i32, i32
  }
  func.func @transform_2(%arg0: i32, %arg1: i32) -> (i32, i32, i32) {
    %c0_i32 = arith.constant 0 : i32
    %c0_i32_0 = arith.constant 0 : i32
    %c0_i32_1 = arith.constant 0 : i32
    return %arg0, %c0_i32, %c0_i32_0 : i32, i32, i32
  }
  func.func @transform_3(%arg0: i32, %arg1: i32) -> (i32, i32) {
    %c0_i32 = arith.constant 0 : i32
    %c0_i32_0 = arith.constant 0 : i32
    %c0_i32_1 = arith.constant 0 : i32
    return %c0_i32, %c0_i32_0 : i32, i32
  }
  func.func @transform_4(%arg0: i32, %arg1: i32) -> (i32, i32) {
    %c0_i32 = arith.constant 0 : i32
    %c0_i32_0 = arith.constant 0 : i32
    %c0_i32_1 = arith.constant 0 : i32
    return %c0_i32, %c0_i32_0 : i32, i32
  }
  func.func @transform_5(%arg0: i32, %arg1: i32) -> (i32, i32) {
    %c0_i32 = arith.constant 0 : i32
    %c0_i32_0 = arith.constant 0 : i32
    %c0_i32_1 = arith.constant 0 : i32
    return %c0_i32, %c0_i32_0 : i32, i32
  }
  func.func @transform_6(%arg0: i32, %arg1: i32) -> (i32, i32) {
    %c0_i32 = arith.constant 0 : i32
    %c0_i32_0 = arith.constant 0 : i32
    %c0_i32_1 = arith.constant 0 : i32
    return %c0_i32, %c0_i32_0 : i32, i32
  }
  func.func @transform_7(%arg0: i32, %arg1: i32) -> (i32, i32) {
    %c0_i32 = arith.constant 0 : i32
    %c0_i32_0 = arith.constant 0 : i32
    %c0_i32_1 = arith.constant 0 : i32
    return %c0_i32, %c0_i32_0 : i32, i32
  }
  func.func @transform_8(%arg0: i32, %arg1: i32) -> (i32, i32) {
    %c0_i32 = arith.constant 0 : i32
    %c0_i32_0 = arith.constant 0 : i32
    %c0_i32_1 = arith.constant 0 : i32
    return %c0_i32, %c0_i32_0 : i32, i32
  }
  func.func @transform_9(%arg0: i32, %arg1: i32) -> (i32, i32) {
    %c0_i32 = arith.constant 0 : i32
    %c0_i32_0 = arith.constant 0 : i32
    %c0_i32_1 = arith.constant 0 : i32
    return %c0_i32, %c0_i32_0 : i32, i32
  }
  func.func @transform_10(%arg0: i32, %arg1: i32) -> (i32, i32) {
    %c0_i32 = arith.constant 0 : i32
    %c0_i32_0 = arith.constant 0 : i32
    %c0_i32_1 = arith.constant 0 : i32
    return %c0_i32, %c0_i32_0 : i32, i32
  }
  func.func @transform_11(%arg0: i32, %arg1: i32) -> (i32, i32) {
    %c0_i32 = arith.constant 0 : i32
    %c0_i32_0 = arith.constant 0 : i32
    %c0_i32_1 = arith.constant 0 : i32
    return %c0_i32, %c0_i32_0 : i32, i32
  }
  func.func @transform_12(%arg0: i32, %arg1: i32) -> (i32, i32) {
    %c0_i32 = arith.constant 0 : i32
    %c0_i32_0 = arith.constant 0 : i32
    %c0_i32_1 = arith.constant 0 : i32
    return %c0_i32, %c0_i32_0 : i32, i32
  }
  func.func @transform_13(%arg0: i32, %arg1: i32) -> (i32, i32) {
    %c0_i32 = arith.constant 0 : i32
    %c0_i32_0 = arith.constant 0 : i32
    %c0_i32_1 = arith.constant 0 : i32
    return %c0_i32, %c0_i32_0 : i32, i32
  }
  func.func @transform_14(%arg0: i32, %arg1: i32) -> (i32, i32) {
    %c0_i32 = arith.constant 0 : i32
    %c0_i32_0 = arith.constant 0 : i32
    %c0_i32_1 = arith.constant 0 : i32
    return %c0_i32, %c0_i32_0 : i32, i32
  }
  func.func @transform_15(%arg0: i32, %arg1: i32) -> (i32, i32, i32) {
    %c0_i32 = arith.constant 0 : i32
    %c0_i32_0 = arith.constant 0 : i32
    return %arg0, %arg1, %c0_i32 : i32, i32, i32
  }
}

</mosaic_0001>

<bundles_post_ra>
// kernel: tpu_custom_call.1
= control target key start
LH: loop header
LB: loop body
LE: loop exit
PB: predicated region body
PF: predicated region fallthrough
CT: control target
= control target key end

     0   :  { %s2709_s0 = inlined_call_operand.vmem [shape: f32[2,8,32], index: 0, kind: input, shape index: {}]   ;;  %s2710_s1 = inlined_call_operand.hbm [shape: bf16[2,8,32], index: 1, kind: input, shape index: {}]   ;;  %s2711_s2 = inlined_call_operand.hbm [shape: f32[2,1,8], index: 2, kind: input, shape index: {}]   ;;  %s2712_s3 = inlined_call_operand.vmem [shape: bf16[32,96], index: 3, kind: input, shape index: {}]   ;;  %s2713_s4 = inlined_call_operand.vmem [shape: f32[1,96], index: 4, kind: input, shape index: {}]   ;;  %s2714_s5 = inlined_call_operand.vmem [shape: bf16[32,32], index: 5, kind: input, shape index: {}]   ;;  %s2715_s6 = inlined_call_operand.vmem [shape: f32[1,32], index: 6, kind: input, shape index: {}]   ;;  %s2716_s7 = inlined_call_operand.vmem [shape: f32[1,32], index: 7, kind: input, shape index: {}]   ;;  %s2717_s8 = inlined_call_operand.vmem [shape: f32[1,32], index: 8, kind: input, shape index: {}]   ;;  %s2718_s9 = inlined_call_operand.hbm [shape: bf16[32,64], index: 9, kind: input, shape index: {}]   ;;  %s2719_s10 = inlined_call_operand.vmem [shape: f32[1,64], index: 10, kind: input, shape index: {}]   ;;  %s2720_s11 = inlined_call_operand.vmem [shape: bf16[64,32], index: 11, kind: input, shape index: {}]   ;;  %s2721_s12 = inlined_call_operand.vmem [shape: f32[1,32], index: 12, kind: input, shape index: {}]   ;;  %s2722_s13 = inlined_call_operand.vmem [shape: f32[1,32], index: 13, kind: input, shape index: {}]   ;;  %s2723_s14 = inlined_call_operand.vmem [shape: f32[1,32], index: 14, kind: input, shape index: {}]   ;;  %s2724_s15 = inlined_call_operand.hbm [shape: f32[2,8,32], index: 15, kind: output, shape index: {}]  }
   0x1   :  { %2733 = sst [smem:[#allocation20_spill]] %s2715_s6 }
   0x2   :  { %2734 = sst [smem:[#allocation21_spill]] %s2716_s7 }
   0x3   :  { %2735 = sst [smem:[#allocation22_spill]] %s2717_s8 }
   0x4   :  { %2736 = sst [smem:[#allocation23_spill]] %s2718_s9 }
   0x5   :  { %2737 = sst [smem:[#allocation24_spill]] %s2719_s10 }
   0x6   :  { %2738 = sst [smem:[#allocation25_spill]] %s2720_s11 }
   0x7   :  { %2739 = sst [smem:[#allocation26_spill]] %s2721_s12 }
   0x8   :  { %2740 = sst [smem:[#allocation27_spill]] %s2722_s13 }
   0x9   :  { %2741 = sst [smem:[#allocation28_spill]] %s2723_s14 }
   0xa   :  { %2742 = sst [smem:[#allocation29_spill]] %s2724_s15 }
   0xb   :  { %20 = vsyncpa [#allocation4], 0 }
   0xc   :  { %22 = vsyncpa [#allocation4 + $0x1], 0 }
   0xd   :  { %23 = vsyncpa [#allocation7], 0 }
   0xe   :  { %25 = vsyncpa [#allocation7 + $0x1], 0 }
   0xf   :  { %26 = vsyncpa [#allocation5], 0 }
  0x10   :  { %28 = vsyncpa [#allocation5 + $0x1], 0  ;;  %s2258_s18 = smov 0   ;;  %s2260_s19 = smov 0  }
  0x11   :  { %s2262_s20 = smov 0   ;;  %s2264_s21 = smov 0  }
  0x12   :  { %s2266_s22 = smov 0   ;;  %s2268_s23 = smov 0  }
  0x13 LB: > { %2743 = sst [smem:[#allocation14_spill]] %s2140_s18  ;;  %s2289_s24 = sadd.s32 4294967295, %s2160_s23   ;;  %s2160_s23 = sphi %s2268_s23, %s34_s23   ;;  %s2156_s22 = sphi %s2266_s22, %s2773_s22   ;;  %s2152_s21 = sphi %s2264_s21, %s2772_s21   ;;  %s2148_s20 = sphi %s2262_s20, %s2768_s20   ;;  %s2144_s19 = sphi %s2260_s19, %s2771_s19   ;;  %s2140_s18 = sphi %s2258_s18, %s2770_s18  }
  0x14   : > { %2744 = sst [smem:[#allocation15_spill]] %s2148_s20  ;;  %p1768_p0 = scmp.ge.s32.totalorder %s2160_s23, 1 }
  0x15   : > { %p95_p1 = scmp.eq.s32.totalorder %s2289_s24, 0  ;;  %p411_p2 = scmp.lt.s32.totalorder %s2160_s23, 3 }
  0x16   : > { %s2745_s9 = sld [smem:[#allocation23_spill]]  ;;  %s2162_s29 = smov [#allocation8]  }
  0x17   : > { %p2297_p3 = pnand %p1768_p0, %p411_p2  ;;  %s442_s30 = sshll.u32 %s2162_s29, 4  ;;  %s443_s30 = int_to_ptr.vmem [resolvable:$true] %s442_s30 }
  0x18   : > { %p1770_p6 = scmp.ge.s32.totalorder %s2160_s23, 2  ;;  %s2163_s16 = smov 64  }
  0x19   : > { %p1865_p4 = pneg %p2297_p3  ;;  %s2164_s17 = smov 4  }
  0x1a   : > { %s1767_s25 = sadd.s32 4294967294, %s2160_s23   ;;  %s46_s26 = sadd.s32 1, %s2156_s22 }
  0x1b   : > { %p1866_p5 = pnand %p1865_p4, %p95_p1  ;;  %p48_p7 = scmp.ge.s32.totalorder %s46_s26, 2 }
  0x1c   : > { %s440_s27 = sshll.u32 %s2745_s9, 4  ;;  %s81_s9 = sadd.s32 1, %s2148_s20  ;;  %s441_s27 = int_to_ptr.hbm [resolvable:$true] %s440_s27 }
  0x1d   : > { %1868 = dma.hbm_to_vmem [thread:$0]  (!%p1866_p5), %s441_s27, 256, %s443_s30, [#allocation7], %s2163_s16, %s2163_s16, %s2164_s17  }
  0x1e   : > { %p88_p8 = scmp.ne.s32.totalorder %s2148_s20, %s2144_s19  ;;  %p89_p9 = scmp.eq.s32.totalorder %s2160_s23, 0 }
  0x1f   : > { %p94_p10 = scmp.ne.s32.totalorder %s2144_s19, %s2140_s18  ;;  %s2775_s26 = smov (%p48_p7, %s46_s26), 0 }
  0x20   : > { %2747 = sst [smem:[#allocation16_spill]] %s2775_s26  ;;  %p2316_p11 = por %p89_p9, %p88_p8 }
  0x21   : > { %p2322_p12 = por %p95_p1, %p94_p10  ;;  %s78_s30 = ssub.s32 %s2156_s22, %s2775_s26 }
  0x22   : > { %p398_p13 = scmp.eq.s32.totalorder %s2289_s24, 1  ;;  %p79_p0 = scmp.eq.s32.totalorder %s78_s30, 0 }
  0x23   : > { %p404_p2 = scmp.eq.s32.totalorder %s1767_s25, 1  ;;  %p1881_p5 = scmp.lt.s32.totalorder %s2160_s23, 2 }
  0x24   : > { %p2329_p4 = por %p398_p13, %p88_p8  ;;  %s481_s14 = sand.u32 1, %s2148_s20  }
  0x25   : > { %s2335_s17 = scalar_select %p79_p0, %s2148_s20, %s81_s9  }
  0x26   : > { %s2750_s16 = scalar_select %p2329_p4, 1, 0 }
  0x27   : > { %2752 = sst [smem:[#allocation18_spill]] %s2335_s17  ;;  %p2337_p7 = por %p404_p2, %p94_p10 }
  0x28   : > { %2751 = sst [smem:[#allocation17_spill]] %s2750_s16  ;;  %s1771_s15 = sshll.u32 %s481_s14, 2 }
  0x29   : > { %s2753_s18 = scalar_select %p2337_p7, 1, 0 }
  0x2a   : > { %s1772_s26 = sshll.u32 %s2156_s22, 2  ;;  %s485_s25 = scalar_lea.vmem [#allocation3], %s1771_s15 }
  0x2b   : > { %2754 = sst [smem:[#allocation19_spill]] %s2753_s18  ;;  %s489_s30 = scalar_lea.hbm %s2710_s1, %s1772_s26 }
  0x2c   : > { %s493_s10 = sshll.u32 %s485_s25, 4  ;;  %s491_s8 = sshll.u32 %s489_s30, 4  ;;  %s494_s10 = int_to_ptr.vmem [resolvable:$true] %s493_s10  ;;  %s492_s8 = int_to_ptr.hbm [resolvable:$true] %s491_s8 }
  0x2d   : > { %p1870_p8 = pnand %p1881_p5, %p2316_p11  ;;  %s500_s9 = sand.u32 1, %s2160_s23  }
  0x2e   : > { %s482_s17 = scalar_lea.sflag [#allocation4], %s481_s14  ;;  %s506_s20 = scalar_lea.hbm %s2711_s2, %s2156_s22 }
  0x2f   : > { %1872 = dma.hbm_to_vmem [thread:$0]  (!%p1870_p8), %s492_s8, 64, %s494_s10, %s482_s17  }
  0x30   : > { %s503_s18 = scalar_lea.vmem [#allocation6], %s481_s14  ;;  %s508_s6 = sshll.u32 %s506_s20, 4  ;;  %s509_s6 = int_to_ptr.hbm [resolvable:$true] %s508_s6 }
  0x31   : > { %s510_s11 = sshll.u32 %s503_s18, 4  ;;  %s501_s12 = scalar_lea.sflag [#allocation7], %s500_s9  ;;  %s511_s11 = int_to_ptr.vmem [resolvable:$true] %s510_s11 }
  0x32   : > { %1875 = dma.hbm_to_vmem [thread:$0]  (!%p1870_p8), %s509_s6, 16, %s511_s11, %s501_s12  }
  0x33   : > { %519 = sbr.rel (%p2297_p3) target bundleno = 2106 (0x83a), region = 80  ;;  %s2356_s13 = sand.u32 (!%p2297_p3), 1, %s2144_s19  }
  0x34   : > { %s1774_s8 = sshll.u32 (!%p2297_p3), %s2356_s13, 2  ;;  %s522_s10 = scalar_lea.sflag (!%p2297_p3), [#allocation4], %s2356_s13 }
  0x35   : > { %s2360_s7 = scalar_lea.vmem (!%p2297_p3), [#allocation3], %s1774_s8 }
  0x38   : > { %2123 = dma.done.wait (%p2322_p12), %s522_s10, 64  }
  0x39   : > { %2125 = vsyncadd (%p2322_p12), %s522_s10, 4294967232  ;;  %s531_s6 = sand.u32 1, %s2289_s24   ;;  %s534_s14 = scalar_lea.vmem [#allocation6], %s2356_s13 }
  0x3a   : > { %s532_s11 = scalar_lea.sflag [#allocation7], %s531_s6 }
  0x3b   : > { %2127 = dma.done.wait (%p2322_p12), %s532_s11, 16  }
  0x3c   : > { %2129 = vsyncadd (%p2322_p12), %s532_s11, 4294967280 }
  0x3d   : > { %2131 = dma.done.wait (%p95_p1), [#allocation7], 256  }
  0x3e   : > { %2133 = vsyncadd (%p95_p1), [#allocation7], 4294967040  ;;  %v1844_v0 = vld [vmem:[%s2712_s3 + $0x8] sm:$0xff]  ;;  %s2165_s20 = smov 96   ;;  %v1843_v1 = vld [vmem:[%s2712_s3] sm:$0xff]  ;;  %p598_p3 = scmp.lt.s32.totalorder %s2152_s21, 1 }
  0x3f   : > { %631 = vrot.lane.b32.xlu0 %v1844_v0, %s2165_s20  ;;  %v1846_v2 = vld [vmem:[%s2712_s3 + $0x8] sm:$0xff]  ;;  %v1948_v3 = vld [vmem:[%s2713_s4] ss:$0 sm:$0xff]  ;;  %vm638_vm0 = vcmask 261120   ;;  %s2166_s6 = smov 104   ;;  %s2167_s11 = smov 112  }
  0x40   : > { %s599_s29 = scalar_select %p598_p3, %s2152_s21, 1  ;;  %950 = vmatpush.bf16.msra.mxu1 %v1846_v2  ;;  %v1845_v4 = vld [vmem:[%s2712_s3] sm:$0xff]  ;;  %635 = vrot.lane.b32.xlu1 %v1948_v3, %s2165_s20  ;;  %v2172_v20 = vmov 1983009808   ;;  %vm678_vm1 = vcmask 1047556   ;;  %vm910_vm2 = vcmask 60416  }
  0x41   : > { %v611_v9 = vld [vmem:[%s2360_s7] sm:$0xf]  ;;  %s2168_s15 = smov 120   ;;  %s2169_s18 = smov 72   ;;  %v683_v21 = vunpack.c.l.s4 %v2172_v20  ;;  %v2173_v34 = vmov 1934713408  }
  0x42   : > { %s1777_s27 = sshll.u32 %s599_s29, 3  ;;  %v1949_v16 = vld [vmem:[%s2713_s4] ss:$0 sm:$0xff]  ;;  %s2170_s26 = smov 88   ;;  %v731_v35 = vunpack.c.l.s4 %v2173_v34  ;;  %vm1095_vm3 = vcmask 64512   ;;  %vm1223_vm4 = vcmask 1043456  }
  0x43   : > { %s604_s17 = scalar_lea.vmem %s2709_s0, %s1777_s27  ;;  %s2171_s29 = smov 80   ;;  %v2415_v25 = vunpack.c.0.s8 %v683_v21  ;;  %vm1420_vm5 = vcmask 130048   ;;  %vm1422_vm6 = vcmask 195584   ;;  %vm1576_vm11 = vcmask 523264  }
  0x44   : > { %v2399_v5 = vld [vmem:[%s604_s17] sm:$0xff]  ;;  %951 = vmatpush.bf16.msra.mxu1 %v1845_v4  ;;  %v2427_v46 = vunpack.c.0.s8 %v731_v35  ;;  %s2176_s27 = smov 8   ;;  %s2755_s12 = sld [smem:[#allocation20_spill]] }
  0x45   : > { %v919_v6 = vpack.c.bf16 %v2399_v5, %v2399_v5  ;;  %s2759_s25 = sld [smem:[#allocation24_spill]]  ;;  %s1776_s10 = sshll.u32 %s2356_s13, 3 }
  0x46   : > { %s2760_s8 = sld [smem:[#allocation26_spill]] }
  0x47   : > { %629 = vrot.lane.b32.xlu0 %v1843_v1, %s2165_s20  ;;  %1795 = vmatmul.msk.bf16.vlgmr.msra.gmra.mxu1 %vm638_vm0, %v919_v6  ;;  %s2761_s28 = sld [smem:[#allocation27_spill]] }
  0x48   : > { %s2764_s16 = sld [smem:[#allocation28_spill]] }
  0xb1   : > { %v632_v7 = vpop.permute.xlu0 %631 }
  0xb2   : > { %648 = vmatpush.bf16.msra.mxu0 %v632_v7  ;;  %v636_v12 = vpop.permute.xlu1 %635 }
  0xb9   : > { %v630_v8 = vpop.permute.xlu0 %629 }
  0xba   : > { %649 = vmatpush.bf16.msra.mxu0 %v630_v8 }
  0xbd   : > { %1786 = vmatmul.msk.bf16.vlgmr.msra.gmra.mxu0 %vm638_vm0, %v611_v9 }
  0xc4   : > { %v953_v10 = vpop.f32.mrf.mxu1 }
  0xc5   : > { %v2410_v17 = vadd.f32 %v1949_v16, %v953_v10 }
  0xc7   : > { %v971_v53 = vrot.slane %v2410_v17, 4 }
  0xcc   : > { %v955_v11 = vpop.f32.mrf.mxu1 }
 0x13a   : > { %v651_v13 = vpop.f32.mrf.mxu0 }
 0x13b   : > { %v652_v14 = vadd.f32 %v651_v13, %v636_v12 }
 0x13d   : > { %662 = vrot.lane.b32.xlu0 %v652_v14, %s2166_s6  ;;  %659 = vrot.lane.b32.xlu2 %v652_v14, %s2167_s11  ;;  %v680_v23 = vrot.slane %v652_v14, 4 }
 0x13e   : > { %656 = vrot.lane.b32.xlu1 %v652_v14, %s2168_s15 }
 0x142   : > { %v653_v15 = vpop.f32.mrf.mxu0 }
 0x145   : > { %674 = vrot.lane.b32.xlu0 %v652_v14, %s2169_s18  ;;  %665 = vrot.lane.b32.xlu2 %v652_v14, %s2165_s20  ;;  %s2175_s20 = smov 16  }
 0x146   : > { %668 = vrot.lane.b32.xlu1 %v652_v14, %s2170_s26 }
 0x14d   : > { %671 = vrot.lane.b32.xlu2 %v652_v14, %s2171_s29  ;;  %965 = vrot.lane.b32.xlu0 %v2410_v17, %s2166_s6  ;;  %s2756_s6 = sld [smem:[#allocation25_spill]] }
 0x14e   : > { %959 = vrot.lane.b32.xlu1 %v2410_v17, %s2168_s15  ;;  %s2757_s29 = sld [smem:[#allocation21_spill]] }
 0x155   : > { %962 = vrot.lane.b32.xlu2 %v2410_v17, %s2167_s11  ;;  %s1840_s11 = sshll.u32 %s2152_s21, 3  ;;  %s597_s21 = scalar_lea.vmem [#allocation9], %s1776_s10 }
 0x156   : > { %s1641_s17 = sshll.u32 %s597_s21, 4  ;;  %s1642_s17 = int_to_ptr.vmem [resolvable:$true] %s1641_s17 }
 0x197   : > { %v660_v18 = vpop.permute.xlu2 %659 }
 0x198   : > { %v677_v22 = vrot.slane %v660_v18, 4  ;;  %v681_v27 = vsel %vm678_vm1, %v660_v18, %v680_v23 }
 0x199   : > { %v689_v33 = vperm.slane %v681_v27, %v2415_v25 }
 0x19a   : > { %v679_v26 = vsel %vm678_vm1, %v677_v22, %v652_v14 }
 0x19b   : > { %v685_v30 = vperm.slane %v679_v26, %v2415_v25  ;;  %v740_v44 = vrot.slane %v689_v33, 4 }
 0x19d   : > { %v728_v42 = vrot.slane %v685_v30, 4 }
 0x19f   : > { %v666_v19 = vpop.permute.xlu2 %665 }
 0x1a0   : > { %v704_v38 = vrot.slane %v666_v19, 4 }
 0x1a7   : > { %v672_v24 = vpop.permute.xlu2 %671 }
 0x1a8   : > { %v702_v28 = vrot.slane %v672_v24, 4  ;;  %v705_v45 = vsel %vm678_vm1, %v672_v24, %v704_v38 }
 0x1a9   : > { %v713_v55 = vperm.slane %v705_v45, %v2415_v25 }
 0x1aa   : > { %v703_v39 = vsel %vm678_vm1, %v702_v28, %v666_v19 }
 0x1ab   : > { %v709_v48 = vperm.slane %v703_v39, %v2415_v25  ;;  %v764_v8 = vrot.slane %v713_v55, 4 }
 0x1ad   : > { %v752_v0 = vrot.slane %v709_v48, 4 }
 0x1af   : > { %v663_v29 = vpop.permute.xlu0 %662  ;;  %v963_v51 = vpop.permute.xlu2 %962 }
 0x1b0   : > { %v690_v31 = vrot.slane %v663_v29, 4  ;;  %v657_v32 = vpop.permute.xlu1 %656  ;;  %v968_v61 = vrot.slane %v963_v51, 4  ;;  %v972_v62 = vsel %vm678_vm1, %v963_v51, %v971_v53 }
 0x1b1   : > { %v692_v36 = vrot.slane %v657_v32, 4  ;;  %v2445_v9 = vperm.slane %v972_v62, %v2415_v25 }
 0x1b2   : > { %v691_v37 = vsel %vm678_vm1, %v690_v31, %v657_v32  ;;  %v2450_v12 = vsel %vm678_vm1, %v968_v61, %v2410_v17 }
 0x1b3   : > { %v693_v40 = vsel %vm678_vm1, %v663_v29, %v692_v36  ;;  %v697_v41 = vperm.slane %v691_v37, %v2415_v25 }
 0x1b4   : > { %v701_v43 = vperm.slane %v693_v40, %v2415_v25 }
 0x1b5   : > { %v726_v47 = vrot.slane %v697_v41, 4  ;;  %v729_v49 = vsel %vm678_vm1, %v697_v41, %v728_v42 }
 0x1b6   : > { %v738_v50 = vrot.slane %v701_v43, 4  ;;  %v741_v52 = vsel %vm678_vm1, %v701_v43, %v740_v44  ;;  %v737_v60 = vperm.slane %v729_v49, %v2427_v46 }
 0x1b7   : > { %v675_v54 = vpop.permute.xlu0 %674  ;;  %v727_v56 = vsel %vm678_vm1, %v726_v47, %v685_v30  ;;  %v749_v1 = vperm.slane %v741_v52, %v2427_v46 }
 0x1b8   : > { %v739_v57 = vsel %vm678_vm1, %v738_v50, %v689_v33  ;;  %v714_v58 = vrot.slane %v675_v54, 4  ;;  %v669_v59 = vpop.permute.xlu1 %668  ;;  %v733_v3 = vperm.slane %v727_v56, %v2427_v46  ;;  %v780_v11 = vrot.slane %v737_v60, 4 }
 0x1b9   : > { %v716_v63 = vrot.slane %v669_v59, 4  ;;  %v745_v4 = vperm.slane %v739_v57, %v2427_v46  ;;  %v788_v15 = vrot.slane %v749_v1, 4 }
 0x1ba   : > { %v715_v2 = vsel %vm678_vm1, %v714_v58, %v669_v59  ;;  %v776_v20 = vrot.slane %v733_v3, 4 }
 0x1bb   : > { %v717_v6 = vsel %vm678_vm1, %v675_v54, %v716_v63  ;;  %v721_v7 = vperm.slane %v715_v2, %v2415_v25  ;;  %v784_v21 = vrot.slane %v745_v4, 4 }
 0x1bc   : > { %v725_v10 = vperm.slane %v717_v6, %v2415_v25 }
 0x1bd   : > { %v750_v13 = vrot.slane %v721_v7, 4  ;;  %v753_v14 = vsel %vm678_vm1, %v721_v7, %v752_v0 }
 0x1be   : > { %v761_v16 = vperm.slane %v753_v14, %v2427_v46  ;;  %v762_v18 = vrot.slane %v725_v10, 4  ;;  %v765_v19 = vsel %vm678_vm1, %v725_v10, %v764_v8 }
 0x1bf   : > { %v751_v22 = vsel %vm678_vm1, %v750_v13, %v709_v48  ;;  %v773_v23 = vperm.slane %v765_v19, %v2427_v46 }
 0x1c0   : > { %v757_v24 = vperm.slane %v751_v22, %v2427_v46  ;;  %v763_v17 = vsel %vm678_vm1, %v762_v18, %v713_v55  ;;  %v778_v26 = vrot.slane %v761_v16, 4  ;;  %v781_v27 = vsel %vm678_vm1, %v761_v16, %v780_v11 }
 0x1c1   : > { %v769_v28 = vperm.slane %v763_v17, %v2427_v46  ;;  %v786_v29 = vrot.slane %v773_v23, 4  ;;  %v789_v30 = vsel %vm678_vm1, %v773_v23, %v788_v15  ;;  %v802_v31 = vrot.slane %v781_v27, 4 }
 0x1c2   : > { %v774_v32 = vrot.slane %v757_v24, 4  ;;  %v777_v33 = vsel %vm678_vm1, %v757_v24, %v776_v20  ;;  %v779_v34 = vsel %vm678_vm1, %v778_v26, %v737_v60  ;;  %v826_v35 = vrot.slane %v789_v30, 4 }
 0x1c3   : > { %v782_v36 = vrot.slane %v769_v28, 4  ;;  %v785_v37 = vsel %vm678_vm1, %v769_v28, %v784_v21  ;;  %v787_v38 = vsel %vm678_vm1, %v786_v29, %v749_v1  ;;  %v790_v39 = vrot.slane %v779_v34, 4 }
 0x1c4   : > { %v775_v40 = vsel %vm678_vm1, %v774_v32, %v733_v3  ;;  %v803_v41 = vsel %vm678_vm1, %v802_v31, %v777_v33  ;;  %v804_v42 = vrot.slane %v777_v33, 4  ;;  %v814_v43 = vrot.slane %v787_v38, 4 }
 0x1c5   : > { %v783_v44 = vsel %vm678_vm1, %v782_v36, %v745_v4  ;;  %v791_v45 = vsel %vm678_vm1, %v790_v39, %v775_v40  ;;  %v792_v47 = vrot.slane %v775_v40, 4  ;;  %v809_v48 = vperm.slane %v803_v41, %v2415_v25  ;;  %v966_v41 = vpop.permute.xlu0 %965 }
 0x1c6   : > { %v797_v49 = vperm.slane %v791_v45, %v2415_v25  ;;  %v805_v50 = vsel %vm678_vm1, %v781_v27, %v804_v42  ;;  %v815_v51 = vsel %vm678_vm1, %v814_v43, %v783_v44  ;;  %v816_v52 = vrot.slane %v783_v44, 4  ;;  %v960_v42 = vpop.permute.xlu1 %959 }
 0x1c7   : > { %v793_v53 = vsel %vm678_vm1, %v779_v34, %v792_v47  ;;  %v813_v54 = vperm.slane %v805_v50, %v2415_v25  ;;  %v821_v55 = vperm.slane %v815_v51, %v2415_v25  ;;  %v827_v56 = vsel %vm678_vm1, %v826_v35, %v785_v37 }
 0x1c8   : > { %v801_v57 = vperm.slane %v793_v53, %v2415_v25  ;;  %v817_v58 = vsel %vm678_vm1, %v787_v38, %v816_v52  ;;  %v828_v59 = vrot.slane %v785_v37, 4  ;;  %v833_v60 = vperm.slane %v827_v56, %v2415_v25 }
 0x1c9   : > { %v825_v61 = vperm.slane %v817_v58, %v2415_v25  ;;  %v838_v62 = vrot.slane %v809_v48, 4  ;;  %v840_v63 = vrot.slane %v797_v49, 4  ;;  %v850_v0 = vrot.slane %v813_v54, 4 }
 0x1ca   : > { %v829_v1 = vsel %vm678_vm1, %v789_v30, %v828_v59  ;;  %v852_v2 = vrot.slane %v801_v57, 4  ;;  %v862_v3 = vrot.slane %v833_v60, 4  ;;  %v864_v4 = vrot.slane %v821_v55, 4 }
 0x1cb   : > { %v837_v6 = vperm.slane %v829_v1, %v2415_v25  ;;  %v839_v7 = vsel %vm678_vm1, %v838_v62, %v797_v49  ;;  %v841_v8 = vsel %vm678_vm1, %v809_v48, %v840_v63  ;;  %v851_v10 = vsel %vm678_vm1, %v850_v0, %v801_v57 }
 0x1cc   : > { %v845_v11 = vperm.slane %v839_v7, %v2427_v46  ;;  %v849_v13 = vperm.slane %v841_v8, %v2427_v46  ;;  %v853_v14 = vsel %vm678_vm1, %v813_v54, %v852_v2  ;;  %v857_v15 = vperm.slane %v851_v10, %v2427_v46 }
 0x1cd   : > { %v861_v16 = vperm.slane %v853_v14, %v2427_v46  ;;  %v863_v18 = vsel %vm678_vm1, %v862_v3, %v821_v55  ;;  %v865_v19 = vsel %vm678_vm1, %v833_v60, %v864_v4  ;;  %v874_v20 = vrot.slane %v837_v6, 4 }
 0x1ce   : > { %v869_v21 = vperm.slane %v863_v18, %v2427_v46  ;;  %v873_v22 = vperm.slane %v865_v19, %v2427_v46  ;;  %v876_v23 = vrot.slane %v825_v61, 4  ;;  %v888_v24 = vrot.slane %v845_v11, 4 }
 0x1cf   : > { %v875_v17 = vsel %vm678_vm1, %v874_v20, %v825_v61  ;;  %v892_v26 = vrot.slane %v849_v13, 4  ;;  %v896_v27 = vrot.slane %v857_v15, 4  ;;  %v900_v28 = vrot.slane %v861_v16, 4 }
 0x1d0   : > { %v877_v29 = vsel %vm678_vm1, %v837_v6, %v876_v23  ;;  %v881_v30 = vperm.slane %v875_v17, %v2427_v46  ;;  %v886_v31 = vrot.slane %v869_v21, 4  ;;  %v889_v32 = vsel %vm678_vm1, %v869_v21, %v888_v24 }
 0x1d1   : > { %v885_v33 = vperm.slane %v877_v29, %v2427_v46  ;;  %v890_v34 = vrot.slane %v873_v22, 4  ;;  %v893_v35 = vsel %vm678_vm1, %v873_v22, %v892_v26  ;;  %v903_v36 = vpack.c.bf16 %v889_v32, %v889_v32 }
 0x1d2   : > { %v887_v37 = vsel %vm678_vm1, %v886_v31, %v845_v11  ;;  %v894_v38 = vrot.slane %v881_v30, 4  ;;  %v897_v39 = vsel %vm678_vm1, %v881_v30, %v896_v27  ;;  %v905_v40 = vpack.c.bf16 %v893_v35, %v893_v35 }
 0x1d3   : > { %v891_v43 = vsel %vm678_vm1, %v890_v34, %v849_v13  ;;  %v898_v44 = vrot.slane %v885_v33, 4  ;;  %v901_v45 = vsel %vm678_vm1, %v885_v33, %v900_v28  ;;  %v902_v47 = vpack.c.bf16 %v887_v37, %v887_v37  ;;  %912 = vst.msk [vmem:[#allocation2 + $0x4] sm:$0xf] %vm910_vm2, %v903_v36 }
 0x1d4   : > { %v976_v48 = vperm.slane %v2450_v12, %v2415_v25  ;;  %v895_v49 = vsel %vm678_vm1, %v894_v38, %v857_v15  ;;  %v904_v50 = vpack.c.bf16 %v891_v43, %v891_v43  ;;  %v909_v51 = vpack.c.bf16 %v901_v45, %v901_v45  ;;  %914 = vst.msk [vmem:[#allocation2 + $0xc] sm:$0xf] %vm910_vm2, %v905_v40 }
 0x1d5   : > { %v899_v52 = vsel %vm678_vm1, %v898_v44, %v861_v16  ;;  %v906_v53 = vpack.c.bf16 %v895_v49, %v895_v49  ;;  %911 = vst.msk [vmem:[#allocation2] sm:$0xf] %vm910_vm2, %v902_v47  ;;  %v981_v54 = vrot.slane %v966_v41, 4  ;;  %v983_v55 = vrot.slane %v960_v42, 4 }
 0x1d6   : > { %v907_v56 = vpack.c.bf16 %v897_v39, %v897_v39  ;;  %v908_v57 = vpack.c.bf16 %v899_v52, %v899_v52  ;;  %913 = vst.msk [vmem:[#allocation2 + $0x8] sm:$0xf] %vm910_vm2, %v904_v50  ;;  %v1007_v58 = vrot.slane %v2445_v9, 4  ;;  %v995_v60 = vrot.slane %v976_v48, 4 }
 0x1d7   : > { %915 = vst.msk [vmem:[#allocation2 + $0x10] sm:$0xf] %vm910_vm2, %v906_v53  ;;  %v982_v12 = vsel %vm678_vm1, %v981_v54, %v960_v42  ;;  %v984_v59 = vsel %vm678_vm1, %v966_v41, %v983_v55 }
 0x1d8   : > { %917 = vst.msk [vmem:[#allocation2 + $0x18] sm:$0xf] %vm910_vm2, %v908_v57  ;;  %v988_v61 = vperm.slane %v982_v12, %v2415_v25  ;;  %v992_v62 = vperm.slane %v984_v59, %v2415_v25 }
 0x1d9   : > { %918 = vst.msk [vmem:[#allocation2 + $0x1c] sm:$0xf] %vm910_vm2, %v909_v51 }
 0x1da   : > { %916 = vst.msk [vmem:[#allocation2 + $0x14] sm:$0xf] %vm910_vm2, %v907_v56  ;;  %v993_v63 = vrot.slane %v988_v61, 4  ;;  %v996_v0 = vsel %vm678_vm1, %v988_v61, %v995_v60  ;;  %v1005_v1 = vrot.slane %v992_v62, 4  ;;  %v1008_v2 = vsel %vm678_vm1, %v992_v62, %v1007_v58  ;;  %v1084_v3 = vld [vmem:[#allocation2 + $0x4] sm:$0xf] }
 0x1db   : > { %v1004_v4 = vperm.slane %v996_v0, %v2427_v46  ;;  %v1016_v6 = vperm.slane %v1008_v2, %v2427_v46  ;;  %v1119_v7 = vsel %vm1095_vm3, %v1084_v3, 0  ;;  %v1086_v8 = vld [vmem:[#allocation2 + $0xc] sm:$0xf] }
 0x1dc   : > { %v994_v10 = vsel %vm678_vm1, %v993_v63, %v976_v48  ;;  %v1006_v11 = vsel %vm678_vm1, %v1005_v1, %v2445_v9  ;;  %v1083_v13 = vld [vmem:[#allocation2] sm:$0xf]  ;;  %1128 = vmatpush.bf16.xpose.msra.mxu3 %v1119_v7  ;;  %v1157_v14 = vsel %vm1095_vm3, %v1086_v8, 0 }
 0x1dd   : > { %v1000_v15 = vperm.slane %v994_v10, %v2427_v46  ;;  %v1012_v16 = vperm.slane %v1006_v11, %v2427_v46  ;;  %v1019_v18 = vrot.slane %v1004_v4, 4  ;;  %v1023_v19 = vrot.slane %v1016_v6, 4  ;;  %v1085_v20 = vld [vmem:[#allocation2 + $0x8] sm:$0xf]  ;;  %1166 = vmatpush.bf16.xpose.msrb.mxu1 %v1157_v14  ;;  %v1950_v7 = vld [vmem:[%s534_s14] ss:$0 sm:$0xff] }
 0x1de   : > { %v1100_v21 = vsel %vm1095_vm3, %v1083_v13, 0  ;;  %v1138_v22 = vsel %vm1095_vm3, %v1085_v20, 0  ;;  %v1088_v23 = vld [vmem:[#allocation2 + $0x10] sm:$0xf]  ;;  %s2174_s14 = smov 24  }
 0x1df   : > { %v1017_v24 = vrot.slane %v1000_v15, 4  ;;  %v1020_v9 = vsel %vm678_vm1, 0.0, %v1019_v18  ;;  %v1021_v17 = vrot.slane %v1012_v16, 4  ;;  %v1024_v26 = vsel %vm678_vm1, 0.0, %v1023_v19  ;;  %1109 = vmatpush.bf16.xpose.msra.mxu2 %v1100_v21  ;;  %1147 = vmatpush.bf16.xpose.msrb.mxu0 %v1138_v22  ;;  %v1090_v27 = vld [vmem:[#allocation2 + $0x18] sm:$0xf] }
 0x1e0   : > { %v1025_v28 = vsel %vm678_vm1, %v1019_v18, %v1000_v15  ;;  %v1030_v29 = vrot.slane %v1020_v9, 4  ;;  %v1041_v30 = vrot.slane %v1024_v26, 4  ;;  %v1225_v31 = vsel %vm1223_vm4, %v1088_v23, 0  ;;  %v1091_v32 = vld [vmem:[#allocation2 + $0x1c] sm:$0xf] }
 0x1e1   : > { %v1018_v33 = vsel %vm678_vm1, 0.0, %v1017_v24  ;;  %v1022_v34 = vsel %vm678_vm1, 0.0, %v1021_v17  ;;  %v1089_v35 = vld [vmem:[#allocation2 + $0x14] sm:$0xf]  ;;  %v1263_v36 = vsel %vm1223_vm4, %v1090_v27, 0  ;;  %v1282_v37 = vsel %vm1223_vm4, %v1091_v32, 0 }
 0x1e2   : > { %v1031_v38 = vsel %vm678_vm1, %v1030_v29, %v1018_v33  ;;  %v1244_v39 = vsel %vm1223_vm4, %v1089_v35, 0  ;;  %v1029_v40 = vperm.slane %v1025_v28, %v2415_v25  ;;  %v1036_v41 = vsel %vm678_vm1, %v1023_v19, %v1012_v16 }
 0x1e3   : > { %v1035_v42 = vperm.slane %v1031_v38, %v2415_v25  ;;  %v1040_v43 = vperm.slane %v1036_v41, %v2415_v25  ;;  %v1042_v44 = vsel %vm678_vm1, %v1041_v30, %v1022_v34 }
 0x1e4   : > { %1253 = vmatpush.bf16.msrb.mxu3 %v1244_v39  ;;  %v1046_v45 = vperm.slane %v1042_v44, %v2415_v25  ;;  %v1049_v47 = vrot.slane %v1029_v40, 4 }
 0x1e5   : > { %1291 = vmatpush.bf16.msra.mxu1 %v1282_v37  ;;  %v1047_v48 = vrot.slane %v1035_v42, 4  ;;  %v1061_v49 = vrot.slane %v1040_v43, 4 }
 0x1e6   : > { %v1059_v50 = vrot.slane %v1046_v45, 4  ;;  %v1050_v51 = vsel %vm678_vm1, %v1035_v42, %v1049_v47 }
 0x1e7   : > { %1234 = vmatpush.bf16.msrb.mxu2 %v1225_v31  ;;  %1272 = vmatpush.bf16.msra.mxu0 %v1263_v36  ;;  %v1048_v52 = vsel %vm678_vm1, %v1047_v48, %v1029_v40  ;;  %v1058_v53 = vperm.slane %v1050_v51, %v2427_v46  ;;  %v1062_v54 = vsel %vm678_vm1, %v1046_v45, %v1061_v49 }
 0x1e8   : > { %v1054_v55 = vperm.slane %v1048_v52, %v2427_v46  ;;  %v1060_v56 = vsel %vm678_vm1, %v1059_v50, %v1040_v43  ;;  %v1070_v57 = vperm.slane %v1062_v54, %v2427_v46 }
 0x1e9   : > { %v1066_v58 = vperm.slane %v1060_v56, %v2427_v46  ;;  %v1077_v12 = vrot.slane %v1058_v53, 4 }
 0x1ea   : > { %v1073_v59 = vrot.slane %v1054_v55, 4  ;;  %v1075_v60 = vrot.slane %v1070_v57, 4 }
 0x1eb   : > { %v1071_v61 = vrot.slane %v1066_v58, 4  ;;  %v1078_v62 = vsel %vm678_vm1, %v1070_v57, %v1077_v12 }
 0x1ec   : > { %v1074_v63 = vsel %vm678_vm1, %v1066_v58, %v1073_v59  ;;  %v1076_v0 = vsel %vm678_vm1, %v1075_v60, %v1058_v53  ;;  %v1082_v1 = vpack.c.bf16 %v1078_v62, %v1078_v62 }
 0x1ed   : > { %v1072_v2 = vsel %vm678_vm1, %v1071_v61, %v1054_v55  ;;  %v1080_v3 = vpack.c.bf16 %v1074_v63, %v1074_v63  ;;  %v1081_v4 = vpack.c.bf16 %v1076_v0, %v1076_v0 }
 0x1ee   : > { %v1079_v6 = vpack.c.bf16 %v1072_v2, %v1072_v2  ;;  %1799 = vmatmul.msk.bf16.vlgmr.msrb.gmra.mxu1 %vm1095_vm3, %v1082_v1 }
 0x1ef   : > { %1797 = vmatmul.msk.bf16.vlgmr.msra.gmra.mxu3 %vm1095_vm3, %v1080_v3  ;;  %1798 = vmatmul.msk.bf16.vlgmr.msrb.gmra.mxu0 %vm1095_vm3, %v1081_v4 }
 0x1f0   : > { %1796 = vmatmul.msk.bf16.vlgmr.msra.gmra.mxu2 %vm1095_vm3, %v1079_v6 }
 0x26b   : > { %v1168_v8 = vpop.f32.mrf.mxu1 }
 0x26c   : > { %v1149_v10 = vpop.f32.mrf.mxu0  ;;  %v1169_v23 = vadd.f32 %v1950_v7, %v1168_v8 }
 0x26d   : > { %v1150_v11 = vadd.f32 %v1950_v7, %v1149_v10 }
 0x26e   : > { %v1181_v17 = vsel %vm1095_vm3, %v1169_v23, -inf }
 0x26f   : > { %v1178_v13 = vsel %vm1095_vm3, %v1150_v11, -inf }
 0x270   : > { %1179 = vmax.xlane.f32.xlu0 %v1178_v13 }
 0x272   : > { %v1130_v14 = vpop.f32.mrf.mxu3 }
 0x273   : > { %v1111_v15 = vpop.f32.mrf.mxu2  ;;  %v1131_v16 = vadd.f32 %v1950_v7, %v1130_v14  ;;  %v1170_v18 = vpop.f32.mrf.mxu1 }
 0x274   : > { %v1112_v19 = vadd.f32 %v1950_v7, %v1111_v15  ;;  %v1151_v20 = vpop.f32.mrf.mxu0 }
 0x275   : > { %v1175_v21 = vsel %vm1095_vm3, %v1131_v16, -inf }
 0x276   : > { %1176 = vmax.xlane.f32.xlu2 %v1175_v21  ;;  %v1172_v22 = vsel %vm1095_vm3, %v1112_v19, -inf }
 0x277   : > { %1173 = vmax.xlane.f32.xlu1 %v1172_v22 }
 0x27a   : > { %v1132_v24 = vpop.f32.mrf.mxu3 }
 0x27b   : > { %v1113_v9 = vpop.f32.mrf.mxu2 }
 0x27e   : > { %1182 = vmax.xlane.f32.xlu2 %v1181_v17 }
 0x2e3   : > { %v1180_v26 = vpop.xlane.xlu0 %1179 }
 0x2e4   : > { %v1186_v27 = vsub.f32 %v1150_v11, %v1180_v26 }
 0x2e6   : > { %v1192_v28 = vmul.f32 1.442695, %v1186_v27 }
 0x2e8   : > { %1958 = vpow2.f32 %v1192_v28 }
 0x2e9   : > { %v1177_v29 = vpop.xlane.xlu2 %1176 }
 0x2ea   : > { %v1185_v30 = vsub.f32 %v1131_v16, %v1177_v29  ;;  %v1174_v31 = vpop.xlane.xlu1 %1173 }
 0x2eb   : > { %v1184_v32 = vsub.f32 %v1112_v19, %v1174_v31 }
 0x2ec   : > { %v1190_v33 = vmul.f32 1.442695, %v1185_v30 }
 0x2ed   : > { %v1188_v34 = vmul.f32 1.442695, %v1184_v32 }
 0x2ee   : > { %v1959_v35 = vpop.eup %1958  ;;  %1960 = vpow2.f32 %v1190_v33 }
 0x2ef   : > { %1962 = vpow2.f32 %v1188_v34  ;;  %v1202_v36 = vsel %vm1095_vm3, %v1959_v35, 0.0 }
 0x2f0   : > { %1203 = vadd.xlane.f32.xlu0 %v1202_v36 }
 0x2f1   : > { %v1183_v37 = vpop.xlane.xlu2 %1182 }
 0x2f2   : > { %v1187_v38 = vsub.f32 %v1169_v23, %v1183_v37 }
 0x2f4   : > { %v1961_v39 = vpop.eup %1960  ;;  %v1194_v40 = vmul.f32 1.442695, %v1187_v38 }
 0x2f5   : > { %v1963_v41 = vpop.eup %1962  ;;  %v1199_v42 = vsel %vm1095_vm3, %v1961_v39, 0.0 }
 0x2f6   : > { %1964 = vpow2.f32 %v1194_v40  ;;  %1200 = vadd.xlane.f32.xlu2 %v1199_v42  ;;  %v1196_v43 = vsel %vm1095_vm3, %v1963_v41, 0.0 }
 0x2f7   : > { %1197 = vadd.xlane.f32.xlu1 %v1196_v43 }
 0x2fc   : > { %v1965_v44 = vpop.eup %1964 }
 0x2fd   : > { %v1205_v45 = vsel %vm1095_vm3, %v1965_v44, 0.0 }
 0x2ff   : > { %1206 = vadd.xlane.f32.xlu1 %v1205_v45 }
 0x363   : > { %v1204_v47 = vpop.xlane.xlu0 %1203 }
 0x364   : > { %1966 = vrcp.f32 %v1204_v47 }
 0x369   : > { %v1201_v48 = vpop.xlane.xlu2 %1200 }
 0x36a   : > { %v1967_v49 = vpop.eup %1966  ;;  %1968 = vrcp.f32 %v1201_v48  ;;  %v1198_v50 = vpop.xlane.xlu1 %1197 }
 0x36b   : > { %v1214_v51 = vmul.f32 %v1967_v49, %v1959_v35  ;;  %1970 = vrcp.f32 %v1198_v50 }
 0x36d   : > { %v1218_v52 = vpack.c.bf16 %v1214_v51, %v1214_v51 }
 0x36f   : > { %1802 = vmatmul.msk.bf16.vlgmr.msra.gmra.mxu0 %vm1095_vm3, %v1218_v52 }
 0x370   : > { %v1969_v53 = vpop.eup %1968 }
 0x371   : > { %v1971_v54 = vpop.eup %1970  ;;  %v1213_v55 = vmul.f32 %v1969_v53, %v1961_v39 }
 0x372   : > { %v1212_v56 = vmul.f32 %v1971_v54, %v1963_v41  ;;  %v1207_v57 = vpop.xlane.xlu1 %1206 }
 0x373   : > { %1972 = vrcp.f32 %v1207_v57  ;;  %v1217_v58 = vpack.c.bf16 %v1213_v55, %v1213_v55 }
 0x374   : > { %v1216_v12 = vpack.c.bf16 %v1212_v56, %v1212_v56 }
 0x375   : > { %1801 = vmatmul.msk.bf16.vlgmr.msrb.gmra.mxu3 %vm1095_vm3, %v1217_v58 }
 0x376   : > { %1800 = vmatmul.msk.bf16.vlgmr.msrb.gmra.mxu2 %vm1095_vm3, %v1216_v12 }
 0x379   : > { %v1973_v59 = vpop.eup %1972 }
 0x37a   : > { %v1215_v60 = vmul.f32 %v1973_v59, %v1965_v44 }
 0x37c   : > { %v1219_v61 = vpack.c.bf16 %v1215_v60, %v1215_v60 }
 0x37e   : > { %1803 = vmatmul.msk.bf16.vlgmr.msra.gmra.mxu1 %vm1095_vm3, %v1219_v61 }
 0x3ec   : > { %v1274_v62 = vpop.f32.mrf.mxu0 }
 0x3ed   : > { %v1297_v0 = vrot.slane %v1274_v62, 4 }
 0x3f4   : > { %v1276_v63 = vpop.f32.mrf.mxu0 }
 0x3f8   : > { %v1255_v1 = vpop.f32.mrf.mxu3 }
 0x3f9   : > { %v1236_v2 = vpop.f32.mrf.mxu2  ;;  %v1311_v3 = vrot.slane %v1255_v1, 4 }
 0x3fa   : > { %v1298_v4 = vsel %vm678_vm1, %v1297_v0, %v1236_v2  ;;  %v1299_v6 = vrot.slane %v1236_v2, 4 }
 0x3fb   : > { %v1304_v7 = vperm.slane %v1298_v4, %v2415_v25  ;;  %v1293_v8 = vpop.f32.mrf.mxu1 }
 0x3fc   : > { %v1300_v10 = vsel %vm678_vm1, %v1274_v62, %v1299_v6  ;;  %v1309_v11 = vrot.slane %v1293_v8, 4  ;;  %v1312_v13 = vsel %vm678_vm1, %v1293_v8, %v1311_v3 }
 0x3fd   : > { %v1308_v14 = vperm.slane %v1300_v10, %v2415_v25  ;;  %v1320_v15 = vperm.slane %v1312_v13, %v2415_v25  ;;  %v1323_v18 = vrot.slane %v1304_v7, 4 }
 0x3fe   : > { %v1310_v16 = vsel %vm678_vm1, %v1309_v11, %v1255_v1 }
 0x3ff   : > { %v1335_v19 = vrot.slane %v1308_v14, 4  ;;  %v1316_v20 = vperm.slane %v1310_v16, %v2415_v25  ;;  %v1333_v21 = vrot.slane %v1320_v15, 4 }
 0x400   : > { %v1257_v22 = vpop.f32.mrf.mxu3 }
 0x401   : > { %v1321_v23 = vrot.slane %v1316_v20, 4  ;;  %v1324_v24 = vsel %vm678_vm1, %v1316_v20, %v1323_v18  ;;  %v1334_v9 = vsel %vm678_vm1, %v1333_v21, %v1308_v14  ;;  %v1336_v17 = vsel %vm678_vm1, %v1320_v15, %v1335_v19  ;;  %v1238_v26 = vpop.f32.mrf.mxu2  ;;  %v1951_v18 = vld [vmem:[%s2755_s12] ss:$0 sm:$0xff] }
 0x402   : > { %v1332_v27 = vperm.slane %v1324_v24, %v2427_v46  ;;  %v1340_v28 = vperm.slane %v1334_v9, %v2427_v46  ;;  %v1344_v29 = vperm.slane %v1336_v17, %v2427_v46  ;;  %v2177_v24 = vmov 32.0  }
 0x403   : > { %v1322_v30 = vsel %vm678_vm1, %v1321_v23, %v1304_v7  ;;  %v1295_v31 = vpop.f32.mrf.mxu1  ;;  %v1847_v7 = vld [vmem:[%s2714_s5] sm:$0xff]  ;;  %1974 = vrcp.f32 %v2177_v24 }
 0x404   : > { %v1328_v32 = vperm.slane %v1322_v30, %v2427_v46  ;;  %v1347_v33 = vrot.slane %v1332_v27, 4  ;;  %v1349_v34 = vrot.slane %v1340_v28, 4  ;;  %v1351_v35 = vrot.slane %v1344_v29, 4 }
 0x406   : > { %v1345_v36 = vrot.slane %v1328_v32, 4  ;;  %v1348_v37 = vsel %vm678_vm1, 0.0, %v1347_v33  ;;  %v1352_v38 = vsel %vm678_vm1, 0.0, %v1351_v35  ;;  %v1364_v40 = vsel %vm678_vm1, %v1351_v35, %v1340_v28  ;;  %v1849_v35 = vld [vmem:[#allocation8] sm:$0xff] }
 0x407   : > { %v1358_v39 = vrot.slane %v1348_v37, 4  ;;  %v1369_v41 = vrot.slane %v1352_v38, 4  ;;  %v1353_v42 = vsel %vm678_vm1, %v1347_v33, %v1328_v32  ;;  %v1350_v43 = vsel %vm678_vm1, 0.0, %v1349_v34 }
 0x408   : > { %v1346_v44 = vsel %vm678_vm1, 0.0, %v1345_v36  ;;  %v1357_v45 = vperm.slane %v1353_v42, %v2415_v25  ;;  %v1368_v47 = vperm.slane %v1364_v40, %v2415_v25  ;;  %v1854_v36 = vld [vmem:[%s2756_s6 + $0x18] sm:$0xff] }
 0x409   : > { %v1359_v48 = vsel %vm678_vm1, %v1358_v39, %v1346_v44  ;;  %v1370_v49 = vsel %vm678_vm1, %v1369_v41, %v1350_v43  ;;  %v1975_v9 = vpop.eup %1974  ;;  %1584 = vmatpush.bf16.msrb.mxu0 %v1854_v36  ;;  %v1853_v39 = vld [vmem:[%s2756_s6 + $0x10] sm:$0xff]  ;;  %v1852_v41 = vld [vmem:[%s2756_s6 + $0x8] sm:$0xff] }
 0x40a   : > { %v1363_v50 = vperm.slane %v1359_v48, %v2415_v25  ;;  %v1374_v51 = vperm.slane %v1370_v49, %v2415_v25  ;;  %v1377_v52 = vrot.slane %v1357_v45, 4  ;;  %v1389_v53 = vrot.slane %v1368_v47, 4  ;;  %v1952_v49 = vld [vmem:[%s2757_s29] ss:$0 sm:$0xff]  ;;  %s2762_s29 = sld [smem:[#allocation29_spill]] }
 0x40b   : > { %v1468_v17 = vmul.f32 32.0, %v1975_v9  ;;  %vm1472_vm7 = vweird.f32 %v1975_v9 }
 0x40c   : > { %v1378_v54 = vsel %vm678_vm1, %v1363_v50, %v1377_v52  ;;  %v1390_v55 = vsel %vm678_vm1, %v1374_v51, %v1389_v53  ;;  %v1375_v56 = vrot.slane %v1363_v50, 4  ;;  %v1387_v57 = vrot.slane %v1374_v51, 4 }
 0x40d   : > { %v1386_v58 = vperm.slane %v1378_v54, %v2427_v46  ;;  %v1398_v12 = vperm.slane %v1390_v55, %v2427_v46  ;;  %v1469_v26 = vsub.f32 1.0, %v1468_v17  ;;  %1585 = vmatpush.bf16.msrb.mxu0 %v1853_v39 }
 0x40e   : > { %v1376_v59 = vsel %vm678_vm1, %v1375_v56, %v1357_v45  ;;  %v1388_v60 = vsel %vm678_vm1, %v1387_v57, %v1368_v47  ;;  %v1851_v56 = vld [vmem:[%s2756_s6] sm:$0xff] }
 0x40f   : > { %v1405_v61 = vrot.slane %v1386_v58, 4  ;;  %v1403_v62 = vrot.slane %v1398_v12, 4  ;;  %v1382_v25 = vperm.slane %v1376_v59, %v2427_v46  ;;  %v1394_v63 = vperm.slane %v1388_v60, %v2427_v46  ;;  %v1848_v46 = vld [vmem:[%s2714_s5 + $0x8] sm:$0xff]  ;;  %v1954_v57 = vld [vmem:[%s2759_s25] ss:$0 sm:$0xff]  ;;  %s1628_s25 = scalar_lea.sflag [#allocation5], %s2356_s13 }
 0x410   : > { %1454 = vmatpush.bf16.msra.mxu2 %v1848_v46  ;;  %v1470_v27 = vmul.f32 %v1975_v9, %v1469_v26  ;;  %s2090_s10 = scalar_lea.hbm %s2762_s29, 16 }
 0x411   : > { %v1406_v0 = vsel %vm678_vm1, %v1398_v12, %v1405_v61  ;;  %v1404_v1 = vsel %vm678_vm1, %v1403_v62, %v1386_v58  ;;  %v1399_v2 = vrot.slane %v1394_v63, 4  ;;  %v1401_v3 = vrot.slane %v1382_v25, 4  ;;  %1586 = vmatpush.bf16.msrb.mxu0 %v1852_v41  ;;  %v1955_v62 = vld [vmem:[%s2760_s8] ss:$0 sm:$0xff] }
 0x412   : > { %1416 = vrot.lane.b32.xlu1 %v1406_v0, %s2174_s14  ;;  %1412 = vrot.lane.b32.xlu0 %v1404_v1, %s2175_s20  ;;  %v1471_v28 = vadd.f32 %v1975_v9, %v1470_v27  ;;  %s1639_s14 = scalar_lea.hbm %s2762_s29, %s1840_s11 }
 0x413   : > { %v1402_v4 = vsel %vm678_vm1, %v1394_v63, %v1401_v3  ;;  %v1400_v6 = vsel %vm678_vm1, %v1399_v2, %v1382_v25  ;;  %s1643_s30 = sshll.u32 %s1639_s14, 4  ;;  %s1644_s30 = int_to_ptr.hbm [resolvable:$true] %s1643_s30 }
 0x414   : > { %1408 = vrot.lane.b32.xlu2 %v1402_v4, %s2176_s27  ;;  %1455 = vmatpush.bf16.msra.mxu2 %v1847_v7  ;;  %v1473_v29 = vsel %vm1472_vm7, %v1975_v9, %v1471_v28  ;;  %s2758_s27 = sld [smem:[#allocation22_spill]]  ;;  %s2084_s9 = sshra.s32 %s1644_s30, 4  ;;  %s2085_s9 = int_to_ptr.hbm [resolvable:$true] %s2084_s9 }
 0x415   : > { %1587 = vmatpush.bf16.msrb.mxu0 %v1851_v56  ;;  %s2086_s12 = scalar_lea.hbm %s2085_s9, 8  ;;  %p2091_p11 = scmp.lt.s32.totalorder %s2085_s9, %s2762_s29 }
 0x416   : > { %p2087_p1 = scmp.ne.s32.totalorder %s2085_s9, %s2086_s12  ;;  %p2092_p12 = scmp.lt.s32.totalorder %s2090_s10, %s2086_s12 }
 0x418   : > { %p2088_p9 = pnand %p2087_p1, %p2329_p4  ;;  %p2093_p13 = por %p2092_p12, %p2091_p11 }
 0x41a   : > { %v1953_v51 = vld [vmem:[%s2758_s27] ss:$0 sm:$0xff]  ;;  %p2089_p10 = pneg %p2088_p9 }
 0x41c   : > { %p2094_p0 = pnand %p2093_p13, %p2089_p10 }
 0x46e   : > { %v1409_v8 = vpop.permute.xlu2 %1408 }
 0x46f   : > { %v1419_v10 = vsel %vm1095_vm3, %v1400_v6, %v1409_v8 }
 0x484   : > { %v1417_v11 = vpop.permute.xlu1 %1416  ;;  %v1413_v13 = vpop.permute.xlu0 %1412 }
 0x485   : > { %v1421_v14 = vsel %vm1420_vm5, %v1419_v10, %v1413_v13 }
 0x486   : > { %v1423_v15 = vsel %vm1422_vm6, %v1421_v14, %v1417_v11 }
 0x487   : > { %v1424_v16 = vpack.c.bf16 %v1423_v15, %v1423_v15 }
 0x489   : > { %1812 = vmatmul.msk.bf16.vlgmr.msra.gmra.mxu2 %vm638_vm0, %v1424_v16 }
 0x50c   : > { %v1457_v19 = vpop.f32.mrf.mxu2 }
 0x50d   : > { %v1458_v20 = vadd.f32 %v1951_v18, %v1457_v19 }
 0x50f   : > { %v1461_v21 = vadd.f32 %v1458_v20, %v2399_v5  ;;  %v1850_v5 = vld [vmem:[#allocation8 + $0x8] sm:$0xff]  ;;  %v1956_v20 = vld [vmem:[%s2761_s28] ss:$0 sm:$0xff] }
 0x510   : > { %1531 = vmatpush.bf16.msra.mxu3 %v1850_v5 }
 0x511   : > { %v1464_v22 = vsel %vm638_vm0, %v1461_v21, 0.0 }
 0x512   : > { %1465 = vadd.xlane.f32.xlu0 %v1464_v22 }
 0x514   : > { %v1459_v23 = vpop.f32.mrf.mxu2  ;;  %1532 = vmatpush.bf16.msra.mxu3 %v1849_v35 }
 0x515   : > { %v1957_v23 = vld [vmem:[%s2764_s16] ss:$0 sm:$0xff] }
 0x585   : > { %v1466_v30 = vpop.xlane.xlu0 %1465 }
 0x586   : > { %v1474_v31 = vmul.f32 %v1473_v29, %v1466_v30 }
 0x588   : > { %v1475_v32 = vsub.f32 %v1461_v21, %v1474_v31 }
 0x58a   : > { %v1476_v33 = vmul.f32 %v1475_v32, %v1475_v32 }
 0x58c   : > { %v1477_v34 = vsel %vm638_vm0, %v1476_v33, 0.0 }
 0x58d   : > { %1478 = vadd.xlane.f32.xlu2 %v1477_v34 }
 0x600   : > { %v1479_v37 = vpop.xlane.xlu2 %1478 }
 0x601   : > { %v1480_v38 = vmul.f32 %v1479_v37, %v1473_v29 }
 0x603   : > { %v1481_v40 = vadd.f32 1e-05, %v1480_v38 }
 0x605   : > { %1976 = vrsqrt.f32 %v1481_v40  ;;  %vm1488_vm9 = vweird.f32 %v1481_v40 }
 0x60b   : > { %v1977_v42 = vpop.eup %1976 }
 0x60c   : > { %v1483_v43 = vmul.f32 %v1977_v42, %v1481_v40  ;;  %vm1489_vm8 = vweird.f32 %v1977_v42 }
 0x60d   : > { %vm1490_vm10 = vmor %vm1488_vm9, %vm1489_vm8 }
 0x60e   : > { %v1484_v44 = vmul.f32 %v1977_v42, %v1483_v43 }
 0x610   : > { %v1485_v45 = vmul.f32 0.5, %v1484_v44 }
 0x612   : > { %v1486_v47 = vsub.f32 1.5, %v1485_v45 }
 0x614   : > { %v1487_v48 = vmul.f32 %v1977_v42, %v1486_v47 }
 0x616   : > { %v1491_v50 = vsel %vm1490_vm10, %v1977_v42, %v1487_v48 }
 0x617   : > { %v1492_v52 = vmul.f32 %v1491_v50, %v1475_v32 }
 0x619   : > { %v1496_v53 = vmul.f32 %v1952_v49, %v1492_v52 }
 0x61b   : > { %v1500_v54 = vadd.f32 %v1953_v51, %v1496_v53 }
 0x61d   : > { %v1501_v55 = vpack.c.bf16 %v1500_v54, %v1500_v54 }
 0x61f   : > { %1821 = vmatmul.msk.bf16.vlgmr.msra.gmra.mxu3 %vm638_vm0, %v1501_v55 }
 0x6a2   : > { %v1534_v58 = vpop.f32.mrf.mxu3 }
 0x6a3   : > { %v1535_v12 = vadd.f32 %v1954_v57, %v1534_v58 }
 0x6a5   : > { %v1538_v59 = vmax.f32 %v1535_v12, 0.0 }
 0x6a7   : > { %v1539_v60 = vpack.c.bf16 %v1538_v59, %v1538_v59 }
 0x6a9   : > { %1838 = vmatmul.msk.bf16.vlgmr.msrb.gmra.mxu0 %vm1576_vm11, %v1539_v60 }
 0x6aa   : > { %v1536_v61 = vpop.f32.mrf.mxu3 }
 0x726   : > { %v1589_v25 = vpop.f32.mrf.mxu0 }
 0x727   : > { %v1590_v63 = vadd.f32 %v1955_v62, %v1589_v25 }
 0x729   : > { %v1593_v0 = vadd.f32 %v1590_v63, %v1500_v54 }
 0x72b   : > { %v1596_v1 = vsel %vm638_vm0, %v1593_v0, 0.0 }
 0x72c   : > { %1597 = vadd.xlane.f32.xlu1 %v1596_v1 }
 0x72e   : > { %v1591_v2 = vpop.f32.mrf.mxu0 }
 0x79f   : > { %v1598_v3 = vpop.xlane.xlu1 %1597 }
 0x7a0   : > { %v1599_v4 = vmul.f32 %v1598_v3, %v1473_v29 }
 0x7a2   : > { %v1600_v6 = vsub.f32 %v1593_v0, %v1599_v4 }
 0x7a4   : > { %v1601_v46 = vmul.f32 %v1600_v6, %v1600_v6 }
 0x7a6   : > { %v1602_v7 = vsel %vm638_vm0, %v1601_v46, 0.0 }
 0x7a7   : > { %1603 = vadd.xlane.f32.xlu0 %v1602_v7 }
 0x81a   : > { %v1604_v8 = vpop.xlane.xlu0 %1603 }
 0x81b   : > { %v1605_v10 = vmul.f32 %v1604_v8, %v1473_v29 }
 0x81d   : > { %v1606_v11 = vadd.f32 1e-05, %v1605_v10 }
 0x81f   : > { %1978 = vrsqrt.f32 %v1606_v11  ;;  %vm1613_vm13 = vweird.f32 %v1606_v11 }
 0x825   : > { %v1979_v13 = vpop.eup %1978 }
 0x826   : > { %v1608_v14 = vmul.f32 %v1979_v13, %v1606_v11  ;;  %vm1614_vm12 = vweird.f32 %v1979_v13 }
 0x827   : > { %vm1615_vm14 = vmor %vm1613_vm13, %vm1614_vm12 }
 0x828   : > { %v1609_v15 = vmul.f32 %v1979_v13, %v1608_v14 }
 0x82a   : > { %v1610_v16 = vmul.f32 0.5, %v1609_v15 }
 0x82c   : > { %v1611_v18 = vsub.f32 1.5, %v1610_v16 }
 0x82e   : > { %v1612_v19 = vmul.f32 %v1979_v13, %v1611_v18 }
 0x830   : > { %v1616_v21 = vsel %vm1615_vm14, %v1979_v13, %v1612_v19 }
 0x831   : > { %v1617_v22 = vmul.f32 %v1616_v21, %v1600_v6 }
 0x833   : > { %v1621_v24 = vmul.f32 %v1956_v20, %v1617_v22 }
 0x835   : > { %v1625_v9 = vadd.f32 %v1957_v23, %v1621_v24 }
 0x837   : > { %1626 = vst.msk [vmem:[%s597_s21] sm:$0xff] %vm638_vm0, %v1625_v9 }
 0x838   : > { %2097 = shalt.err (!%p2094_p0)
}
 0x839   : > { %1863 = dma.vmem_to_hbm [thread:$0]  (%p2329_p4), %s1642_s17, 128, %s1644_s30, %s1628_s25  }
 0x83a PF: > { %s2765_s13 = sld [smem:[#allocation14_spill]]  ;;  %p1877_p2 = pnand %p1770_p6, %p2337_p7 }
 0x83c   : > { %p1878_p5 = pneg %p1877_p2 }
 0x840   : > { %s1655_s7 = sand.u32 1, %s2765_s13  }
 0x841   : > { %s1656_s26 = scalar_lea.sflag [#allocation5], %s1655_s7 }
 0x842   : > { %2135 = dma.done.wait (%p1878_p5), %s1656_s26, 128  }
 0x843   : > { %2137 = vsyncadd (%p1878_p5), %s1656_s26, 4294967168  ;;  %s34_s23 = sadd.s32 1, %s2160_s23   ;;  %s2767_s14 = sld [smem:[#allocation15_spill]] }
 0x844   : > { %p31_p8 = scmp.ge.s32.totalorder %s34_s23, 4   ;;  %s2768_s20 = sld [smem:[#allocation18_spill]] }
 0x845   : > { %s2769_s27 = sld [smem:[#allocation16_spill]]  ;;  %s2770_s18 = smov %s2144_s19 }
 0x846   : > { %s2772_s21 = smov %s2156_s22 }
 0x847   :  { %33 = sbr.rel (!%p31_p8) target bundleno = 19 (0x13), region = 150 }
 0x849   : > { %s2771_s19 = smov %s2767_s14 }
 0x84b   : > { %s2773_s22 = smov %s2769_s27 }
 0x84c   :  { %1662 = vsyncpa [#allocation4], 1 }
 0x84d   :  { %1664 = vsyncpa [#allocation4 + $0x1], 1 }
 0x84e   :  { %1665 = vsyncpa [#allocation7], 1 }
 0x84f   :  { %1667 = vsyncpa [#allocation7 + $0x1], 1 }
 0x850   :  { %1668 = vsyncpa [#allocation5], 1 }
 0x851   :  { %1670 = vsyncpa [#allocation5 + $0x1], 1 }

// kernel: tpu_custom_call.1
= control target key start
LH: loop header
LB: loop body
LE: loop exit
PB: predicated region body
PF: predicated region fallthrough
CT: control target
= control target key end

     0   :  { %s2709_s0 = inlined_call_operand.vmem [shape: f32[2,8,32], index: 0, kind: input, shape index: {}]   ;;  %s2710_s1 = inlined_call_operand.hbm [shape: bf16[2,8,32], index: 1, kind: input, shape index: {}]   ;;  %s2711_s2 = inlined_call_operand.hbm [shape: f32[2,1,8], index: 2, kind: input, shape index: {}]   ;;  %s2712_s3 = inlined_call_operand.vmem [shape: bf16[32,96], index: 3, kind: input, shape index: {}]   ;;  %s2713_s4 = inlined_call_operand.vmem [shape: f32[1,96], index: 4, kind: input, shape index: {}]   ;;  %s2714_s5 = inlined_call_operand.vmem [shape: bf16[32,32], index: 5, kind: input, shape index: {}]   ;;  %s2715_s6 = inlined_call_operand.vmem [shape: f32[1,32], index: 6, kind: input, shape index: {}]   ;;  %s2716_s7 = inlined_call_operand.vmem [shape: f32[1,32], index: 7, kind: input, shape index: {}]   ;;  %s2717_s8 = inlined_call_operand.vmem [shape: f32[1,32], index: 8, kind: input, shape index: {}]   ;;  %s2718_s9 = inlined_call_operand.hbm [shape: bf16[32,64], index: 9, kind: input, shape index: {}]   ;;  %s2719_s10 = inlined_call_operand.vmem [shape: f32[1,64], index: 10, kind: input, shape index: {}]   ;;  %s2720_s11 = inlined_call_operand.vmem [shape: bf16[64,32], index: 11, kind: input, shape index: {}]   ;;  %s2721_s12 = inlined_call_operand.vmem [shape: f32[1,32], index: 12, kind: input, shape index: {}]   ;;  %s2722_s13 = inlined_call_operand.vmem [shape: f32[1,32], index: 13, kind: input, shape index: {}]   ;;  %s2723_s14 = inlined_call_operand.vmem [shape: f32[1,32], index: 14, kind: input, shape index: {}]   ;;  %s2724_s15 = inlined_call_operand.hbm [shape: f32[2,8,32], index: 15, kind: output, shape index: {}]  }
   0x1   :  { %2733 = sst [smem:[#allocation20_spill]] %s2715_s6 }
   0x2   :  { %2734 = sst [smem:[#allocation21_spill]] %s2716_s7 }
   0x3   :  { %2735 = sst [smem:[#allocation22_spill]] %s2717_s8 }
   0x4   :  { %2736 = sst [smem:[#allocation23_spill]] %s2718_s9 }
   0x5   :  { %2737 = sst [smem:[#allocation24_spill]] %s2719_s10 }
   0x6   :  { %2738 = sst [smem:[#allocation25_spill]] %s2720_s11 }
   0x7   :  { %2739 = sst [smem:[#allocation26_spill]] %s2721_s12 }
   0x8   :  { %2740 = sst [smem:[#allocation27_spill]] %s2722_s13 }
   0x9   :  { %2741 = sst [smem:[#allocation28_spill]] %s2723_s14 }
   0xa   :  { %2742 = sst [smem:[#allocation29_spill]] %s2724_s15 }
   0xb   :  { %20 = vsyncpa [#allocation4], 0 }
   0xc   :  { %22 = vsyncpa [#allocation4 + $0x1], 0 }
   0xd   :  { %23 = vsyncpa [#allocation7], 0 }
   0xe   :  { %25 = vsyncpa [#allocation7 + $0x1], 0 }
   0xf   :  { %26 = vsyncpa [#allocation5], 0 }
  0x10   :  { %28 = vsyncpa [#allocation5 + $0x1], 0  ;;  %s2258_s18 = smov 0   ;;  %s2260_s19 = smov 0  }
  0x11   :  { %s2262_s20 = smov 0   ;;  %s2264_s21 = smov 0  }
  0x12   :  { %s2266_s22 = smov 0   ;;  %s2268_s23 = smov 0  }
  0x13 LB: > { %2743 = sst [smem:[#allocation14_spill]] %s2140_s18  ;;  %s2289_s24 = sadd.s32 4294967295, %s2160_s23   ;;  %s2160_s23 = sphi %s2268_s23, %s34_s23   ;;  %s2156_s22 = sphi %s2266_s22, %s2773_s22   ;;  %s2152_s21 = sphi %s2264_s21, %s2772_s21   ;;  %s2148_s20 = sphi %s2262_s20, %s2768_s20   ;;  %s2144_s19 = sphi %s2260_s19, %s2771_s19   ;;  %s2140_s18 = sphi %s2258_s18, %s2770_s18  }
  0x14   : > { %2744 = sst [smem:[#allocation15_spill]] %s2148_s20  ;;  %p1768_p0 = scmp.ge.s32.totalorder %s2160_s23, 1 }
  0x15   : > { %p95_p1 = scmp.eq.s32.totalorder %s2289_s24, 0  ;;  %p411_p2 = scmp.lt.s32.totalorder %s2160_s23, 3 }
  0x16   : > { %s2745_s9 = sld [smem:[#allocation23_spill]]  ;;  %s2162_s29 = smov [#allocation8]  }
  0x17   : > { %p2297_p3 = pnand %p1768_p0, %p411_p2  ;;  %s442_s30 = sshll.u32 %s2162_s29, 4  ;;  %s443_s30 = int_to_ptr.vmem [resolvable:$true] %s442_s30 }
  0x18   : > { %p1770_p6 = scmp.ge.s32.totalorder %s2160_s23, 2  ;;  %s2163_s16 = smov 64  }
  0x19   : > { %p1865_p4 = pneg %p2297_p3  ;;  %s2164_s17 = smov 4  }
  0x1a   : > { %s1767_s25 = sadd.s32 4294967294, %s2160_s23   ;;  %s46_s26 = sadd.s32 1, %s2156_s22 }
  0x1b   : > { %p1866_p5 = pnand %p1865_p4, %p95_p1  ;;  %p48_p7 = scmp.ge.s32.totalorder %s46_s26, 2 }
  0x1c   : > { %s440_s27 = sshll.u32 %s2745_s9, 4  ;;  %s81_s9 = sadd.s32 1, %s2148_s20  ;;  %s441_s27 = int_to_ptr.hbm [resolvable:$true] %s440_s27 }
  0x1d   : > { %1868 = dma.hbm_to_vmem [thread:$0]  (!%p1866_p5), %s441_s27, 256, %s443_s30, [#allocation7], %s2163_s16, %s2163_s16, %s2164_s17  }
  0x1e   : > { %p88_p8 = scmp.ne.s32.totalorder %s2148_s20, %s2144_s19  ;;  %p89_p9 = scmp.eq.s32.totalorder %s2160_s23, 0 }
  0x1f   : > { %p94_p10 = scmp.ne.s32.totalorder %s2144_s19, %s2140_s18  ;;  %s2775_s26 = smov (%p48_p7, %s46_s26), 0 }
  0x20   : > { %2747 = sst [smem:[#allocation16_spill]] %s2775_s26  ;;  %p2316_p11 = por %p89_p9, %p88_p8 }
  0x21   : > { %p2322_p12 = por %p95_p1, %p94_p10  ;;  %s78_s30 = ssub.s32 %s2156_s22, %s2775_s26 }
  0x22   : > { %p398_p13 = scmp.eq.s32.totalorder %s2289_s24, 1  ;;  %p79_p0 = scmp.eq.s32.totalorder %s78_s30, 0 }
  0x23   : > { %p404_p2 = scmp.eq.s32.totalorder %s1767_s25, 1  ;;  %p1881_p5 = scmp.lt.s32.totalorder %s2160_s23, 2 }
  0x24   : > { %p2329_p4 = por %p398_p13, %p88_p8  ;;  %s481_s14 = sand.u32 1, %s2148_s20  }
  0x25   : > { %s2335_s17 = scalar_select %p79_p0, %s2148_s20, %s81_s9  }
  0x26   : > { %s2750_s16 = scalar_select %p2329_p4, 1, 0 }
  0x27   : > { %2752 = sst [smem:[#allocation18_spill]] %s2335_s17  ;;  %p2337_p7 = por %p404_p2, %p94_p10 }
  0x28   : > { %2751 = sst [smem:[#allocation17_spill]] %s2750_s16  ;;  %s1771_s15 = sshll.u32 %s481_s14, 2 }
  0x29   : > { %s2753_s18 = scalar_select %p2337_p7, 1, 0 }
  0x2a   : > { %s1772_s26 = sshll.u32 %s2156_s22, 2  ;;  %s485_s25 = scalar_lea.vmem [#allocation3], %s1771_s15 }
  0x2b   : > { %2754 = sst [smem:[#allocation19_spill]] %s2753_s18  ;;  %s489_s30 = scalar_lea.hbm %s2710_s1, %s1772_s26 }
  0x2c   : > { %s493_s10 = sshll.u32 %s485_s25, 4  ;;  %s491_s8 = sshll.u32 %s489_s30, 4  ;;  %s494_s10 = int_to_ptr.vmem [resolvable:$true] %s493_s10  ;;  %s492_s8 = int_to_ptr.hbm [resolvable:$true] %s491_s8 }
  0x2d   : > { %p1870_p8 = pnand %p1881_p5, %p2316_p11  ;;  %s500_s9 = sand.u32 1, %s2160_s23  }
  0x2e   : > { %s482_s17 = scalar_lea.sflag [#allocation4], %s481_s14  ;;  %s506_s20 = scalar_lea.hbm %s2711_s2, %s2156_s22 }
  0x2f   : > { %1872 = dma.hbm_to_vmem [thread:$0]  (!%p1870_p8), %s492_s8, 64, %s494_s10, %s482_s17  }
  0x30   : > { %s503_s18 = scalar_lea.vmem [#allocation6], %s481_s14  ;;  %s508_s6 = sshll.u32 %s506_s20, 4  ;;  %s509_s6 = int_to_ptr.hbm [resolvable:$true] %s508_s6 }
  0x31   : > { %s510_s11 = sshll.u32 %s503_s18, 4  ;;  %s501_s12 = scalar_lea.sflag [#allocation7], %s500_s9  ;;  %s511_s11 = int_to_ptr.vmem [resolvable:$true] %s510_s11 }
  0x32   : > { %1875 = dma.hbm_to_vmem [thread:$0]  (!%p1870_p8), %s509_s6, 16, %s511_s11, %s501_s12  }
  0x33   : > { %519 = sbr.rel (%p2297_p3) target bundleno = 2106 (0x83a), region = 80  ;;  %s2356_s13 = sand.u32 (!%p2297_p3), 1, %s2144_s19  }
  0x34   : > { %s1774_s8 = sshll.u32 (!%p2297_p3), %s2356_s13, 2  ;;  %s522_s10 = scalar_lea.sflag (!%p2297_p3), [#allocation4], %s2356_s13 }
  0x35   : > { %s2360_s7 = scalar_lea.vmem (!%p2297_p3), [#allocation3], %s1774_s8 }
  0x38   : > { %2123 = dma.done.wait (%p2322_p12), %s522_s10, 64  }
  0x39   : > { %2125 = vsyncadd (%p2322_p12), %s522_s10, 4294967232  ;;  %s531_s6 = sand.u32 1, %s2289_s24   ;;  %s534_s14 = scalar_lea.vmem [#allocation6], %s2356_s13 }
  0x3a   : > { %s532_s11 = scalar_lea.sflag [#allocation7], %s531_s6 }
  0x3b   : > { %2127 = dma.done.wait (%p2322_p12), %s532_s11, 16  }
  0x3c   : > { %2129 = vsyncadd (%p2322_p12), %s532_s11, 4294967280 }
  0x3d   : > { %2131 = dma.done.wait (%p95_p1), [#allocation7], 256  }
  0x3e   : > { %2133 = vsyncadd (%p95_p1), [#allocation7], 4294967040  ;;  %v1844_v0 = vld [vmem:[%s2712_s3 + $0x8] sm:$0xff]  ;;  %s2165_s20 = smov 96   ;;  %v1843_v1 = vld [vmem:[%s2712_s3] sm:$0xff]  ;;  %p598_p3 = scmp.lt.s32.totalorder %s2152_s21, 1 }
  0x3f   : > { %631 = vrot.lane.b32.xlu0 %v1844_v0, %s2165_s20  ;;  %v1846_v2 = vld [vmem:[%s2712_s3 + $0x8] sm:$0xff]  ;;  %v1948_v3 = vld [vmem:[%s2713_s4] ss:$0 sm:$0xff]  ;;  %vm638_vm0 = vcmask 261120   ;;  %s2166_s6 = smov 104   ;;  %s2167_s11 = smov 112  }
  0x40   : > { %s599_s29 = scalar_select %p598_p3, %s2152_s21, 1  ;;  %950 = vmatpush.bf16.msra.mxu1 %v1846_v2  ;;  %v1845_v4 = vld [vmem:[%s2712_s3] sm:$0xff]  ;;  %635 = vrot.lane.b32.xlu1 %v1948_v3, %s2165_s20  ;;  %v2172_v20 = vmov 1983009808   ;;  %vm678_vm1 = vcmask 1047556   ;;  %vm910_vm2 = vcmask 60416  }
  0x41   : > { %v611_v9 = vld [vmem:[%s2360_s7] sm:$0xf]  ;;  %s2168_s15 = smov 120   ;;  %s2169_s18 = smov 72   ;;  %v683_v21 = vunpack.c.l.s4 %v2172_v20  ;;  %v2173_v34 = vmov 1934713408  }
  0x42   : > { %s1777_s27 = sshll.u32 %s599_s29, 3  ;;  %v1949_v16 = vld [vmem:[%s2713_s4] ss:$0 sm:$0xff]  ;;  %s2170_s26 = smov 88   ;;  %v731_v35 = vunpack.c.l.s4 %v2173_v34  ;;  %vm1095_vm3 = vcmask 64512   ;;  %vm1223_vm4 = vcmask 1043456  }
  0x43   : > { %s604_s17 = scalar_lea.vmem %s2709_s0, %s1777_s27  ;;  %s2171_s29 = smov 80   ;;  %v2415_v25 = vunpack.c.0.s8 %v683_v21  ;;  %vm1420_vm5 = vcmask 130048   ;;  %vm1422_vm6 = vcmask 195584   ;;  %vm1576_vm11 = vcmask 523264  }
  0x44   : > { %v2399_v5 = vld [vmem:[%s604_s17] sm:$0xff]  ;;  %951 = vmatpush.bf16.msra.mxu1 %v1845_v4  ;;  %v2427_v46 = vunpack.c.0.s8 %v731_v35  ;;  %s2176_s27 = smov 8   ;;  %s2755_s12 = sld [smem:[#allocation20_spill]] }
  0x45   : > { %v919_v6 = vpack.c.bf16 %v2399_v5, %v2399_v5  ;;  %s2759_s25 = sld [smem:[#allocation24_spill]]  ;;  %s1776_s10 = sshll.u32 %s2356_s13, 3 }
  0x46   : > { %s2760_s8 = sld [smem:[#allocation26_spill]] }
  0x47   : > { %629 = vrot.lane.b32.xlu0 %v1843_v1, %s2165_s20  ;;  %1795 = vmatmul.msk.bf16.vlgmr.msra.gmra.mxu1 %vm638_vm0, %v919_v6  ;;  %s2761_s28 = sld [smem:[#allocation27_spill]] }
  0x48   : > { %s2764_s16 = sld [smem:[#allocation28_spill]] }
  0xb1   : > { %v632_v7 = vpop.permute.xlu0 %631 }
  0xb2   : > { %648 = vmatpush.bf16.msra.mxu0 %v632_v7  ;;  %v636_v12 = vpop.permute.xlu1 %635 }
  0xb9   : > { %v630_v8 = vpop.permute.xlu0 %629 }
  0xba   : > { %649 = vmatpush.bf16.msra.mxu0 %v630_v8 }
  0xbd   : > { %1786 = vmatmul.msk.bf16.vlgmr.msra.gmra.mxu0 %vm638_vm0, %v611_v9 }
  0xc4   : > { %v953_v10 = vpop.f32.mrf.mxu1 }
  0xc5   : > { %v2410_v17 = vadd.f32 %v1949_v16, %v953_v10 }
  0xc7   : > { %v971_v53 = vrot.slane %v2410_v17, 4 }
  0xcc   : > { %v955_v11 = vpop.f32.mrf.mxu1 }
 0x13a   : > { %v651_v13 = vpop.f32.mrf.mxu0 }
 0x13b   : > { %v652_v14 = vadd.f32 %v651_v13, %v636_v12 }
 0x13d   : > { %662 = vrot.lane.b32.xlu0 %v652_v14, %s2166_s6  ;;  %659 = vrot.lane.b32.xlu2 %v652_v14, %s2167_s11  ;;  %v680_v23 = vrot.slane %v652_v14, 4 }
 0x13e   : > { %656 = vrot.lane.b32.xlu1 %v652_v14, %s2168_s15 }
 0x142   : > { %v653_v15 = vpop.f32.mrf.mxu0 }
 0x145   : > { %674 = vrot.lane.b32.xlu0 %v652_v14, %s2169_s18  ;;  %665 = vrot.lane.b32.xlu2 %v652_v14, %s2165_s20  ;;  %s2175_s20 = smov 16  }
 0x146   : > { %668 = vrot.lane.b32.xlu1 %v652_v14, %s2170_s26 }
 0x14d   : > { %671 = vrot.lane.b32.xlu2 %v652_v14, %s2171_s29  ;;  %965 = vrot.lane.b32.xlu0 %v2410_v17, %s2166_s6  ;;  %s2756_s6 = sld [smem:[#allocation25_spill]] }
 0x14e   : > { %959 = vrot.lane.b32.xlu1 %v2410_v17, %s2168_s15  ;;  %s2757_s29 = sld [smem:[#allocation21_spill]] }
 0x155   : > { %962 = vrot.lane.b32.xlu2 %v2410_v17, %s2167_s11  ;;  %s1840_s11 = sshll.u32 %s2152_s21, 3  ;;  %s597_s21 = scalar_lea.vmem [#allocation9], %s1776_s10 }
 0x156   : > { %s1641_s17 = sshll.u32 %s597_s21, 4  ;;  %s1642_s17 = int_to_ptr.vmem [resolvable:$true] %s1641_s17 }
 0x197   : > { %v660_v18 = vpop.permute.xlu2 %659 }
 0x198   : > { %v677_v22 = vrot.slane %v660_v18, 4  ;;  %v681_v27 = vsel %vm678_vm1, %v660_v18, %v680_v23 }
 0x199   : > { %v689_v33 = vperm.slane %v681_v27, %v2415_v25 }
 0x19a   : > { %v679_v26 = vsel %vm678_vm1, %v677_v22, %v652_v14 }
 0x19b   : > { %v685_v30 = vperm.slane %v679_v26, %v2415_v25  ;;  %v740_v44 = vrot.slane %v689_v33, 4 }
 0x19d   : > { %v728_v42 = vrot.slane %v685_v30, 4 }
 0x19f   : > { %v666_v19 = vpop.permute.xlu2 %665 }
 0x1a0   : > { %v704_v38 = vrot.slane %v666_v19, 4 }
 0x1a7   : > { %v672_v24 = vpop.permute.xlu2 %671 }
 0x1a8   : > { %v702_v28 = vrot.slane %v672_v24, 4  ;;  %v705_v45 = vsel %vm678_vm1, %v672_v24, %v704_v38 }
 0x1a9   : > { %v713_v55 = vperm.slane %v705_v45, %v2415_v25 }
 0x1aa   : > { %v703_v39 = vsel %vm678_vm1, %v702_v28, %v666_v19 }
 0x1ab   : > { %v709_v48 = vperm.slane %v703_v39, %v2415_v25  ;;  %v764_v8 = vrot.slane %v713_v55, 4 }
 0x1ad   : > { %v752_v0 = vrot.slane %v709_v48, 4 }
 0x1af   : > { %v663_v29 = vpop.permute.xlu0 %662  ;;  %v963_v51 = vpop.permute.xlu2 %962 }
 0x1b0   : > { %v690_v31 = vrot.slane %v663_v29, 4  ;;  %v657_v32 = vpop.permute.xlu1 %656  ;;  %v968_v61 = vrot.slane %v963_v51, 4  ;;  %v972_v62 = vsel %vm678_vm1, %v963_v51, %v971_v53 }
 0x1b1   : > { %v692_v36 = vrot.slane %v657_v32, 4  ;;  %v2445_v9 = vperm.slane %v972_v62, %v2415_v25 }
 0x1b2   : > { %v691_v37 = vsel %vm678_vm1, %v690_v31, %v657_v32  ;;  %v2450_v12 = vsel %vm678_vm1, %v968_v61, %v2410_v17 }
 0x1b3   : > { %v693_v40 = vsel %vm678_vm1, %v663_v29, %v692_v36  ;;  %v697_v41 = vperm.slane %v691_v37, %v2415_v25 }
 0x1b4   : > { %v701_v43 = vperm.slane %v693_v40, %v2415_v25 }
 0x1b5   : > { %v726_v47 = vrot.slane %v697_v41, 4  ;;  %v729_v49 = vsel %vm678_vm1, %v697_v41, %v728_v42 }
 0x1b6   : > { %v738_v50 = vrot.slane %v701_v43, 4  ;;  %v741_v52 = vsel %vm678_vm1, %v701_v43, %v740_v44  ;;  %v737_v60 = vperm.slane %v729_v49, %v2427_v46 }
 0x1b7   : > { %v675_v54 = vpop.permute.xlu0 %674  ;;  %v727_v56 = vsel %vm678_vm1, %v726_v47, %v685_v30  ;;  %v749_v1 = vperm.slane %v741_v52, %v2427_v46 }
 0x1b8   : > { %v739_v57 = vsel %vm678_vm1, %v738_v50, %v689_v33  ;;  %v714_v58 = vrot.slane %v675_v54, 4  ;;  %v669_v59 = vpop.permute.xlu1 %668  ;;  %v733_v3 = vperm.slane %v727_v56, %v2427_v46  ;;  %v780_v11 = vrot.slane %v737_v60, 4 }
 0x1b9   : > { %v716_v63 = vrot.slane %v669_v59, 4  ;;  %v745_v4 = vperm.slane %v739_v57, %v2427_v46  ;;  %v788_v15 = vrot.slane %v749_v1, 4 }
 0x1ba   : > { %v715_v2 = vsel %vm678_vm1, %v714_v58, %v669_v59  ;;  %v776_v20 = vrot.slane %v733_v3, 4 }
 0x1bb   : > { %v717_v6 = vsel %vm678_vm1, %v675_v54, %v716_v63  ;;  %v721_v7 = vperm.slane %v715_v2, %v2415_v25  ;;  %v784_v21 = vrot.slane %v745_v4, 4 }
 0x1bc   : > { %v725_v10 = vperm.slane %v717_v6, %v2415_v25 }
 0x1bd   : > { %v750_v13 = vrot.slane %v721_v7, 4  ;;  %v753_v14 = vsel %vm678_vm1, %v721_v7, %v752_v0 }
 0x1be   : > { %v761_v16 = vperm.slane %v753_v14, %v2427_v46  ;;  %v762_v18 = vrot.slane %v725_v10, 4  ;;  %v765_v19 = vsel %vm678_vm1, %v725_v10, %v764_v8 }
 0x1bf   : > { %v751_v22 = vsel %vm678_vm1, %v750_v13, %v709_v48  ;;  %v773_v23 = vperm.slane %v765_v19, %v2427_v46 }
 0x1c0   : > { %v757_v24 = vperm.slane %v751_v22, %v2427_v46  ;;  %v763_v17 = vsel %vm678_vm1, %v762_v18, %v713_v55  ;;  %v778_v26 = vrot.slane %v761_v16, 4  ;;  %v781_v27 = vsel %vm678_vm1, %v761_v16, %v780_v11 }
 0x1c1   : > { %v769_v28 = vperm.slane %v763_v17, %v2427_v46  ;;  %v786_v29 = vrot.slane %v773_v23, 4  ;;  %v789_v30 = vsel %vm678_vm1, %v773_v23, %v788_v15  ;;  %v802_v31 = vrot.slane %v781_v27, 4 }
 0x1c2   : > { %v774_v32 = vrot.slane %v757_v24, 4  ;;  %v777_v33 = vsel %vm678_vm1, %v757_v24, %v776_v20  ;;  %v779_v34 = vsel %vm678_vm1, %v778_v26, %v737_v60  ;;  %v826_v35 = vrot.slane %v789_v30, 4 }
 0x1c3   : > { %v782_v36 = vrot.slane %v769_v28, 4  ;;  %v785_v37 = vsel %vm678_vm1, %v769_v28, %v784_v21  ;;  %v787_v38 = vsel %vm678_vm1, %v786_v29, %v749_v1  ;;  %v790_v39 = vrot.slane %v779_v34, 4 }
 0x1c4   : > { %v775_v40 = vsel %vm678_vm1, %v774_v32, %v733_v3  ;;  %v803_v41 = vsel %vm678_vm1, %v802_v31, %v777_v33  ;;  %v804_v42 = vrot.slane %v777_v33, 4  ;;  %v814_v43 = vrot.slane %v787_v38, 4 }
 0x1c5   : > { %v783_v44 = vsel %vm678_vm1, %v782_v36, %v745_v4  ;;  %v791_v45 = vsel %vm678_vm1, %v790_v39, %v775_v40  ;;  %v792_v47 = vrot.slane %v775_v40, 4  ;;  %v809_v48 = vperm.slane %v803_v41, %v2415_v25  ;;  %v966_v41 = vpop.permute.xlu0 %965 }
 0x1c6   : > { %v797_v49 = vperm.slane %v791_v45, %v2415_v25  ;;  %v805_v50 = vsel %vm678_vm1, %v781_v27, %v804_v42  ;;  %v815_v51 = vsel %vm678_vm1, %v814_v43, %v783_v44  ;;  %v816_v52 = vrot.slane %v783_v44, 4  ;;  %v960_v42 = vpop.permute.xlu1 %959 }
 0x1c7   : > { %v793_v53 = vsel %vm678_vm1, %v779_v34, %v792_v47  ;;  %v813_v54 = vperm.slane %v805_v50, %v2415_v25  ;;  %v821_v55 = vperm.slane %v815_v51, %v2415_v25  ;;  %v827_v56 = vsel %vm678_vm1, %v826_v35, %v785_v37 }
 0x1c8   : > { %v801_v57 = vperm.slane %v793_v53, %v2415_v25  ;;  %v817_v58 = vsel %vm678_vm1, %v787_v38, %v816_v52  ;;  %v828_v59 = vrot.slane %v785_v37, 4  ;;  %v833_v60 = vperm.slane %v827_v56, %v2415_v25 }
 0x1c9   : > { %v825_v61 = vperm.slane %v817_v58, %v2415_v25  ;;  %v838_v62 = vrot.slane %v809_v48, 4  ;;  %v840_v63 = vrot.slane %v797_v49, 4  ;;  %v850_v0 = vrot.slane %v813_v54, 4 }
 0x1ca   : > { %v829_v1 = vsel %vm678_vm1, %v789_v30, %v828_v59  ;;  %v852_v2 = vrot.slane %v801_v57, 4  ;;  %v862_v3 = vrot.slane %v833_v60, 4  ;;  %v864_v4 = vrot.slane %v821_v55, 4 }
 0x1cb   : > { %v837_v6 = vperm.slane %v829_v1, %v2415_v25  ;;  %v839_v7 = vsel %vm678_vm1, %v838_v62, %v797_v49  ;;  %v841_v8 = vsel %vm678_vm1, %v809_v48, %v840_v63  ;;  %v851_v10 = vsel %vm678_vm1, %v850_v0, %v801_v57 }
 0x1cc   : > { %v845_v11 = vperm.slane %v839_v7, %v2427_v46  ;;  %v849_v13 = vperm.slane %v841_v8, %v2427_v46  ;;  %v853_v14 = vsel %vm678_vm1, %v813_v54, %v852_v2  ;;  %v857_v15 = vperm.slane %v851_v10, %v2427_v46 }
 0x1cd   : > { %v861_v16 = vperm.slane %v853_v14, %v2427_v46  ;;  %v863_v18 = vsel %vm678_vm1, %v862_v3, %v821_v55  ;;  %v865_v19 = vsel %vm678_vm1, %v833_v60, %v864_v4  ;;  %v874_v20 = vrot.slane %v837_v6, 4 }
 0x1ce   : > { %v869_v21 = vperm.slane %v863_v18, %v2427_v46  ;;  %v873_v22 = vperm.slane %v865_v19, %v2427_v46  ;;  %v876_v23 = vrot.slane %v825_v61, 4  ;;  %v888_v24 = vrot.slane %v845_v11, 4 }
 0x1cf   : > { %v875_v17 = vsel %vm678_vm1, %v874_v20, %v825_v61  ;;  %v892_v26 = vrot.slane %v849_v13, 4  ;;  %v896_v27 = vrot.slane %v857_v15, 4  ;;  %v900_v28 = vrot.slane %v861_v16, 4 }
 0x1d0   : > { %v877_v29 = vsel %vm678_vm1, %v837_v6, %v876_v23  ;;  %v881_v30 = vperm.slane %v875_v17, %v2427_v46  ;;  %v886_v31 = vrot.slane %v869_v21, 4  ;;  %v889_v32 = vsel %vm678_vm1, %v869_v21, %v888_v24 }
 0x1d1   : > { %v885_v33 = vperm.slane %v877_v29, %v2427_v46  ;;  %v890_v34 = vrot.slane %v873_v22, 4  ;;  %v893_v35 = vsel %vm678_vm1, %v873_v22, %v892_v26  ;;  %v903_v36 = vpack.c.bf16 %v889_v32, %v889_v32 }
 0x1d2   : > { %v887_v37 = vsel %vm678_vm1, %v886_v31, %v845_v11  ;;  %v894_v38 = vrot.slane %v881_v30, 4  ;;  %v897_v39 = vsel %vm678_vm1, %v881_v30, %v896_v27  ;;  %v905_v40 = vpack.c.bf16 %v893_v35, %v893_v35 }
 0x1d3   : > { %v891_v43 = vsel %vm678_vm1, %v890_v34, %v849_v13  ;;  %v898_v44 = vrot.slane %v885_v33, 4  ;;  %v901_v45 = vsel %vm678_vm1, %v885_v33, %v900_v28  ;;  %v902_v47 = vpack.c.bf16 %v887_v37, %v887_v37  ;;  %912 = vst.msk [vmem:[#allocation2 + $0x4] sm:$0xf] %vm910_vm2, %v903_v36 }
 0x1d4   : > { %v976_v48 = vperm.slane %v2450_v12, %v2415_v25  ;;  %v895_v49 = vsel %vm678_vm1, %v894_v38, %v857_v15  ;;  %v904_v50 = vpack.c.bf16 %v891_v43, %v891_v43  ;;  %v909_v51 = vpack.c.bf16 %v901_v45, %v901_v45  ;;  %914 = vst.msk [vmem:[#allocation2 + $0xc] sm:$0xf] %vm910_vm2, %v905_v40 }
 0x1d5   : > { %v899_v52 = vsel %vm678_vm1, %v898_v44, %v861_v16  ;;  %v906_v53 = vpack.c.bf16 %v895_v49, %v895_v49  ;;  %911 = vst.msk [vmem:[#allocation2] sm:$0xf] %vm910_vm2, %v902_v47  ;;  %v981_v54 = vrot.slane %v966_v41, 4  ;;  %v983_v55 = vrot.slane %v960_v42, 4 }
 0x1d6   : > { %v907_v56 = vpack.c.bf16 %v897_v39, %v897_v39  ;;  %v908_v57 = vpack.c.bf16 %v899_v52, %v899_v52  ;;  %913 = vst.msk [vmem:[#allocation2 + $0x8] sm:$0xf] %vm910_vm2, %v904_v50  ;;  %v1007_v58 = vrot.slane %v2445_v9, 4  ;;  %v995_v60 = vrot.slane %v976_v48, 4 }
 0x1d7   : > { %915 = vst.msk [vmem:[#allocation2 + $0x10] sm:$0xf] %vm910_vm2, %v906_v53  ;;  %v982_v12 = vsel %vm678_vm1, %v981_v54, %v960_v42  ;;  %v984_v59 = vsel %vm678_vm1, %v966_v41, %v983_v55 }
 0x1d8   : > { %917 = vst.msk [vmem:[#allocation2 + $0x18] sm:$0xf] %vm910_vm2, %v908_v57  ;;  %v988_v61 = vperm.slane %v982_v12, %v2415_v25  ;;  %v992_v62 = vperm.slane %v984_v59, %v2415_v25 }
 0x1d9   : > { %918 = vst.msk [vmem:[#allocation2 + $0x1c] sm:$0xf] %vm910_vm2, %v909_v51 }
 0x1da   : > { %916 = vst.msk [vmem:[#allocation2 + $0x14] sm:$0xf] %vm910_vm2, %v907_v56  ;;  %v993_v63 = vrot.slane %v988_v61, 4  ;;  %v996_v0 = vsel %vm678_vm1, %v988_v61, %v995_v60  ;;  %v1005_v1 = vrot.slane %v992_v62, 4  ;;  %v1008_v2 = vsel %vm678_vm1, %v992_v62, %v1007_v58  ;;  %v1084_v3 = vld [vmem:[#allocation2 + $0x4] sm:$0xf] }
 0x1db   : > { %v1004_v4 = vperm.slane %v996_v0, %v2427_v46  ;;  %v1016_v6 = vperm.slane %v1008_v2, %v2427_v46  ;;  %v1119_v7 = vsel %vm1095_vm3, %v1084_v3, 0  ;;  %v1086_v8 = vld [vmem:[#allocation2 + $0xc] sm:$0xf] }
 0x1dc   : > { %v994_v10 = vsel %vm678_vm1, %v993_v63, %v976_v48  ;;  %v1006_v11 = vsel %vm678_vm1, %v1005_v1, %v2445_v9  ;;  %v1083_v13 = vld [vmem:[#allocation2] sm:$0xf]  ;;  %1128 = vmatpush.bf16.xpose.msra.mxu3 %v1119_v7  ;;  %v1157_v14 = vsel %vm1095_vm3, %v1086_v8, 0 }
 0x1dd   : > { %v1000_v15 = vperm.slane %v994_v10, %v2427_v46  ;;  %v1012_v16 = vperm.slane %v1006_v11, %v2427_v46  ;;  %v1019_v18 = vrot.slane %v1004_v4, 4  ;;  %v1023_v19 = vrot.slane %v1016_v6, 4  ;;  %v1085_v20 = vld [vmem:[#allocation2 + $0x8] sm:$0xf]  ;;  %1166 = vmatpush.bf16.xpose.msrb.mxu1 %v1157_v14  ;;  %v1950_v7 = vld [vmem:[%s534_s14] ss:$0 sm:$0xff] }
 0x1de   : > { %v1100_v21 = vsel %vm1095_vm3, %v1083_v13, 0  ;;  %v1138_v22 = vsel %vm1095_vm3, %v1085_v20, 0  ;;  %v1088_v23 = vld [vmem:[#allocation2 + $0x10] sm:$0xf]  ;;  %s2174_s14 = smov 24  }
 0x1df   : > { %v1017_v24 = vrot.slane %v1000_v15, 4  ;;  %v1020_v9 = vsel %vm678_vm1, 0.0, %v1019_v18  ;;  %v1021_v17 = vrot.slane %v1012_v16, 4  ;;  %v1024_v26 = vsel %vm678_vm1, 0.0, %v1023_v19  ;;  %1109 = vmatpush.bf16.xpose.msra.mxu2 %v1100_v21  ;;  %1147 = vmatpush.bf16.xpose.msrb.mxu0 %v1138_v22  ;;  %v1090_v27 = vld [vmem:[#allocation2 + $0x18] sm:$0xf] }
 0x1e0   : > { %v1025_v28 = vsel %vm678_vm1, %v1019_v18, %v1000_v15  ;;  %v1030_v29 = vrot.slane %v1020_v9, 4  ;;  %v1041_v30 = vrot.slane %v1024_v26, 4  ;;  %v1225_v31 = vsel %vm1223_vm4, %v1088_v23, 0  ;;  %v1091_v32 = vld [vmem:[#allocation2 + $0x1c] sm:$0xf] }
 0x1e1   : > { %v1018_v33 = vsel %vm678_vm1, 0.0, %v1017_v24  ;;  %v1022_v34 = vsel %vm678_vm1, 0.0, %v1021_v17  ;;  %v1089_v35 = vld [vmem:[#allocation2 + $0x14] sm:$0xf]  ;;  %v1263_v36 = vsel %vm1223_vm4, %v1090_v27, 0  ;;  %v1282_v37 = vsel %vm1223_vm4, %v1091_v32, 0 }
 0x1e2   : > { %v1031_v38 = vsel %vm678_vm1, %v1030_v29, %v1018_v33  ;;  %v1244_v39 = vsel %vm1223_vm4, %v1089_v35, 0  ;;  %v1029_v40 = vperm.slane %v1025_v28, %v2415_v25  ;;  %v1036_v41 = vsel %vm678_vm1, %v1023_v19, %v1012_v16 }
 0x1e3   : > { %v1035_v42 = vperm.slane %v1031_v38, %v2415_v25  ;;  %v1040_v43 = vperm.slane %v1036_v41, %v2415_v25  ;;  %v1042_v44 = vsel %vm678_vm1, %v1041_v30, %v1022_v34 }
 0x1e4   : > { %1253 = vmatpush.bf16.msrb.mxu3 %v1244_v39  ;;  %v1046_v45 = vperm.slane %v1042_v44, %v2415_v25  ;;  %v1049_v47 = vrot.slane %v1029_v40, 4 }
 0x1e5   : > { %1291 = vmatpush.bf16.msra.mxu1 %v1282_v37  ;;  %v1047_v48 = vrot.slane %v1035_v42, 4  ;;  %v1061_v49 = vrot.slane %v1040_v43, 4 }
 0x1e6   : > { %v1059_v50 = vrot.slane %v1046_v45, 4  ;;  %v1050_v51 = vsel %vm678_vm1, %v1035_v42, %v1049_v47 }
 0x1e7   : > { %1234 = vmatpush.bf16.msrb.mxu2 %v1225_v31  ;;  %1272 = vmatpush.bf16.msra.mxu0 %v1263_v36  ;;  %v1048_v52 = vsel %vm678_vm1, %v1047_v48, %v1029_v40  ;;  %v1058_v53 = vperm.slane %v1050_v51, %v2427_v46  ;;  %v1062_v54 = vsel %vm678_vm1, %v1046_v45, %v1061_v49 }
 0x1e8   : > { %v1054_v55 = vperm.slane %v1048_v52, %v2427_v46  ;;  %v1060_v56 = vsel %vm678_vm1, %v1059_v50, %v1040_v43  ;;  %v1070_v57 = vperm.slane %v1062_v54, %v2427_v46 }
 0x1e9   : > { %v1066_v58 = vperm.slane %v1060_v56, %v2427_v46  ;;  %v1077_v12 = vrot.slane %v1058_v53, 4 }
 0x1ea   : > { %v1073_v59 = vrot.slane %v1054_v55, 4  ;;  %v1075_v60 = vrot.slane %v1070_v57, 4 }
 0x1eb   : > { %v1071_v61 = vrot.slane %v1066_v58, 4  ;;  %v1078_v62 = vsel %vm678_vm1, %v1070_v57, %v1077_v12 }
 0x1ec   : > { %v1074_v63 = vsel %vm678_vm1, %v1066_v58, %v1073_v59  ;;  %v1076_v0 = vsel %vm678_vm1, %v1075_v60, %v1058_v53  ;;  %v1082_v1 = vpack.c.bf16 %v1078_v62, %v1078_v62 }
 0x1ed   : > { %v1072_v2 = vsel %vm678_vm1, %v1071_v61, %v1054_v55  ;;  %v1080_v3 = vpack.c.bf16 %v1074_v63, %v1074_v63  ;;  %v1081_v4 = vpack.c.bf16 %v1076_v0, %v1076_v0 }
 0x1ee   : > { %v1079_v6 = vpack.c.bf16 %v1072_v2, %v1072_v2  ;;  %1799 = vmatmul.msk.bf16.vlgmr.msrb.gmra.mxu1 %vm1095_vm3, %v1082_v1 }
 0x1ef   : > { %1797 = vmatmul.msk.bf16.vlgmr.msra.gmra.mxu3 %vm1095_vm3, %v1080_v3  ;;  %1798 = vmatmul.msk.bf16.vlgmr.msrb.gmra.mxu0 %vm1095_vm3, %v1081_v4 }
 0x1f0   : > { %1796 = vmatmul.msk.bf16.vlgmr.msra.gmra.mxu2 %vm1095_vm3, %v1079_v6 }
 0x26b   : > { %v1168_v8 = vpop.f32.mrf.mxu1 }
 0x26c   : > { %v1149_v10 = vpop.f32.mrf.mxu0  ;;  %v1169_v23 = vadd.f32 %v1950_v7, %v1168_v8 }
 0x26d   : > { %v1150_v11 = vadd.f32 %v1950_v7, %v1149_v10 }
 0x26e   : > { %v1181_v17 = vsel %vm1095_vm3, %v1169_v23, -inf }
 0x26f   : > { %v1178_v13 = vsel %vm1095_vm3, %v1150_v11, -inf }
 0x270   : > { %1179 = vmax.xlane.f32.xlu0 %v1178_v13 }
 0x272   : > { %v1130_v14 = vpop.f32.mrf.mxu3 }
 0x273   : > { %v1111_v15 = vpop.f32.mrf.mxu2  ;;  %v1131_v16 = vadd.f32 %v1950_v7, %v1130_v14  ;;  %v1170_v18 = vpop.f32.mrf.mxu1 }
 0x274   : > { %v1112_v19 = vadd.f32 %v1950_v7, %v1111_v15  ;;  %v1151_v20 = vpop.f32.mrf.mxu0 }
 0x275   : > { %v1175_v21 = vsel %vm1095_vm3, %v1131_v16, -inf }
 0x276   : > { %1176 = vmax.xlane.f32.xlu2 %v1175_v21  ;;  %v1172_v22 = vsel %vm1095_vm3, %v1112_v19, -inf }
 0x277   : > { %1173 = vmax.xlane.f32.xlu1 %v1172_v22 }
 0x27a   : > { %v1132_v24 = vpop.f32.mrf.mxu3 }
 0x27b   : > { %v1113_v9 = vpop.f32.mrf.mxu2 }
 0x27e   : > { %1182 = vmax.xlane.f32.xlu2 %v1181_v17 }
 0x2e3   : > { %v1180_v26 = vpop.xlane.xlu0 %1179 }
 0x2e4   : > { %v1186_v27 = vsub.f32 %v1150_v11, %v1180_v26 }
 0x2e6   : > { %v1192_v28 = vmul.f32 1.442695, %v1186_v27 }
 0x2e8   : > { %1958 = vpow2.f32 %v1192_v28 }
 0x2e9   : > { %v1177_v29 = vpop.xlane.xlu2 %1176 }
 0x2ea   : > { %v1185_v30 = vsub.f32 %v1131_v16, %v1177_v29  ;;  %v1174_v31 = vpop.xlane.xlu1 %1173 }
 0x2eb   : > { %v1184_v32 = vsub.f32 %v1112_v19, %v1174_v31 }
 0x2ec   : > { %v1190_v33 = vmul.f32 1.442695, %v1185_v30 }
 0x2ed   : > { %v1188_v34 = vmul.f32 1.442695, %v1184_v32 }
 0x2ee   : > { %v1959_v35 = vpop.eup %1958  ;;  %1960 = vpow2.f32 %v1190_v33 }
 0x2ef   : > { %1962 = vpow2.f32 %v1188_v34  ;;  %v1202_v36 = vsel %vm1095_vm3, %v1959_v35, 0.0 }
 0x2f0   : > { %1203 = vadd.xlane.f32.xlu0 %v1202_v36 }
 0x2f1   : > { %v1183_v37 = vpop.xlane.xlu2 %1182 }
 0x2f2   : > { %v1187_v38 = vsub.f32 %v1169_v23, %v1183_v37 }
 0x2f4   : > { %v1961_v39 = vpop.eup %1960  ;;  %v1194_v40 = vmul.f32 1.442695, %v1187_v38 }
 0x2f5   : > { %v1963_v41 = vpop.eup %1962  ;;  %v1199_v42 = vsel %vm1095_vm3, %v1961_v39, 0.0 }
 0x2f6   : > { %1964 = vpow2.f32 %v1194_v40  ;;  %1200 = vadd.xlane.f32.xlu2 %v1199_v42  ;;  %v1196_v43 = vsel %vm1095_vm3, %v1963_v41, 0.0 }
 0x2f7   : > { %1197 = vadd.xlane.f32.xlu1 %v1196_v43 }
 0x2fc   : > { %v1965_v44 = vpop.eup %1964 }
 0x2fd   : > { %v1205_v45 = vsel %vm1095_vm3, %v1965_v44, 0.0 }
 0x2ff   : > { %1206 = vadd.xlane.f32.xlu1 %v1205_v45 }
 0x363   : > { %v1204_v47 = vpop.xlane.xlu0 %1203 }
 0x364   : > { %1966 = vrcp.f32 %v1204_v47 }
 0x369   : > { %v1201_v48 = vpop.xlane.xlu2 %1200 }
 0x36a   : > { %v1967_v49 = vpop.eup %1966  ;;  %1968 = vrcp.f32 %v1201_v48  ;;  %v1198_v50 = vpop.xlane.xlu1 %1197 }
 0x36b   : > { %v1214_v51 = vmul.f32 %v1967_v49, %v1959_v35  ;;  %1970 = vrcp.f32 %v1198_v50 }
 0x36d   : > { %v1218_v52 = vpack.c.bf16 %v1214_v51, %v1214_v51 }
 0x36f   : > { %1802 = vmatmul.msk.bf16.vlgmr.msra.gmra.mxu0 %vm1095_vm3, %v1218_v52 }
 0x370   : > { %v1969_v53 = vpop.eup %1968 }
 0x371   : > { %v1971_v54 = vpop.eup %1970  ;;  %v1213_v55 = vmul.f32 %v1969_v53, %v1961_v39 }
 0x372   : > { %v1212_v56 = vmul.f32 %v1971_v54, %v1963_v41  ;;  %v1207_v57 = vpop.xlane.xlu1 %1206 }
 0x373   : > { %1972 = vrcp.f32 %v1207_v57  ;;  %v1217_v58 = vpack.c.bf16 %v1213_v55, %v1213_v55 }
 0x374   : > { %v1216_v12 = vpack.c.bf16 %v1212_v56, %v1212_v56 }
 0x375   : > { %1801 = vmatmul.msk.bf16.vlgmr.msrb.gmra.mxu3 %vm1095_vm3, %v1217_v58 }
 0x376   : > { %1800 = vmatmul.msk.bf16.vlgmr.msrb.gmra.mxu2 %vm1095_vm3, %v1216_v12 }
 0x379   : > { %v1973_v59 = vpop.eup %1972 }
 0x37a   : > { %v1215_v60 = vmul.f32 %v1973_v59, %v1965_v44 }
 0x37c   : > { %v1219_v61 = vpack.c.bf16 %v1215_v60, %v1215_v60 }
 0x37e   : > { %1803 = vmatmul.msk.bf16.vlgmr.msra.gmra.mxu1 %vm1095_vm3, %v1219_v61 }
 0x3ec   : > { %v1274_v62 = vpop.f32.mrf.mxu0 }
 0x3ed   : > { %v1297_v0 = vrot.slane %v1274_v62, 4 }
 0x3f4   : > { %v1276_v63 = vpop.f32.mrf.mxu0 }
 0x3f8   : > { %v1255_v1 = vpop.f32.mrf.mxu3 }
 0x3f9   : > { %v1236_v2 = vpop.f32.mrf.mxu2  ;;  %v1311_v3 = vrot.slane %v1255_v1, 4 }
 0x3fa   : > { %v1298_v4 = vsel %vm678_vm1, %v1297_v0, %v1236_v2  ;;  %v1299_v6 = vrot.slane %v1236_v2, 4 }
 0x3fb   : > { %v1304_v7 = vperm.slane %v1298_v4, %v2415_v25  ;;  %v1293_v8 = vpop.f32.mrf.mxu1 }
 0x3fc   : > { %v1300_v10 = vsel %vm678_vm1, %v1274_v62, %v1299_v6  ;;  %v1309_v11 = vrot.slane %v1293_v8, 4  ;;  %v1312_v13 = vsel %vm678_vm1, %v1293_v8, %v1311_v3 }
 0x3fd   : > { %v1308_v14 = vperm.slane %v1300_v10, %v2415_v25  ;;  %v1320_v15 = vperm.slane %v1312_v13, %v2415_v25  ;;  %v1323_v18 = vrot.slane %v1304_v7, 4 }
 0x3fe   : > { %v1310_v16 = vsel %vm678_vm1, %v1309_v11, %v1255_v1 }
 0x3ff   : > { %v1335_v19 = vrot.slane %v1308_v14, 4  ;;  %v1316_v20 = vperm.slane %v1310_v16, %v2415_v25  ;;  %v1333_v21 = vrot.slane %v1320_v15, 4 }
 0x400   : > { %v1257_v22 = vpop.f32.mrf.mxu3 }
 0x401   : > { %v1321_v23 = vrot.slane %v1316_v20, 4  ;;  %v1324_v24 = vsel %vm678_vm1, %v1316_v20, %v1323_v18  ;;  %v1334_v9 = vsel %vm678_vm1, %v1333_v21, %v1308_v14  ;;  %v1336_v17 = vsel %vm678_vm1, %v1320_v15, %v1335_v19  ;;  %v1238_v26 = vpop.f32.mrf.mxu2  ;;  %v1951_v18 = vld [vmem:[%s2755_s12] ss:$0 sm:$0xff] }
 0x402   : > { %v1332_v27 = vperm.slane %v1324_v24, %v2427_v46  ;;  %v1340_v28 = vperm.slane %v1334_v9, %v2427_v46  ;;  %v1344_v29 = vperm.slane %v1336_v17, %v2427_v46  ;;  %v2177_v24 = vmov 32.0  }
 0x403   : > { %v1322_v30 = vsel %vm678_vm1, %v1321_v23, %v1304_v7  ;;  %v1295_v31 = vpop.f32.mrf.mxu1  ;;  %v1847_v7 = vld [vmem:[%s2714_s5] sm:$0xff]  ;;  %1974 = vrcp.f32 %v2177_v24 }
 0x404   : > { %v1328_v32 = vperm.slane %v1322_v30, %v2427_v46  ;;  %v1347_v33 = vrot.slane %v1332_v27, 4  ;;  %v1349_v34 = vrot.slane %v1340_v28, 4  ;;  %v1351_v35 = vrot.slane %v1344_v29, 4 }
 0x406   : > { %v1345_v36 = vrot.slane %v1328_v32, 4  ;;  %v1348_v37 = vsel %vm678_vm1, 0.0, %v1347_v33  ;;  %v1352_v38 = vsel %vm678_vm1, 0.0, %v1351_v35  ;;  %v1364_v40 = vsel %vm678_vm1, %v1351_v35, %v1340_v28  ;;  %v1849_v35 = vld [vmem:[#allocation8] sm:$0xff] }
 0x407   : > { %v1358_v39 = vrot.slane %v1348_v37, 4  ;;  %v1369_v41 = vrot.slane %v1352_v38, 4  ;;  %v1353_v42 = vsel %vm678_vm1, %v1347_v33, %v1328_v32  ;;  %v1350_v43 = vsel %vm678_vm1, 0.0, %v1349_v34 }
 0x408   : > { %v1346_v44 = vsel %vm678_vm1, 0.0, %v1345_v36  ;;  %v1357_v45 = vperm.slane %v1353_v42, %v2415_v25  ;;  %v1368_v47 = vperm.slane %v1364_v40, %v2415_v25  ;;  %v1854_v36 = vld [vmem:[%s2756_s6 + $0x18] sm:$0xff] }
 0x409   : > { %v1359_v48 = vsel %vm678_vm1, %v1358_v39, %v1346_v44  ;;  %v1370_v49 = vsel %vm678_vm1, %v1369_v41, %v1350_v43  ;;  %v1975_v9 = vpop.eup %1974  ;;  %1584 = vmatpush.bf16.msrb.mxu0 %v1854_v36  ;;  %v1853_v39 = vld [vmem:[%s2756_s6 + $0x10] sm:$0xff]  ;;  %v1852_v41 = vld [vmem:[%s2756_s6 + $0x8] sm:$0xff] }
 0x40a   : > { %v1363_v50 = vperm.slane %v1359_v48, %v2415_v25  ;;  %v1374_v51 = vperm.slane %v1370_v49, %v2415_v25  ;;  %v1377_v52 = vrot.slane %v1357_v45, 4  ;;  %v1389_v53 = vrot.slane %v1368_v47, 4  ;;  %v1952_v49 = vld [vmem:[%s2757_s29] ss:$0 sm:$0xff]  ;;  %s2762_s29 = sld [smem:[#allocation29_spill]] }
 0x40b   : > { %v1468_v17 = vmul.f32 32.0, %v1975_v9  ;;  %vm1472_vm7 = vweird.f32 %v1975_v9 }
 0x40c   : > { %v1378_v54 = vsel %vm678_vm1, %v1363_v50, %v1377_v52  ;;  %v1390_v55 = vsel %vm678_vm1, %v1374_v51, %v1389_v53  ;;  %v1375_v56 = vrot.slane %v1363_v50, 4  ;;  %v1387_v57 = vrot.slane %v1374_v51, 4 }
 0x40d   : > { %v1386_v58 = vperm.slane %v1378_v54, %v2427_v46  ;;  %v1398_v12 = vperm.slane %v1390_v55, %v2427_v46  ;;  %v1469_v26 = vsub.f32 1.0, %v1468_v17  ;;  %1585 = vmatpush.bf16.msrb.mxu0 %v1853_v39 }
 0x40e   : > { %v1376_v59 = vsel %vm678_vm1, %v1375_v56, %v1357_v45  ;;  %v1388_v60 = vsel %vm678_vm1, %v1387_v57, %v1368_v47  ;;  %v1851_v56 = vld [vmem:[%s2756_s6] sm:$0xff] }
 0x40f   : > { %v1405_v61 = vrot.slane %v1386_v58, 4  ;;  %v1403_v62 = vrot.slane %v1398_v12, 4  ;;  %v1382_v25 = vperm.slane %v1376_v59, %v2427_v46  ;;  %v1394_v63 = vperm.slane %v1388_v60, %v2427_v46  ;;  %v1848_v46 = vld [vmem:[%s2714_s5 + $0x8] sm:$0xff]  ;;  %v1954_v57 = vld [vmem:[%s2759_s25] ss:$0 sm:$0xff]  ;;  %s1628_s25 = scalar_lea.sflag [#allocation5], %s2356_s13 }
 0x410   : > { %1454 = vmatpush.bf16.msra.mxu2 %v1848_v46  ;;  %v1470_v27 = vmul.f32 %v1975_v9, %v1469_v26  ;;  %s2090_s10 = scalar_lea.hbm %s2762_s29, 16 }
 0x411   : > { %v1406_v0 = vsel %vm678_vm1, %v1398_v12, %v1405_v61  ;;  %v1404_v1 = vsel %vm678_vm1, %v1403_v62, %v1386_v58  ;;  %v1399_v2 = vrot.slane %v1394_v63, 4  ;;  %v1401_v3 = vrot.slane %v1382_v25, 4  ;;  %1586 = vmatpush.bf16.msrb.mxu0 %v1852_v41  ;;  %v1955_v62 = vld [vmem:[%s2760_s8] ss:$0 sm:$0xff] }
 0x412   : > { %1416 = vrot.lane.b32.xlu1 %v1406_v0, %s2174_s14  ;;  %1412 = vrot.lane.b32.xlu0 %v1404_v1, %s2175_s20  ;;  %v1471_v28 = vadd.f32 %v1975_v9, %v1470_v27  ;;  %s1639_s14 = scalar_lea.hbm %s2762_s29, %s1840_s11 }
 0x413   : > { %v1402_v4 = vsel %vm678_vm1, %v1394_v63, %v1401_v3  ;;  %v1400_v6 = vsel %vm678_vm1, %v1399_v2, %v1382_v25  ;;  %s1643_s30 = sshll.u32 %s1639_s14, 4  ;;  %s1644_s30 = int_to_ptr.hbm [resolvable:$true] %s1643_s30 }
 0x414   : > { %1408 = vrot.lane.b32.xlu2 %v1402_v4, %s2176_s27  ;;  %1455 = vmatpush.bf16.msra.mxu2 %v1847_v7  ;;  %v1473_v29 = vsel %vm1472_vm7, %v1975_v9, %v1471_v28  ;;  %s2758_s27 = sld [smem:[#allocation22_spill]]  ;;  %s2084_s9 = sshra.s32 %s1644_s30, 4  ;;  %s2085_s9 = int_to_ptr.hbm [resolvable:$true] %s2084_s9 }
 0x415   : > { %1587 = vmatpush.bf16.msrb.mxu0 %v1851_v56  ;;  %s2086_s12 = scalar_lea.hbm %s2085_s9, 8  ;;  %p2091_p11 = scmp.lt.s32.totalorder %s2085_s9, %s2762_s29 }
 0x416   : > { %p2087_p1 = scmp.ne.s32.totalorder %s2085_s9, %s2086_s12  ;;  %p2092_p12 = scmp.lt.s32.totalorder %s2090_s10, %s2086_s12 }
 0x418   : > { %p2088_p9 = pnand %p2087_p1, %p2329_p4  ;;  %p2093_p13 = por %p2092_p12, %p2091_p11 }
 0x41a   : > { %v1953_v51 = vld [vmem:[%s2758_s27] ss:$0 sm:$0xff]  ;;  %p2089_p10 = pneg %p2088_p9 }
 0x41c   : > { %p2094_p0 = pnand %p2093_p13, %p2089_p10 }
 0x46e   : > { %v1409_v8 = vpop.permute.xlu2 %1408 }
 0x46f   : > { %v1419_v10 = vsel %vm1095_vm3, %v1400_v6, %v1409_v8 }
 0x484   : > { %v1417_v11 = vpop.permute.xlu1 %1416  ;;  %v1413_v13 = vpop.permute.xlu0 %1412 }
 0x485   : > { %v1421_v14 = vsel %vm1420_vm5, %v1419_v10, %v1413_v13 }
 0x486   : > { %v1423_v15 = vsel %vm1422_vm6, %v1421_v14, %v1417_v11 }
 0x487   : > { %v1424_v16 = vpack.c.bf16 %v1423_v15, %v1423_v15 }
 0x489   : > { %1812 = vmatmul.msk.bf16.vlgmr.msra.gmra.mxu2 %vm638_vm0, %v1424_v16 }
 0x50c   : > { %v1457_v19 = vpop.f32.mrf.mxu2 }
 0x50d   : > { %v1458_v20 = vadd.f32 %v1951_v18, %v1457_v19 }
 0x50f   : > { %v1461_v21 = vadd.f32 %v1458_v20, %v2399_v5  ;;  %v1850_v5 = vld [vmem:[#allocation8 + $0x8] sm:$0xff]  ;;  %v1956_v20 = vld [vmem:[%s2761_s28] ss:$0 sm:$0xff] }
 0x510   : > { %1531 = vmatpush.bf16.msra.mxu3 %v1850_v5 }
 0x511   : > { %v1464_v22 = vsel %vm638_vm0, %v1461_v21, 0.0 }
 0x512   : > { %1465 = vadd.xlane.f32.xlu0 %v1464_v22 }
 0x514   : > { %v1459_v23 = vpop.f32.mrf.mxu2  ;;  %1532 = vmatpush.bf16.msra.mxu3 %v1849_v35 }
 0x515   : > { %v1957_v23 = vld [vmem:[%s2764_s16] ss:$0 sm:$0xff] }
 0x585   : > { %v1466_v30 = vpop.xlane.xlu0 %1465 }
 0x586   : > { %v1474_v31 = vmul.f32 %v1473_v29, %v1466_v30 }
 0x588   : > { %v1475_v32 = vsub.f32 %v1461_v21, %v1474_v31 }
 0x58a   : > { %v1476_v33 = vmul.f32 %v1475_v32, %v1475_v32 }
 0x58c   : > { %v1477_v34 = vsel %vm638_vm0, %v1476_v33, 0.0 }
 0x58d   : > { %1478 = vadd.xlane.f32.xlu2 %v1477_v34 }
 0x600   : > { %v1479_v37 = vpop.xlane.xlu2 %1478 }
 0x601   : > { %v1480_v38 = vmul.f32 %v1479_v37, %v1473_v29 }
 0x603   : > { %v1481_v40 = vadd.f32 1e-05, %v1480_v38 }
 0x605   : > { %1976 = vrsqrt.f32 %v1481_v40  ;;  %vm1488_vm9 = vweird.f32 %v1481_v40 }
 0x60b   : > { %v1977_v42 = vpop.eup %1976 }
 0x60c   : > { %v1483_v43 = vmul.f32 %v1977_v42, %v1481_v40  ;;  %vm1489_vm8 = vweird.f32 %v1977_v42 }
 0x60d   : > { %vm1490_vm10 = vmor %vm1488_vm9, %vm1489_vm8 }
 0x60e   : > { %v1484_v44 = vmul.f32 %v1977_v42, %v1483_v43 }
 0x610   : > { %v1485_v45 = vmul.f32 0.5, %v1484_v44 }
 0x612   : > { %v1486_v47 = vsub.f32 1.5, %v1485_v45 }
 0x614   : > { %v1487_v48 = vmul.f32 %v1977_v42, %v1486_v47 }
 0x616   : > { %v1491_v50 = vsel %vm1490_vm10, %v1977_v42, %v1487_v48 }
 0x617   : > { %v1492_v52 = vmul.f32 %v1491_v50, %v1475_v32 }
 0x619   : > { %v1496_v53 = vmul.f32 %v1952_v49, %v1492_v52 }
 0x61b   : > { %v1500_v54 = vadd.f32 %v1953_v51, %v1496_v53 }
 0x61d   : > { %v1501_v55 = vpack.c.bf16 %v1500_v54, %v1500_v54 }
 0x61f   : > { %1821 = vmatmul.msk.bf16.vlgmr.msra.gmra.mxu3 %vm638_vm0, %v1501_v55 }
 0x6a2   : > { %v1534_v58 = vpop.f32.mrf.mxu3 }
 0x6a3   : > { %v1535_v12 = vadd.f32 %v1954_v57, %v1534_v58 }
 0x6a5   : > { %v1538_v59 = vmax.f32 %v1535_v12, 0.0 }
 0x6a7   : > { %v1539_v60 = vpack.c.bf16 %v1538_v59, %v1538_v59 }
 0x6a9   : > { %1838 = vmatmul.msk.bf16.vlgmr.msrb.gmra.mxu0 %vm1576_vm11, %v1539_v60 }
 0x6aa   : > { %v1536_v61 = vpop.f32.mrf.mxu3 }
 0x726   : > { %v1589_v25 = vpop.f32.mrf.mxu0 }
 0x727   : > { %v1590_v63 = vadd.f32 %v1955_v62, %v1589_v25 }
 0x729   : > { %v1593_v0 = vadd.f32 %v1590_v63, %v1500_v54 }
 0x72b   : > { %v1596_v1 = vsel %vm638_vm0, %v1593_v0, 0.0 }
 0x72c   : > { %1597 = vadd.xlane.f32.xlu1 %v1596_v1 }
 0x72e   : > { %v1591_v2 = vpop.f32.mrf.mxu0 }
 0x79f   : > { %v1598_v3 = vpop.xlane.xlu1 %1597 }
 0x7a0   : > { %v1599_v4 = vmul.f32 %v1598_v3, %v1473_v29 }
 0x7a2   : > { %v1600_v6 = vsub.f32 %v1593_v0, %v1599_v4 }
 0x7a4   : > { %v1601_v46 = vmul.f32 %v1600_v6, %v1600_v6 }
 0x7a6   : > { %v1602_v7 = vsel %vm638_vm0, %v1601_v46, 0.0 }
 0x7a7   : > { %1603 = vadd.xlane.f32.xlu0 %v1602_v7 }
 0x81a   : > { %v1604_v8 = vpop.xlane.xlu0 %1603 }
 0x81b   : > { %v1605_v10 = vmul.f32 %v1604_v8, %v1473_v29 }
 0x81d   : > { %v1606_v11 = vadd.f32 1e-05, %v1605_v10 }
 0x81f   : > { %1978 = vrsqrt.f32 %v1606_v11  ;;  %vm1613_vm13 = vweird.f32 %v1606_v11 }
 0x825   : > { %v1979_v13 = vpop.eup %1978 }
 0x826   : > { %v1608_v14 = vmul.f32 %v1979_v13, %v1606_v11  ;;  %vm1614_vm12 = vweird.f32 %v1979_v13 }
 0x827   : > { %vm1615_vm14 = vmor %vm1613_vm13, %vm1614_vm12 }
 0x828   : > { %v1609_v15 = vmul.f32 %v1979_v13, %v1608_v14 }
 0x82a   : > { %v1610_v16 = vmul.f32 0.5, %v1609_v15 }
 0x82c   : > { %v1611_v18 = vsub.f32 1.5, %v1610_v16 }
 0x82e   : > { %v1612_v19 = vmul.f32 %v1979_v13, %v1611_v18 }
 0x830   : > { %v1616_v21 = vsel %vm1615_vm14, %v1979_v13, %v1612_v19 }
 0x831   : > { %v1617_v22 = vmul.f32 %v1616_v21, %v1600_v6 }
 0x833   : > { %v1621_v24 = vmul.f32 %v1956_v20, %v1617_v22 }
 0x835   : > { %v1625_v9 = vadd.f32 %v1957_v23, %v1621_v24 }
 0x837   : > { %1626 = vst.msk [vmem:[%s597_s21] sm:$0xff] %vm638_vm0, %v1625_v9 }
 0x838   : > { %2097 = shalt.err (!%p2094_p0)
}
 0x839   : > { %1863 = dma.vmem_to_hbm [thread:$0]  (%p2329_p4), %s1642_s17, 128, %s1644_s30, %s1628_s25  }
 0x83a PF: > { %s2765_s13 = sld [smem:[#allocation14_spill]]  ;;  %p1877_p2 = pnand %p1770_p6, %p2337_p7 }
 0x83c   : > { %p1878_p5 = pneg %p1877_p2 }
 0x840   : > { %s1655_s7 = sand.u32 1, %s2765_s13  }
 0x841   : > { %s1656_s26 = scalar_lea.sflag [#allocation5], %s1655_s7 }
 0x842   : > { %2135 = dma.done.wait (%p1878_p5), %s1656_s26, 128  }
 0x843   : > { %2137 = vsyncadd (%p1878_p5), %s1656_s26, 4294967168  ;;  %s34_s23 = sadd.s32 1, %s2160_s23   ;;  %s2767_s14 = sld [smem:[#allocation15_spill]] }
 0x844   : > { %p31_p8 = scmp.ge.s32.totalorder %s34_s23, 4   ;;  %s2768_s20 = sld [smem:[#allocation18_spill]] }
 0x845   : > { %s2769_s27 = sld [smem:[#allocation16_spill]]  ;;  %s2770_s18 = smov %s2144_s19 }
 0x846   : > { %s2772_s21 = smov %s2156_s22 }
 0x847   :  { %33 = sbr.rel (!%p31_p8) target bundleno = 19 (0x13), region = 150 }
 0x849   : > { %s2771_s19 = smov %s2767_s14 }
 0x84b   : > { %s2773_s22 = smov %s2769_s27 }
 0x84c   :  { %1662 = vsyncpa [#allocation4], 1 }
 0x84d   :  { %1664 = vsyncpa [#allocation4 + $0x1], 1 }
 0x84e   :  { %1665 = vsyncpa [#allocation7], 1 }
 0x84f   :  { %1667 = vsyncpa [#allocation7 + $0x1], 1 }
 0x850   :  { %1668 = vsyncpa [#allocation5], 1 }
 0x851   :  { %1670 = vsyncpa [#allocation5 + $0x1], 1 }

// kernel: tpu_custom_call.1
= control target key start
LH: loop header
LB: loop body
LE: loop exit
PB: predicated region body
PF: predicated region fallthrough
CT: control target
= control target key end

     0   :  { %s2053_s0 = inlined_call_operand.vmem [shape: f32[2,8,32], index: 0, kind: input, shape index: {}]   ;;  %s2054_s1 = inlined_call_operand.hbm [shape: bf16[2,8,32], index: 1, kind: input, shape index: {}]   ;;  %s2055_s2 = inlined_call_operand.hbm [shape: f32[2,1,8], index: 2, kind: input, shape index: {}]   ;;  %s2056_s3 = inlined_call_operand.vmem [shape: bf16[32,96], index: 3, kind: input, shape index: {}]   ;;  %s2057_s4 = inlined_call_operand.vmem [shape: f32[1,96], index: 4, kind: input, shape index: {}]   ;;  %s2058_s5 = inlined_call_operand.vmem [shape: bf16[32,32], index: 5, kind: input, shape index: {}]   ;;  %s2059_s6 = inlined_call_operand.vmem [shape: f32[1,32], index: 6, kind: input, shape index: {}]   ;;  %s2060_s7 = inlined_call_operand.vmem [shape: f32[1,32], index: 7, kind: input, shape index: {}]   ;;  %s2061_s8 = inlined_call_operand.vmem [shape: f32[1,32], index: 8, kind: input, shape index: {}]   ;;  %s2062_s9 = inlined_call_operand.hbm [shape: bf16[32,64], index: 9, kind: input, shape index: {}]   ;;  %s2063_s10 = inlined_call_operand.vmem [shape: f32[1,64], index: 10, kind: input, shape index: {}]   ;;  %s2064_s11 = inlined_call_operand.vmem [shape: bf16[64,32], index: 11, kind: input, shape index: {}]   ;;  %s2065_s12 = inlined_call_operand.vmem [shape: f32[1,32], index: 12, kind: input, shape index: {}]   ;;  %s2066_s13 = inlined_call_operand.vmem [shape: f32[1,32], index: 13, kind: input, shape index: {}]   ;;  %s2067_s14 = inlined_call_operand.vmem [shape: f32[1,32], index: 14, kind: input, shape index: {}]   ;;  %s2068_s15 = inlined_call_operand.hbm [shape: f32[2,8,32], index: 15, kind: output, shape index: {}]  }
   0x1   :  { %2077 = sst [smem:[#allocation21_spill]] %s2059_s6 }
   0x2   :  { %2078 = sst [smem:[#allocation22_spill]] %s2060_s7 }
   0x3   :  { %2079 = sst [smem:[#allocation23_spill]] %s2061_s8 }
   0x4   :  { %2080 = sst [smem:[#allocation24_spill]] %s2062_s9 }
   0x5   :  { %2081 = sst [smem:[#allocation25_spill]] %s2063_s10 }
   0x6   :  { %2082 = sst [smem:[#allocation26_spill]] %s2064_s11 }
   0x7   :  { %2083 = sst [smem:[#allocation27_spill]] %s2065_s12 }
   0x8   :  { %2084 = sst [smem:[#allocation28_spill]] %s2066_s13 }
   0x9   :  { %2085 = sst [smem:[#allocation29_spill]] %s2067_s14 }
   0xa   :  { %2086 = sst [smem:[#allocation30_spill]] %s2068_s15 }
   0xb   :  { %20 = vsyncpa [#allocation5], 0 }
   0xc   :  { %22 = vsyncpa [#allocation5 + $0x1], 0 }
   0xd   :  { %23 = vsyncpa [#allocation8], 0 }
   0xe   :  { %25 = vsyncpa [#allocation8 + $0x1], 0 }
   0xf   :  { %26 = vsyncpa [#allocation6], 0 }
  0x10   :  { %28 = vsyncpa [#allocation6 + $0x1], 0  ;;  %s1778_s18 = smov 0   ;;  %s1780_s19 = smov 0  }
  0x11   :  { %s1782_s20 = smov 0   ;;  %s1784_s21 = smov 0  }
  0x12   :  { %s1786_s22 = smov 0   ;;  %s1788_s23 = smov 0  }
  0x13 LB: > { %2087 = sst [smem:[#allocation15_spill]] %s1662_s18  ;;  %s1809_s24 = sadd.s32 4294967295, %s1682_s23   ;;  %s1682_s23 = sphi %s1788_s23, %s34_s23   ;;  %s1678_s22 = sphi %s1786_s22, %s2117_s22   ;;  %s1674_s21 = sphi %s1784_s21, %s2116_s21   ;;  %s1670_s20 = sphi %s1782_s20, %s2112_s20   ;;  %s1666_s19 = sphi %s1780_s19, %s2115_s19   ;;  %s1662_s18 = sphi %s1778_s18, %s2114_s18  }
  0x14   : > { %2088 = sst [smem:[#allocation16_spill]] %s1670_s20  ;;  %p1292_p0 = scmp.ge.s32.totalorder %s1682_s23, 1 }
  0x15   : > { %p95_p1 = scmp.eq.s32.totalorder %s1809_s24, 0  ;;  %p411_p2 = scmp.lt.s32.totalorder %s1682_s23, 3 }
  0x16   : > { %s2089_s9 = sld [smem:[#allocation24_spill]]  ;;  %s1684_s29 = smov [#allocation9]  }
  0x17   : > { %p1817_p3 = pnand %p1292_p0, %p411_p2  ;;  %s442_s30 = sshll.u32 %s1684_s29, 4  ;;  %s443_s30 = int_to_ptr.vmem [resolvable:$true] %s442_s30 }
  0x18   : > { %p1294_p6 = scmp.ge.s32.totalorder %s1682_s23, 2  ;;  %s1685_s16 = smov 64  }
  0x19   : > { %p1389_p4 = pneg %p1817_p3  ;;  %s1686_s17 = smov 4  }
  0x1a   : > { %s1291_s25 = sadd.s32 4294967294, %s1682_s23   ;;  %s46_s26 = sadd.s32 1, %s1678_s22 }
  0x1b   : > { %p1390_p5 = pnand %p1389_p4, %p95_p1  ;;  %p48_p7 = scmp.ge.s32.totalorder %s46_s26, 2 }
  0x1c   : > { %s440_s27 = sshll.u32 %s2089_s9, 4  ;;  %s81_s9 = sadd.s32 1, %s1670_s20  ;;  %s441_s27 = int_to_ptr.hbm [resolvable:$true] %s440_s27 }
  0x1d   : > { %1392 = dma.hbm_to_vmem [thread:$0]  (!%p1390_p5), %s441_s27, 256, %s443_s30, [#allocation8], %s1685_s16, %s1685_s16, %s1686_s17  }
  0x1e   : > { %p88_p8 = scmp.ne.s32.totalorder %s1670_s20, %s1666_s19  ;;  %p89_p9 = scmp.eq.s32.totalorder %s1682_s23, 0 }
  0x1f   : > { %p94_p10 = scmp.ne.s32.totalorder %s1666_s19, %s1662_s18  ;;  %s2119_s26 = smov (%p48_p7, %s46_s26), 0 }
  0x20   : > { %2091 = sst [smem:[#allocation17_spill]] %s2119_s26  ;;  %p1836_p11 = por %p89_p9, %p88_p8 }
  0x21   : > { %p1842_p12 = por %p95_p1, %p94_p10  ;;  %s78_s30 = ssub.s32 %s1678_s22, %s2119_s26 }
  0x22   : > { %p398_p13 = scmp.eq.s32.totalorder %s1809_s24, 1  ;;  %p79_p0 = scmp.eq.s32.totalorder %s78_s30, 0 }
  0x23   : > { %p404_p2 = scmp.eq.s32.totalorder %s1291_s25, 1  ;;  %p1405_p5 = scmp.lt.s32.totalorder %s1682_s23, 2 }
  0x24   : > { %p1849_p4 = por %p398_p13, %p88_p8  ;;  %s481_s14 = sand.u32 1, %s1670_s20  }
  0x25   : > { %s1855_s17 = scalar_select %p79_p0, %s1670_s20, %s81_s9  }
  0x26   : > { %s2094_s16 = scalar_select %p1849_p4, 1, 0 }
  0x27   : > { %2096 = sst [smem:[#allocation19_spill]] %s1855_s17  ;;  %p1857_p7 = por %p404_p2, %p94_p10 }
  0x28   : > { %2095 = sst [smem:[#allocation18_spill]] %s2094_s16  ;;  %s1295_s15 = sshll.u32 %s481_s14, 2 }
  0x29   : > { %s2097_s18 = scalar_select %p1857_p7, 1, 0 }
  0x2a   : > { %s1296_s26 = sshll.u32 %s1678_s22, 2  ;;  %s485_s25 = scalar_lea.vmem [#allocation4], %s1295_s15 }
  0x2b   : > { %2098 = sst [smem:[#allocation20_spill]] %s2097_s18  ;;  %s489_s30 = scalar_lea.hbm %s2054_s1, %s1296_s26 }
  0x2c   : > { %s493_s10 = sshll.u32 %s485_s25, 4  ;;  %s491_s8 = sshll.u32 %s489_s30, 4  ;;  %s494_s10 = int_to_ptr.vmem [resolvable:$true] %s493_s10  ;;  %s492_s8 = int_to_ptr.hbm [resolvable:$true] %s491_s8 }
  0x2d   : > { %p1394_p8 = pnand %p1405_p5, %p1836_p11  ;;  %s500_s9 = sand.u32 1, %s1682_s23  }
  0x2e   : > { %s482_s17 = scalar_lea.sflag [#allocation5], %s481_s14  ;;  %s506_s20 = scalar_lea.hbm %s2055_s2, %s1678_s22 }
  0x2f   : > { %1396 = dma.hbm_to_vmem [thread:$0]  (!%p1394_p8), %s492_s8, 64, %s494_s10, %s482_s17  }
  0x30   : > { %s503_s18 = scalar_lea.vmem [#allocation7], %s481_s14  ;;  %s508_s6 = sshll.u32 %s506_s20, 4  ;;  %s509_s6 = int_to_ptr.hbm [resolvable:$true] %s508_s6 }
  0x31   : > { %s510_s11 = sshll.u32 %s503_s18, 4  ;;  %s501_s12 = scalar_lea.sflag [#allocation8], %s500_s9  ;;  %s511_s11 = int_to_ptr.vmem [resolvable:$true] %s510_s11 }
  0x32   : > { %1399 = dma.hbm_to_vmem [thread:$0]  (!%p1394_p8), %s509_s6, 16, %s511_s11, %s501_s12  }
  0x33   : > { %519 = sbr.rel (%p1817_p3) target bundleno = 2362 (0x93a), region = 80  ;;  %s1876_s13 = sand.u32 (!%p1817_p3), 1, %s1666_s19  }
  0x34   : > { %s1298_s8 = sshll.u32 (!%p1817_p3), %s1876_s13, 2  ;;  %s522_s10 = scalar_lea.sflag (!%p1817_p3), [#allocation5], %s1876_s13 }
  0x35   : > { %s1880_s7 = scalar_lea.vmem (!%p1817_p3), [#allocation4], %s1298_s8 }
  0x38   : > { %1645 = dma.done.wait (%p1842_p12), %s522_s10, 64  }
  0x39   : > { %1647 = vsyncadd (%p1842_p12), %s522_s10, 4294967232  ;;  %s531_s6 = sand.u32 1, %s1809_s24   ;;  %s534_s14 = scalar_lea.vmem [#allocation7], %s1876_s13 }
  0x3a   : > { %s532_s11 = scalar_lea.sflag [#allocation8], %s531_s6 }
  0x3b   : > { %1649 = dma.done.wait (%p1842_p12), %s532_s11, 16  }
  0x3c   : > { %1651 = vsyncadd (%p1842_p12), %s532_s11, 4294967280 }
  0x3d   : > { %1653 = dma.done.wait (%p95_p1), [#allocation8], 256  }
  0x3e   : > { %1655 = vsyncadd (%p95_p1), [#allocation8], 4294967040  ;;  %v1368_v0 = vld [vmem:[%s2056_s3 + $0x8] sm:$0xff]  ;;  %s1687_s20 = smov 96   ;;  %v1367_v1 = vld [vmem:[%s2056_s3] sm:$0xff]  ;;  %p598_p3 = scmp.lt.s32.totalorder %s1674_s21, 1 }
  0x3f   : > { %631 = vrot.lane.b32.xlu0 %v1368_v0, %s1687_s20  ;;  %v1370_v2 = vld [vmem:[%s2056_s3 + $0x8] sm:$0xff]  ;;  %v1470_v3 = vld [vmem:[%s2057_s4] ss:$0 sm:$0xff]  ;;  %vm638_vm0 = vcmask 261120   ;;  %vm656_vm1 = vcmask 519168   ;;  %vm704_vm2 = vcmask 64512  }
  0x40   : > { %s599_s29 = scalar_select %p598_p3, %s1674_s21, 1  ;;  %689 = vmatpush.bf16.msra.mxu1 %v1370_v2  ;;  %v1369_v4 = vld [vmem:[%s2056_s3] sm:$0xff]  ;;  %635 = vrot.lane.b32.xlu1 %v1470_v3, %s1687_s20  ;;  %v611_v9 = vld [vmem:[%s1880_s7] sm:$0xf]  ;;  %vm742_vm3 = vcmask 1043456   ;;  %vm821_vm4 = vcmask 130112  }
  0x41   : > { %v1471_v18 = vld [vmem:[%s2057_s4] ss:$0 sm:$0xff]  ;;  %s1688_s7 = smov 120   ;;  %s1689_s15 = smov 112   ;;  %vm883_vm5 = vcmask 195712   ;;  %vm945_vm6 = vcmask 261312  }
  0x42   : > { %s1301_s27 = sshll.u32 %s599_s29, 3  ;;  %v1472_v31 = vld [vmem:[%s534_s14] ss:$0 sm:$0xff]  ;;  %s1690_s14 = smov 104   ;;  %vm1100_vm11 = vcmask 523264  }
  0x43   : > { %s604_s17 = scalar_lea.vmem %s2053_s0, %s1301_s27  ;;  %s1691_s18 = smov 72  }
  0x44   : > { %v1919_v5 = vld [vmem:[%s604_s17] sm:$0xff]  ;;  %690 = vmatpush.bf16.msra.mxu1 %v1369_v4  ;;  %s1693_s28 = smov 80   ;;  %s1694_s26 = smov 8  }
  0x45   : > { %v658_v6 = vpack.c.bf16 %v1919_v5, %v1919_v5  ;;  %s1695_s29 = smov 16   ;;  %s1696_s27 = smov 24  }
  0x46   : > { %s2099_s12 = sld [smem:[#allocation21_spill]]  ;;  %s1300_s10 = sshll.u32 %s1876_s13, 3 }
  0x47   : > { %629 = vrot.lane.b32.xlu0 %v1367_v1, %s1687_s20  ;;  %1319 = vmatmul.msk.bf16.vlgmr.msra.gmra.mxu1 %vm638_vm0, %v658_v6  ;;  %s2100_s6 = sld [smem:[#allocation26_spill]]  ;;  %s1364_s11 = sshll.u32 %s1674_s21, 3 }
  0x48   : > { %s2103_s25 = sld [smem:[#allocation25_spill]]  ;;  %s597_s21 = scalar_lea.vmem [#allocation10], %s1300_s10 }
  0x49   : > { %s2104_s8 = sld [smem:[#allocation27_spill]]  ;;  %s1165_s17 = sshll.u32 %s597_s21, 4  ;;  %s1166_s17 = int_to_ptr.vmem [resolvable:$true] %s1165_s17 }
  0x4a   : > { %s2108_s16 = sld [smem:[#allocation29_spill]] }
  0xb1   : > { %v632_v7 = vpop.permute.xlu0 %631 }
  0xb2   : > { %648 = vmatpush.bf16.msra.mxu0 %v632_v7  ;;  %v636_v12 = vpop.permute.xlu1 %635 }
  0xb9   : > { %v630_v8 = vpop.permute.xlu0 %629 }
  0xba   : > { %649 = vmatpush.bf16.msra.mxu0 %v630_v8 }
  0xbd   : > { %1310 = vmatmul.msk.bf16.vlgmr.msra.gmra.mxu0 %vm638_vm0, %v611_v9 }
  0xc4   : > { %v692_v10 = vpop.f32.mrf.mxu1 }
  0xc5   : > { %v693_v21 = vadd.f32 %v1471_v18, %v692_v10 }
  0xc7   : > { %v699_v23 = vpack.c.bf16 %v693_v21, %v693_v21 }
  0xcc   : > { %v694_v11 = vpop.f32.mrf.mxu1 }
 0x13a   : > { %v651_v13 = vpop.f32.mrf.mxu0 }
 0x13b   : > { %v652_v14 = vadd.f32 %v651_v13, %v636_v12 }
 0x13d   : > { %v655_v15 = vpack.c.bf16 %v652_v14, %v652_v14 }
 0x13f   : > { %657 = vst.msk [vmem:[#allocation2] sm:$0xf] %vm656_vm1, %v655_v15 }
 0x142   : > { %v653_v16 = vpop.f32.mrf.mxu0 }
 0x146   : > { %v697_v17 = vld [vmem:[#allocation2] sm:$0xf] }
 0x147   : > { %v698_v19 = vunpack.c.l.bf16 %v697_v17 }
 0x149   : > { %v1929_v20 = vpack.c.bf16 %v698_v19, %v698_v19 }
 0x14b   : > { %763 = vrot.lane.b32.xlu0 %v1929_v20, %s1688_s7  ;;  %737 = vrot.lane.b32.xlu2 %v1929_v20, %s1687_s20  ;;  %v709_v22 = vsel %vm704_vm2, %v1929_v20, 0  ;;  %s1692_s20 = smov 88  }
 0x14c   : > { %718 = vmatpush.bf16.xpose.msra.mxu2 %v709_v22 }
 0x153   : > { %761 = vrot.lane.b32.xlu0 %v699_v23, %s1688_s7  ;;  %1320 = vmatmul.msk.bf16.vlgmr.msra.gmra.mxu2 %vm704_vm2, %v699_v23 }
 0x15b   : > { %825 = vrot.lane.b32.xlu0 %v1929_v20, %s1689_s15 }
 0x163   : > { %823 = vrot.lane.b32.xlu0 %v699_v23, %s1689_s15 }
 0x1a5   : > { %v738_v24 = vpop.permute.xlu2 %737 }
 0x1a6   : > { %v744_v25 = vsel %vm742_vm3, %v738_v24, 0 }
 0x1a7   : > { %753 = vmatpush.bf16.msra.mxu3 %v744_v25 }
 0x1bd   : > { %v764_v26 = vpop.permute.xlu0 %763 }
 0x1be   : > { %v769_v27 = vsel %vm704_vm2, %v764_v26, 0 }
 0x1bf   : > { %778 = vmatpush.bf16.xpose.msrb.mxu3 %v769_v27 }
 0x1c5   : > { %v762_v28 = vpop.permute.xlu0 %761 }
 0x1cd   : > { %v826_v29 = vpop.permute.xlu0 %825 }
 0x1ce   : > { %v831_v30 = vsel %vm704_vm2, %v826_v29, 0 }
 0x1cf   : > { %840 = vmatpush.bf16.xpose.msrb.mxu1 %v831_v30 }
 0x1d5   : > { %v824_v32 = vpop.permute.xlu0 %823 }
 0x1d6   : > { %v720_v33 = vpop.f32.mrf.mxu2  ;;  %1324 = vmatmul.msk.bf16.vlgmr.msrb.gmra.mxu1 %vm704_vm2, %v824_v32 }
 0x1d7   : > { %v721_v34 = vadd.f32 %v1472_v31, %v720_v33 }
 0x1d9   : > { %v724_v35 = vsel %vm704_vm2, %v721_v34, -inf }
 0x1da   : > { %725 = vmax.xlane.f32.xlu1 %v724_v35 }
 0x1de   : > { %v722_v36 = vpop.f32.mrf.mxu2 }
 0x24d   : > { %v726_v37 = vpop.xlane.xlu1 %725 }
 0x24e   : > { %v727_v38 = vsub.f32 %v721_v34, %v726_v37 }
 0x250   : > { %v728_v39 = vmul.f32 1.442695, %v727_v38 }
 0x252   : > { %1480 = vpow2.f32 %v728_v39 }
 0x253   : > { %v842_v40 = vpop.f32.mrf.mxu1 }
 0x254   : > { %v843_v44 = vadd.f32 %v1472_v31, %v842_v40  ;;  %v1372_v40 = vld [vmem:[%s2058_s5 + $0x8] sm:$0xff] }
 0x255   : > { %978 = vmatpush.bf16.msra.mxu1 %v1372_v40 }
 0x256   : > { %v846_v45 = vsel %vm704_vm2, %v843_v44, -inf }
 0x258   : > { %v1481_v41 = vpop.eup %1480 }
 0x259   : > { %v730_v42 = vsel %vm704_vm2, %v1481_v41, 0.0 }
 0x25a   : > { %731 = vadd.xlane.f32.xlu2 %v730_v42 }
 0x25b   : > { %v844_v43 = vpop.f32.mrf.mxu1 }
 0x272   : > { %887 = vrot.lane.b32.xlu2 %v1929_v20, %s1690_s14 }
 0x27a   : > { %885 = vrot.lane.b32.xlu2 %v699_v23, %s1690_s14  ;;  %s2105_s14 = sld [smem:[#allocation28_spill]] }
 0x2a3   : > { %847 = vmax.xlane.f32.xlu2 %v846_v45 }
 0x2cd   : > { %v732_v46 = vpop.xlane.xlu2 %731 }
 0x2ce   : > { %1482 = vrcp.f32 %v732_v46  ;;  %v1473_v46 = vld [vmem:[%s2099_s12] ss:$0 sm:$0xff] }
 0x2d4   : > { %v1483_v47 = vpop.eup %1482 }
 0x2d5   : > { %v734_v48 = vmul.f32 %v1483_v47, %v1481_v41  ;;  %v888_v49 = vpop.permute.xlu2 %887  ;;  %v1371_v41 = vld [vmem:[%s2058_s5] sm:$0xff] }
 0x2d6   : > { %v893_v51 = vsel %vm704_vm2, %v888_v49, 0  ;;  %979 = vmatpush.bf16.msra.mxu1 %v1371_v41 }
 0x2d7   : > { %v735_v50 = vpack.c.bf16 %v734_v48, %v734_v48 }
 0x2d9   : > { %1321 = vmatmul.msk.bf16.vlgmr.msra.gmra.mxu3 %vm704_vm2, %v735_v50 }
 0x2da   : > { %902 = vmatpush.bf16.xpose.msra.mxu3 %v893_v51 }
 0x2dd   : > { %v886_v52 = vpop.permute.xlu2 %885 }
 0x2e9   : > { %1322 = vmatmul.msk.bf16.vlgmr.msrb.gmra.mxu3 %vm704_vm2, %v762_v28 }
 0x2f9   : > { %1326 = vmatmul.msk.bf16.vlgmr.msra.gmra.mxu3 %vm704_vm2, %v886_v52  ;;  %v1697_v52 = vmov 32.0  }
 0x316   : > { %v848_v53 = vpop.xlane.xlu2 %847 }
 0x317   : > { %v849_v54 = vsub.f32 %v843_v44, %v848_v53 }
 0x319   : > { %v850_v55 = vmul.f32 1.442695, %v849_v54 }
 0x31b   : > { %1484 = vpow2.f32 %v850_v55 }
 0x321   : > { %v1485_v56 = vpop.eup %1484 }
 0x322   : > { %v852_v57 = vsel %vm704_vm2, %v1485_v56, 0.0 }
 0x323   : > { %853 = vadd.xlane.f32.xlu2 %v852_v57 }
 0x33b   : > { %920 = vrot.lane.b32.xlu2 %v1929_v20, %s1691_s18  ;;  %s2101_s18 = sld [smem:[#allocation22_spill]] }
 0x35c   : > { %v755_v58 = vpop.f32.mrf.mxu3 }
 0x35d   : > { %759 = vst.msk [vmem:[#allocation3] sm:$0xff] %vm704_vm2, %v755_v58 }
 0x364   : > { %v757_v59 = vpop.f32.mrf.mxu3 }
 0x36c   : > { %v780_v60 = vpop.f32.mrf.mxu3 }
 0x36d   : > { %v781_v61 = vadd.f32 %v1472_v31, %v780_v60 }
 0x36f   : > { %v784_v62 = vsel %vm704_vm2, %v781_v61, -inf }
 0x370   : > { %785 = vmax.xlane.f32.xlu0 %v784_v62 }
 0x374   : > { %v782_v63 = vpop.f32.mrf.mxu3 }
 0x37c   : > { %v904_v0 = vpop.f32.mrf.mxu3 }
 0x37d   : > { %v905_v1 = vadd.f32 %v1472_v31, %v904_v0  ;;  %v1373_v0 = vld [vmem:[#allocation9] sm:$0xff] }
 0x37f   : > { %v908_v2 = vsel %vm704_vm2, %v905_v1, -inf }
 0x380   : > { %909 = vmax.xlane.f32.xlu1 %v908_v2 }
 0x384   : > { %v906_v3 = vpop.f32.mrf.mxu3 }
 0x396   : > { %v854_v15 = vpop.xlane.xlu2 %853 }
 0x399   : > { %796 = vrot.lane.b32.xlu1 %v1929_v20, %s1692_s20 }
 0x39e   : > { %v921_v16 = vpop.permute.xlu2 %920 }
 0x39f   : > { %v926_v19 = vsel %vm742_vm3, %v921_v16, 0 }
 0x3e3   : > { %v786_v4 = vpop.xlane.xlu0 %785 }
 0x3e4   : > { %v787_v6 = vsub.f32 %v781_v61, %v786_v4  ;;  %v1377_v4 = vld [vmem:[%s2100_s6 + $0x10] sm:$0xff] }
 0x3e6   : > { %v788_v7 = vmul.f32 1.442695, %v787_v6 }
 0x3e8   : > { %1486 = vpow2.f32 %v788_v7 }
 0x3ee   : > { %v1487_v8 = vpop.eup %1486 }
 0x3ef   : > { %v790_v9 = vsel %vm704_vm2, %v1487_v8, 0.0 }
 0x3f0   : > { %791 = vadd.xlane.f32.xlu1 %v790_v9 }
 0x3f3   : > { %v910_v10 = vpop.xlane.xlu1 %909 }
 0x3f4   : > { %v911_v11 = vsub.f32 %v905_v1, %v910_v10  ;;  %v1378_v1 = vld [vmem:[%s2100_s6 + $0x18] sm:$0xff] }
 0x3f5   : > { %1108 = vmatpush.bf16.msrb.mxu3 %v1378_v1 }
 0x3f6   : > { %v912_v12 = vmul.f32 1.442695, %v911_v11 }
 0x3f8   : > { %1488 = vpow2.f32 %v912_v12 }
 0x3f9   : > { %1109 = vmatpush.bf16.msrb.mxu3 %v1377_v4 }
 0x3fe   : > { %v1489_v13 = vpop.eup %1488 }
 0x3ff   : > { %v914_v14 = vsel %vm704_vm2, %v1489_v13, 0.0 }
 0x400   : > { %915 = vadd.xlane.f32.xlu0 %v914_v14 }
 0x409   : > { %858 = vrot.lane.b32.xlu1 %v1929_v20, %s1693_s28  ;;  %s2106_s28 = sld [smem:[#allocation30_spill]] }
 0x40b   : > { %v797_v17 = vpop.permute.xlu1 %796 }
 0x40c   : > { %v802_v18 = vsel %vm742_vm3, %v797_v17, 0 }
 0x40d   : > { %811 = vmatpush.bf16.msrb.mxu0 %v802_v18 }
 0x40f   : > { %s1612_s10 = scalar_lea.hbm %s2106_s28, 16 }
 0x411   : > { %935 = vmatpush.bf16.msra.mxu0 %v926_v19 }
 0x463   : > { %v792_v21 = vpop.xlane.xlu1 %791 }
 0x464   : > { %1490 = vrcp.f32 %v792_v21  ;;  %v1376_v21 = vld [vmem:[%s2100_s6 + $0x8] sm:$0xff] }
 0x465   : > { %1492 = vrcp.f32 %v854_v15  ;;  %1110 = vmatpush.bf16.msrb.mxu3 %v1376_v21 }
 0x46a   : > { %v1491_v22 = vpop.eup %1490 }
 0x46b   : > { %v794_v23 = vmul.f32 %v1491_v22, %v1487_v8  ;;  %v1493_v26 = vpop.eup %1492  ;;  %v1375_v22 = vld [vmem:[%s2100_s6] sm:$0xff] }
 0x46c   : > { %v856_v27 = vmul.f32 %v1493_v26, %v1485_v56  ;;  %1111 = vmatpush.bf16.msrb.mxu3 %v1375_v22 }
 0x46d   : > { %v795_v24 = vpack.c.bf16 %v794_v23, %v794_v23  ;;  %v1476_v23 = vld [vmem:[%s2103_s25] ss:$0 sm:$0xff]  ;;  %s1152_s25 = scalar_lea.sflag [#allocation6], %s1876_s13 }
 0x46e   : > { %v857_v32 = vpack.c.bf16 %v856_v27, %v856_v27 }
 0x46f   : > { %1323 = vmatmul.msk.bf16.vlgmr.msrb.gmra.mxu0 %vm704_vm2, %v795_v24 }
 0x473   : > { %v916_v25 = vpop.xlane.xlu0 %915 }
 0x474   : > { %1494 = vrcp.f32 %v916_v25 }
 0x475   : > { %1496 = vrcp.f32 %v1697_v52 }
 0x47a   : > { %v1495_v20 = vpop.eup %1494 }
 0x47b   : > { %v918_v28 = vmul.f32 %v1495_v20, %v1489_v13  ;;  %v859_v29 = vpop.permute.xlu1 %858  ;;  %v1497_v53 = vpop.eup %1496  ;;  %v1474_v13 = vld [vmem:[%s2101_s18] ss:$0 sm:$0xff] }
 0x47c   : > { %v864_v30 = vsel %vm742_vm3, %v859_v29, 0  ;;  %v992_v54 = vmul.f32 32.0, %v1497_v53  ;;  %vm996_vm7 = vweird.f32 %v1497_v53 }
 0x47d   : > { %v919_v31 = vpack.c.bf16 %v918_v28, %v918_v28  ;;  %873 = vmatpush.bf16.msrb.mxu2 %v864_v30  ;;  %v1477_v28 = vld [vmem:[%s2104_s8] ss:$0 sm:$0xff] }
 0x47e   : > { %v993_v55 = vsub.f32 1.0, %v992_v54 }
 0x47f   : > { %1327 = vmatmul.msk.bf16.vlgmr.msra.gmra.mxu0 %vm704_vm2, %v919_v31 }
 0x480   : > { %1325 = vmatmul.msk.bf16.vlgmr.msrb.gmra.mxu2 %vm704_vm2, %v857_v32  ;;  %v994_v56 = vmul.f32 %v1497_v53, %v993_v55 }
 0x482   : > { %v995_v57 = vadd.f32 %v1497_v53, %v994_v56 }
 0x484   : > { %v997_v58 = vsel %vm996_vm7, %v1497_v53, %v995_v57 }
 0x4ec   : > { %v813_v33 = vpop.f32.mrf.mxu0 }
 0x4ed   : > { %818 = vrot.lane.b32.xlu0 %v813_v33, %s1694_s26  ;;  %s2102_s26 = sld [smem:[#allocation23_spill]] }
 0x4f3   : > { %v1475_v15 = vld [vmem:[%s2102_s26] ss:$0 sm:$0xff]  ;;  %s1163_s26 = scalar_lea.hbm %s2106_s28, %s1364_s11 }
 0x4f4   : > { %v815_v34 = vpop.f32.mrf.mxu0  ;;  %s1167_s30 = sshll.u32 %s1163_s26, 4  ;;  %s1168_s30 = int_to_ptr.hbm [resolvable:$true] %s1167_s30 }
 0x4f5   : > { %s1606_s9 = sshra.s32 %s1168_s30, 4  ;;  %s1607_s9 = int_to_ptr.hbm [resolvable:$true] %s1606_s9 }
 0x4f6   : > { %s1608_s12 = scalar_lea.hbm %s1607_s9, 8  ;;  %p1613_p11 = scmp.lt.s32.totalorder %s1607_s9, %s2106_s28 }
 0x4f7   : > { %p1609_p1 = scmp.ne.s32.totalorder %s1607_s9, %s1608_s12  ;;  %p1614_p12 = scmp.lt.s32.totalorder %s1612_s10, %s1608_s12 }
 0x4f9   : > { %p1610_p9 = pnand %p1609_p1, %p1849_p4  ;;  %p1615_p13 = por %p1614_p12, %p1613_p11 }
 0x4fb   : > { %p1611_p10 = pneg %p1610_p9 }
 0x4fc   : > { %v937_v35 = vpop.f32.mrf.mxu0 }
 0x4fd   : > { %p1616_p0 = pnand %p1615_p13, %p1611_p10 }
 0x503   : > { %v875_v36 = vpop.f32.mrf.mxu2 }
 0x504   : > { %880 = vrot.lane.b32.xlu1 %v875_v36, %s1695_s29  ;;  %v939_v37 = vpop.f32.mrf.mxu0 }
 0x50b   : > { %v877_v38 = vpop.f32.mrf.mxu2 }
 0x50c   : > { %942 = vrot.lane.b32.xlu1 %v937_v35, %s1696_s27 }
 0x55f   : > { %v819_v39 = vpop.permute.xlu0 %818 }
 0x560   : > { %822 = vst.msk [vmem:[#allocation3] sm:$0xff] %vm821_vm4, %v819_v39 }
 0x576   : > { %v881_v42 = vpop.permute.xlu1 %880 }
 0x577   : > { %884 = vst.msk [vmem:[#allocation3] sm:$0xff] %vm883_vm5, %v881_v42 }
 0x57e   : > { %v943_v43 = vpop.permute.xlu1 %942 }
 0x57f   : > { %946 = vst.msk [vmem:[#allocation3] sm:$0xff] %vm945_vm6, %v943_v43 }
 0x586   : > { %v947_v44 = vld [vmem:[#allocation3] sm:$0xff] }
 0x587   : > { %v948_v45 = vpack.c.bf16 %v947_v44, %v947_v44 }
 0x589   : > { %1336 = vmatmul.msk.bf16.vlgmr.msra.gmra.mxu1 %vm638_vm0, %v948_v45 }
 0x606   : > { %v981_v47 = vpop.f32.mrf.mxu1 }
 0x607   : > { %v982_v48 = vadd.f32 %v1473_v46, %v981_v47 }
 0x609   : > { %v985_v49 = vadd.f32 %v982_v48, %v1919_v5  ;;  %v1374_v5 = vld [vmem:[#allocation9 + $0x8] sm:$0xff] }
 0x60a   : > { %1055 = vmatpush.bf16.msra.mxu2 %v1374_v5  ;;  %v1478_v48 = vld [vmem:[%s2105_s14] ss:$0 sm:$0xff] }
 0x60b   : > { %v988_v50 = vsel %vm638_vm0, %v985_v49, 0.0 }
 0x60c   : > { %989 = vadd.xlane.f32.xlu1 %v988_v50 }
 0x60e   : > { %v983_v51 = vpop.f32.mrf.mxu1  ;;  %1056 = vmatpush.bf16.msra.mxu2 %v1373_v0 }
 0x60f   : > { %v1479_v51 = vld [vmem:[%s2108_s16] ss:$0 sm:$0xff] }
 0x67f   : > { %v990_v59 = vpop.xlane.xlu1 %989 }
 0x680   : > { %v998_v60 = vmul.f32 %v997_v58, %v990_v59 }
 0x682   : > { %v999_v61 = vsub.f32 %v985_v49, %v998_v60 }
 0x684   : > { %v1000_v62 = vmul.f32 %v999_v61, %v999_v61 }
 0x686   : > { %v1001_v63 = vsel %vm638_vm0, %v1000_v62, 0.0 }
 0x687   : > { %1002 = vadd.xlane.f32.xlu0 %v1001_v63 }
 0x6fa   : > { %v1003_v2 = vpop.xlane.xlu0 %1002 }
 0x6fb   : > { %v1004_v3 = vmul.f32 %v1003_v2, %v997_v58 }
 0x6fd   : > { %v1005_v6 = vadd.f32 1e-05, %v1004_v3 }
 0x6ff   : > { %1498 = vrsqrt.f32 %v1005_v6  ;;  %vm1012_vm9 = vweird.f32 %v1005_v6 }
 0x705   : > { %v1499_v7 = vpop.eup %1498 }
 0x706   : > { %v1007_v8 = vmul.f32 %v1499_v7, %v1005_v6  ;;  %vm1013_vm8 = vweird.f32 %v1499_v7 }
 0x707   : > { %vm1014_vm10 = vmor %vm1012_vm9, %vm1013_vm8 }
 0x708   : > { %v1008_v9 = vmul.f32 %v1499_v7, %v1007_v8 }
 0x70a   : > { %v1009_v10 = vmul.f32 0.5, %v1008_v9 }
 0x70c   : > { %v1010_v11 = vsub.f32 1.5, %v1009_v10 }
 0x70e   : > { %v1011_v12 = vmul.f32 %v1499_v7, %v1010_v11 }
 0x710   : > { %v1015_v14 = vsel %vm1014_vm10, %v1499_v7, %v1011_v12 }
 0x711   : > { %v1016_v16 = vmul.f32 %v1015_v14, %v999_v61 }
 0x713   : > { %v1020_v17 = vmul.f32 %v1474_v13, %v1016_v16 }
 0x715   : > { %v1024_v18 = vadd.f32 %v1475_v15, %v1020_v17 }
 0x717   : > { %v1025_v19 = vpack.c.bf16 %v1024_v18, %v1024_v18 }
 0x719   : > { %1345 = vmatmul.msk.bf16.vlgmr.msra.gmra.mxu2 %vm638_vm0, %v1025_v19 }
 0x79c   : > { %v1058_v24 = vpop.f32.mrf.mxu2 }
 0x79d   : > { %v1059_v25 = vadd.f32 %v1476_v23, %v1058_v24 }
 0x79f   : > { %v1062_v26 = vmax.f32 %v1059_v25, 0.0 }
 0x7a1   : > { %v1063_v20 = vpack.c.bf16 %v1062_v26, %v1062_v26 }
 0x7a3   : > { %1362 = vmatmul.msk.bf16.vlgmr.msrb.gmra.mxu3 %vm1100_vm11, %v1063_v20 }
 0x7a4   : > { %v1060_v27 = vpop.f32.mrf.mxu2 }
 0x826   : > { %v1113_v29 = vpop.f32.mrf.mxu3 }
 0x827   : > { %v1114_v30 = vadd.f32 %v1477_v28, %v1113_v29 }
 0x829   : > { %v1117_v31 = vadd.f32 %v1114_v30, %v1024_v18 }
 0x82b   : > { %v1120_v32 = vsel %vm638_vm0, %v1117_v31, 0.0 }
 0x82c   : > { %1121 = vadd.xlane.f32.xlu2 %v1120_v32 }
 0x82e   : > { %v1115_v33 = vpop.f32.mrf.mxu3 }
 0x89f   : > { %v1122_v34 = vpop.xlane.xlu2 %1121 }
 0x8a0   : > { %v1123_v35 = vmul.f32 %v1122_v34, %v997_v58 }
 0x8a2   : > { %v1124_v36 = vsub.f32 %v1117_v31, %v1123_v35 }
 0x8a4   : > { %v1125_v37 = vmul.f32 %v1124_v36, %v1124_v36 }
 0x8a6   : > { %v1126_v38 = vsel %vm638_vm0, %v1125_v37, 0.0 }
 0x8a7   : > { %1127 = vadd.xlane.f32.xlu1 %v1126_v38 }
 0x91a   : > { %v1128_v39 = vpop.xlane.xlu1 %1127 }
 0x91b   : > { %v1129_v40 = vmul.f32 %v1128_v39, %v997_v58 }
 0x91d   : > { %v1130_v41 = vadd.f32 1e-05, %v1129_v40 }
 0x91f   : > { %1500 = vrsqrt.f32 %v1130_v41  ;;  %vm1137_vm13 = vweird.f32 %v1130_v41 }
 0x925   : > { %v1501_v42 = vpop.eup %1500 }
 0x926   : > { %v1132_v43 = vmul.f32 %v1501_v42, %v1130_v41  ;;  %vm1138_vm12 = vweird.f32 %v1501_v42 }
 0x927   : > { %vm1139_vm14 = vmor %vm1137_vm13, %vm1138_vm12 }
 0x928   : > { %v1133_v44 = vmul.f32 %v1501_v42, %v1132_v43 }
 0x92a   : > { %v1134_v45 = vmul.f32 0.5, %v1133_v44 }
 0x92c   : > { %v1135_v46 = vsub.f32 1.5, %v1134_v45 }
 0x92e   : > { %v1136_v47 = vmul.f32 %v1501_v42, %v1135_v46 }
 0x930   : > { %v1140_v49 = vsel %vm1139_vm14, %v1501_v42, %v1136_v47 }
 0x931   : > { %v1141_v50 = vmul.f32 %v1140_v49, %v1124_v36 }
 0x933   : > { %v1145_v52 = vmul.f32 %v1478_v48, %v1141_v50 }
 0x935   : > { %v1149_v53 = vadd.f32 %v1479_v51, %v1145_v52 }
 0x937   : > { %1150 = vst.msk [vmem:[%s597_s21] sm:$0xff] %vm638_vm0, %v1149_v53 }
 0x938   : > { %1619 = shalt.err (!%p1616_p0)
}
 0x939   : > { %1387 = dma.vmem_to_hbm [thread:$0]  (%p1849_p4), %s1166_s17, 128, %s1168_s30, %s1152_s25  }
 0x93a PF: > { %s2109_s13 = sld [smem:[#allocation15_spill]]  ;;  %p1401_p2 = pnand %p1294_p6, %p1857_p7 }
 0x93c   : > { %p1402_p5 = pneg %p1401_p2 }
 0x940   : > { %s1179_s18 = sand.u32 1, %s2109_s13  }
 0x941   : > { %s1180_s20 = scalar_lea.sflag [#allocation6], %s1179_s18 }
 0x942   : > { %1657 = dma.done.wait (%p1402_p5), %s1180_s20, 128  }
 0x943   : > { %1659 = vsyncadd (%p1402_p5), %s1180_s20, 4294967168  ;;  %s34_s23 = sadd.s32 1, %s1682_s23   ;;  %s2111_s26 = sld [smem:[#allocation16_spill]] }
 0x944   : > { %p31_p8 = scmp.ge.s32.totalorder %s34_s23, 4   ;;  %s2112_s20 = sld [smem:[#allocation19_spill]] }
 0x945   : > { %s2113_s29 = sld [smem:[#allocation17_spill]]  ;;  %s2114_s18 = smov %s1666_s19 }
 0x946   : > { %s2116_s21 = smov %s1678_s22 }
 0x947   :  { %33 = sbr.rel (!%p31_p8) target bundleno = 19 (0x13), region = 149 }
 0x949   : > { %s2115_s19 = smov %s2111_s26 }
 0x94b   : > { %s2117_s22 = smov %s2113_s29 }
 0x94c   :  { %1186 = vsyncpa [#allocation5], 1 }
 0x94d   :  { %1188 = vsyncpa [#allocation5 + $0x1], 1 }
 0x94e   :  { %1189 = vsyncpa [#allocation8], 1 }
 0x94f   :  { %1191 = vsyncpa [#allocation8 + $0x1], 1 }
 0x950   :  { %1192 = vsyncpa [#allocation6], 1 }
 0x951   :  { %1194 = vsyncpa [#allocation6 + $0x1], 1 }

</bundles_post_ra>
